<compile_context>
chip_gen: v6e
topology: v6e:2x2x1
jax: 0.10.0
libtpu: 0.0.40
codegen_flags: <defaults>
</compile_context>

<pallas_src>
import math
import jax
import jax.numpy as jnp
from jax import lax
from jax.experimental import pallas as pl
from jax.experimental.pallas import tpu as pltpu

bert_n_heads = 4
drop_out_rating = 0.3          # dropout == identity (eval mode)
len_after_AE = 500
LN_EPS = 1e-5
BN_EPS = 1e-5

# rows of the packed per-column parameter table
_R_L1B, _R_BN1S, _R_BN1T = 0, 1, 2
_R_AN1G, _R_AN1B = 3, 4
_R_EL1B = 5
_R_AN2G, _R_AN2B = 6, 7
_R_L2B = 8
_R_L3B, _R_BN3S, _R_BN3T = 9, 10, 11
_R_L4B = 12
_VEC_ROWS = 16


def _rup(x, m):
    return (x + m - 1) // m * m


def _pad2d(x, rows, cols):
    return jnp.zeros((rows, cols), x.dtype).at[:x.shape[0], :x.shape[1]].set(x)


# ----------------------------- in-kernel math helpers -----------------------------

def _erf_approx(x):
    # Abramowitz & Stegun 7.1.26 (|err| < 1.5e-7): exp/abs/select/mul/add/div only.
    p = 0.3275911
    a1, a2, a3, a4, a5 = 0.254829592, -0.284496736, 1.421413741, -1.453152027, 1.061405429
    sgn = jnp.where(x >= 0.0, 1.0, -1.0)
    ax = jnp.abs(x)
    t = 1.0 / (1.0 + p * ax)
    poly = ((((a5 * t + a4) * t + a3) * t + a2) * t + a1) * t
    return sgn * (1.0 - poly * jnp.exp(-ax * ax))


def _gelu(x):
    # torch reference: x * 0.5 * (1 + erf(x / sqrt(2)))
    return x * 0.5 * (1.0 + _erf_approx(x * (1.0 / math.sqrt(2.0))))


def _layernorm(y, gamma, beta, nfeat):
    # LayerNorm over the first `nfeat` (real) columns of a zero-padded row.
    col = lax.broadcasted_iota(jnp.int32, y.shape, 1)
    mask = (col < nfeat).astype(jnp.float32)
    y = y * mask
    inv_n = 1.0 / float(nfeat)
    mu = jnp.sum(y, axis=-1, keepdims=True) * inv_n
    yc = (y - mu) * mask
    var = jnp.sum(yc * yc, axis=-1, keepdims=True) * inv_n
    return yc * lax.rsqrt(var + LN_EPS) * gamma + beta


# ----------------------------- fused mega-kernel -----------------------------

def _make_ae1_kernel(cfg):
    MP = cfg['MP']
    VS_P, H_P, L_P = cfg['vs_p'], cfg['h_p'], cfg['L_p']
    H_FEAT = cfg['h']
    NH, DK, DP, BATCH = cfg['n_heads'], cfg['d_k'], cfg['d_p'], cfg['batch']
    inv_sqrt_dk = 1.0 / math.sqrt(DK)

    def kernel(x_ref, vec_ref,
               w1_hbm, wqkv_hbm, wfc_hbm, we1_hbm, w2_hbm, w3_hbm, w4_hbm,
               xo_ref, xae_ref,
               w1_v, wqkv_v, wfc_v, we1_v, w2_v, w3_v, w4_v, dma_sems):
        hbm_refs = (w1_hbm, wqkv_hbm, wfc_hbm, we1_hbm, w2_hbm, w3_hbm, w4_hbm)
        vmem_refs = (w1_v, wqkv_v, wfc_v, we1_v, w2_v, w3_v, w4_v)

        # Kick off ALL weight HBM->VMEM copies up front; each layer only waits for
        # its own weight, so later transfers overlap earlier layers' compute.
        copies = []
        for i, (src, dst) in enumerate(zip(hbm_refs, vmem_refs)):
            cp = pltpu.make_async_copy(src, dst, dma_sems.at[i])
            cp.start()
            copies.append(cp)

        def mm(a, w_vmem):
            # bf16 x bf16 MXU matmul, f32 accumulation (matches the reference math)
            return jnp.dot(a.astype(jnp.bfloat16), w_vmem[...],
                           preferred_element_type=jnp.float32)

        def cvec(row, width):
            return vec_ref[row:row + 1, 0:width]        # (1, width) f32, zero-padded

        # ---------------- l1 -> GELU -> BatchNorm1d (folded eval affine) ----------------
        x = x_ref[...]
        copies[0].wait()
        h1 = mm(x, w1_v) + cvec(_R_L1B, H_P)
        h1 = _gelu(h1)
        h1 = h1 * cvec(_R_BN1S, H_P) + cvec(_R_BN1T, H_P)
        # dropout == identity (eval mode)

        # ---------------- EncoderLayer: multi-head attention ----------------
        copies[1].wait()
        qkv = mm(h1, wqkv_v)                            # (MP, 3*NH*DP), head-major slots

        key_mask = lax.broadcasted_iota(jnp.int32, (MP, MP), 1) < BATCH
        ctx = []                                        # per-head (MP, DP) context
        for hd in range(NH):
            q_h = qkv[:, hd * DP:(hd + 1) * DP]
            k_h = qkv[:, NH * DP + hd * DP:NH * DP + (hd + 1) * DP]
            v_h = qkv[:, 2 * NH * DP + hd * DP:2 * NH * DP + (hd + 1) * DP]
            s = lax.dot_general(q_h, k_h, (((1,), (1,)), ((), ())),
                                preferred_element_type=jnp.float32) * inv_sqrt_dk
            s = jnp.where(key_mask, s, -1e30)           # mask padded key rows
            s = s - jnp.max(s, axis=-1, keepdims=True)
            e = jnp.exp(s)
            attn = e / jnp.sum(e, axis=-1, keepdims=True)
            ctx.append(jnp.dot(attn, v_h, preferred_element_type=jnp.float32))

        # torch quirk `context.transpose(1,2).reshape(-1, H*d_v)`: output row r mixes
        # head-r context rows 0..BATCH-1 (valid because BATCH == NH).  The matching
        # column permutation was folded into wfc at init; here row r of `cc` is just
        # head r's first BATCH context rows laid out flat (one 128-lane slot per row).
        row_ids = lax.broadcasted_iota(jnp.int32, (MP, BATCH * DP), 0)
        cc = jnp.zeros((MP, BATCH * DP), jnp.float32)
        for r in range(NH):
            flat_r = jnp.concatenate([ctx[r][n:n + 1, :] for n in range(BATCH)], axis=1)
            cc = cc + jnp.where(row_ids == r, flat_r, 0.0)

        copies[2].wait()
        mha = mm(cc, wfc_v)                             # fc projection (scramble folded in)
        x1 = _layernorm(mha + h1, cvec(_R_AN1G, H_P), cvec(_R_AN1B, H_P), H_FEAT)

        copies[3].wait()
        t = mm(x1, we1_v) + cvec(_R_EL1B, H_P)
        x2 = _layernorm(t + x1, cvec(_R_AN2G, H_P), cvec(_R_AN2B, H_P), H_FEAT)

        # ---------------- l2 (first user-visible output) ----------------
        copies[4].wait()
        xo = mm(x2, w2_v) + cvec(_R_L2B, L_P)
        xo_ref[...] = xo

        # ---------------- decoder: l3 -> GELU -> BatchNorm -> l4 ----------------
        copies[5].wait()
        t = mm(xo, w3_v) + cvec(_R_L3B, H_P)
        t = _gelu(t)
        t = t * cvec(_R_BN3S, H_P) + cvec(_R_BN3T, H_P)
        copies[6].wait()
        xae_ref[...] = mm(t, w4_v) + cvec(_R_L4B, VS_P)

    return kernel


# ----------------------------- parameter init (pre-padded, bf16 weights) -----------------------------

class KeyGen:
    def __init__(self, seed=0):
        self._key = jax.random.PRNGKey(seed)
        self._i = 0

    def __call__(self):
        self._i += 1
        return jax.random.fold_in(self._key, self._i)


def init_ae1(vector_size, batch, seed=0):
    assert batch == bert_n_heads, (
        "the fc permutation folded into wfc at init assumes batch == n_heads "
        "(the torch context.transpose(1,2).reshape(...) quirk)")
    kg = KeyGen(seed)
    vs = vector_size
    h = (vs + len_after_AE) // 2
    L = len_after_AE
    nh = bert_n_heads
    d_k = h // nh
    proj = d_k * nh
    vs_p, h_p, L_p = _rup(vs, 128), _rup(h, 128), _rup(L, 128)
    d_p = 128                                   # per-head slot width (d_k padded)
    MP = _rup(max(batch, 8), 8)
    vec_w = max(vs_p, h_p, L_p)

    def lin(d_in, d_out):
        W = 0.02 * jax.random.normal(kg(), (d_in, d_out), jnp.float32)
        b = 0.02 * jax.random.normal(kg(), (d_out,), jnp.float32)
        return W, b

    W1, b1 = lin(vs, h)
    Wq = 0.02 * jax.random.normal(kg(), (h, proj), jnp.float32)
    Wk = 0.02 * jax.random.normal(kg(), (h, proj), jnp.float32)
    Wv = 0.02 * jax.random.normal(kg(), (h, proj), jnp.float32)
    Wfc = 0.02 * jax.random.normal(kg(), (proj, h), jnp.float32)
    We1, be1 = lin(h, h)
    W2, b2 = lin(h, L)
    W3, b3 = lin(L, h)
    W4, b4 = lin(h, vs)

    # eval-mode BatchNorm (torch defaults) folded to a per-column affine
    def bn_fold(dim):
        gamma = jnp.ones((dim,), jnp.float32)
        beta = jnp.zeros((dim,), jnp.float32)
        mean = jnp.zeros((dim,), jnp.float32)
        var = jnp.ones((dim,), jnp.float32)
        scale = gamma / jnp.sqrt(var + BN_EPS)
        shift = beta - mean * scale
        return scale, shift

    bn1_s, bn1_t = bn_fold(h)
    bn3_s, bn3_t = bn_fold(h)

    # head-major Q/K/V weight: one 128-lane slot per (tensor, head), d_k real columns each
    wqkv = jnp.zeros((h_p, 3 * nh * d_p), jnp.float32)
    for which, W in enumerate((Wq, Wk, Wv)):
        base = which * nh * d_p
        for hd in range(nh):
            wqkv = wqkv.at[:h, base + hd * d_p:base + hd * d_p + d_k].set(
                W[:, hd * d_k:(hd + 1) * d_k])

    # fold the torch context.transpose(1,2).reshape quirk into wfc: reshaped fc-input
    # column c <-> (d = c // batch, n = c % batch); kernel feeds column (n*d_p + d).
    wfc_perm = Wfc.reshape(d_k, batch, h).transpose(1, 0, 2)       # [n, d, o]
    wfc = jnp.zeros((batch * d_p, h_p), jnp.float32)
    for n in range(batch):
        wfc = wfc.at[n * d_p:n * d_p + d_k, :h].set(wfc_perm[n])

    # packed per-column parameter table (one small VMEM input instead of ~13)
    vec = jnp.zeros((_VEC_ROWS, vec_w), jnp.float32)
    for row, v in ((_R_L1B, b1), (_R_BN1S, bn1_s), (_R_BN1T, bn1_t),
                   (_R_AN1G, jnp.ones((h,), jnp.float32)),
                   (_R_AN1B, jnp.zeros((h,), jnp.float32)),
                   (_R_EL1B, be1),
                   (_R_AN2G, jnp.ones((h,), jnp.float32)),
                   (_R_AN2B, jnp.zeros((h,), jnp.float32)),
                   (_R_L2B, b2), (_R_L3B, b3), (_R_BN3S, bn3_s), (_R_BN3T, bn3_t),
                   (_R_L4B, b4)):
        vec = vec.at[row, :v.shape[0]].set(v)

    bf = jnp.bfloat16
    return {
        'cfg': dict(batch=batch, MP=MP, vs=vs, h=h, L=L,
                    vs_p=vs_p, h_p=h_p, L_p=L_p, n_heads=nh, d_k=d_k, d_p=d_p),
        'vec': vec,
        'w1': _pad2d(W1, vs_p, h_p).astype(bf),
        'wqkv': wqkv.astype(bf),
        'wfc': wfc.astype(bf),
        'we1': _pad2d(We1, h_p, h_p).astype(bf),
        'w2': _pad2d(W2, h_p, L_p).astype(bf),
        'w3': _pad2d(W3, L_p, h_p).astype(bf),
        'w4': _pad2d(W4, h_p, vs_p).astype(bf),
        'raw': dict(W1=W1, b1=b1, Wq=Wq, Wk=Wk, Wv=Wv, Wfc=Wfc, We1=We1, be1=be1,
                    W2=W2, b2=b2, W3=W3, b3=b3, W4=W4, b4=b4,
                    bn1=(bn1_s, bn1_t), bn3=(bn3_s, bn3_t)),
    }


# ----------------------------- forward pass (one pallas_call) -----------------------------

def ae1_forward(X, p):
    cfg = p['cfg']
    batch, vs = X.shape
    assert batch == cfg['batch'] and vs == cfg['vs'], (X.shape, cfg)
    MP, vs_p, L_p = cfg['MP'], cfg['vs_p'], cfg['L_p']

    # TODO(synk): train-mode (stochastic dropout / batch-stats BatchNorm) is not modeled;
    #             eval semantics are used (dropout=identity, BN running stats).
    Xp = jnp.zeros((MP, vs_p), jnp.float32).at[:batch, :vs].set(X.astype(jnp.float32))

    weights = (p['w1'], p['wqkv'], p['wfc'], p['we1'], p['w2'], p['w3'], p['w4'])
    vmem = pl.BlockSpec(memory_space=pltpu.MemorySpace.VMEM)
    hbm = pl.BlockSpec(memory_space=pl.ANY)

    xo_p, xae_p = pl.pallas_call(
        _make_ae1_kernel(cfg),
        out_shape=(jax.ShapeDtypeStruct((MP, L_p), jnp.float32),
                   jax.ShapeDtypeStruct((MP, vs_p), jnp.float32)),
        in_specs=[vmem, vmem] + [hbm] * len(weights),
        out_specs=(vmem, vmem),
        scratch_shapes=[pltpu.VMEM(w.shape, jnp.bfloat16) for w in weights]
                     + [pltpu.SemaphoreType.DMA((len(weights),))],
    )(Xp, p['vec'], *weights)

    return xo_p[:batch, :cfg['L']], xae_p[:batch, :vs]


# ----------------------------- pure-JAX reference (same bf16-rounded weights) -----------------------------

def _ref_mm(x, W):
    return jnp.dot(x.astype(jnp.bfloat16).astype(jnp.float32),
                   W.astype(jnp.bfloat16).astype(jnp.float32))


def _ref_gelu(x):
    return x * 0.5 * (1.0 + jax.scipy.special.erf(x / math.sqrt(2.0)))


def _ref_ln(x):
    mu = jnp.mean(x, axis=-1, keepdims=True)
    xc = x - mu
    var = jnp.mean(xc * xc, axis=-1, keepdims=True)
    return xc * lax.rsqrt(var + LN_EPS)


def _ref_attention(q, k, v, n_heads, d_k):
    N = q.shape[0]
    Q = q.reshape(N, n_heads, d_k).transpose(1, 0, 2)
    K = k.reshape(N, n_heads, d_k).transpose(1, 0, 2)
    V = v.reshape(N, n_heads, d_k).transpose(1, 0, 2)
    scores = jnp.einsum('hnd,hmd->hnm', Q, K) / math.sqrt(d_k)
    attn = jax.nn.softmax(scores, axis=-1)
    context = jnp.einsum('hnm,hmd->hnd', attn, V)
    # faithful torch context.transpose(1, 2).reshape(-1, n_heads*d_v)
    return jnp.transpose(context, (0, 2, 1)).reshape(-1, n_heads * d_k)


def ref_ae1(X, p):
    r, cfg = p['raw'], p['cfg']
    bn1_s, bn1_t = r['bn1']
    bn3_s, bn3_t = r['bn3']
    x = _ref_gelu(_ref_mm(X, r['W1']) + r['b1']) * bn1_s + bn1_t
    q = _ref_mm(x, r['Wq'])
    k = _ref_mm(x, r['Wk'])
    v = _ref_mm(x, r['Wv'])
    ctx = _ref_attention(q, k, v, cfg['n_heads'], cfg['d_k'])
    x = _ref_ln(_ref_mm(ctx, r['Wfc']) + x)
    x = _ref_ln(_ref_mm(x, r['We1']) + r['be1'] + x)
    xo = _ref_mm(x, r['W2']) + r['b2']
    xae = _ref_gelu(_ref_mm(xo, r['W3']) + r['b3']) * bn3_s + bn3_t
    xae = _ref_mm(xae, r['W4']) + r['b4']
    return xo, xae


# ----------------------------- driver -----------------------------

if __name__ == "__main__":
    vector_size = 160          # hidden = (160 + 500) // 2 = 330, d_k = 82, 4 heads
    batch = 4                  # == bert_n_heads (required by the torch reshape quirk folding)

    params = init_ae1(vector_size, batch, seed=0)
    X = jax.random.normal(jax.random.PRNGKey(0), (batch, vector_size), jnp.float32)

    fwd = jax.jit(lambda x: ae1_forward(x, params))
    out_X, out_XAE = jax.block_until_ready(fwd(X))

    assert out_X.shape == (batch, len_after_AE), out_X.shape
    assert out_XAE.shape == (batch, vector_size), out_XAE.shape

    ref_X, ref_XAE = ref_ae1(X, params)

    def rel_err(a, b):
        return float(jnp.max(jnp.abs(a - b)) / (jnp.max(jnp.abs(b)) + 1e-6))

    e1, e2 = rel_err(out_X, ref_X), rel_err(out_XAE, ref_XAE)
    assert e1 < 2e-2, e1
    assert e2 < 2e-2, e2

    print("KERNEL_OK")
</pallas_src>

<mosaic_0001>
module attributes {stable_mosaic.version = 11 : i64} {
  func.func @kernel(%arg0: memref<8x256xf32, #tpu.memory_space<vmem>>, %arg1: memref<16x512xf32, #tpu.memory_space<vmem>>, %arg2: memref<256x384xbf16, #tpu.memory_space<any>>, %arg3: memref<384x1536xbf16, #tpu.memory_space<any>>, %arg4: memref<512x384xbf16, #tpu.memory_space<any>>, %arg5: memref<384x384xbf16, #tpu.memory_space<any>>, %arg6: memref<384x512xbf16, #tpu.memory_space<any>>, %arg7: memref<512x384xbf16, #tpu.memory_space<any>>, %arg8: memref<384x256xbf16, #tpu.memory_space<any>>, %arg9: memref<8x512xf32, #tpu.memory_space<vmem>>, %arg10: memref<8x256xf32, #tpu.memory_space<vmem>>, %arg11: memref<256x384xbf16, #tpu.memory_space<vmem>>, %arg12: memref<384x1536xbf16, #tpu.memory_space<vmem>>, %arg13: memref<512x384xbf16, #tpu.memory_space<vmem>>, %arg14: memref<384x384xbf16, #tpu.memory_space<vmem>>, %arg15: memref<384x512xbf16, #tpu.memory_space<vmem>>, %arg16: memref<512x384xbf16, #tpu.memory_space<vmem>>, %arg17: memref<384x256xbf16, #tpu.memory_space<vmem>>, %arg18: memref<7x!tpu.dma_semaphore, #tpu.memory_space<semaphore_mem>>) attributes {dimension_semantics = [], scalar_prefetch = 0 : i64, scratch_operands = 8 : i64, tpu.core_type = #tpu.core_type<tc>} {
    %c0_i32 = arith.constant 0 : i32
    %0 = tpu.memref_slice %arg18[%c0_i32] : memref<7x!tpu.dma_semaphore, #tpu.memory_space<semaphore_mem>> -> memref<1x!tpu.dma_semaphore, #tpu.memory_space<semaphore_mem>>
    %1 = tpu.memref_squeeze %0 : memref<1x!tpu.dma_semaphore, #tpu.memory_space<semaphore_mem>> -> memref<!tpu.dma_semaphore, #tpu.memory_space<semaphore_mem>>
    tpu.enqueue_dma source(%arg2 : memref<256x384xbf16, #tpu.memory_space<any>>) target(%arg11 : memref<256x384xbf16, #tpu.memory_space<vmem>>) target_semaphore(%1 : memref<!tpu.dma_semaphore, #tpu.memory_space<semaphore_mem>>)
    %c1_i32 = arith.constant 1 : i32
    %2 = tpu.memref_slice %arg18[%c1_i32] : memref<7x!tpu.dma_semaphore, #tpu.memory_space<semaphore_mem>> -> memref<1x!tpu.dma_semaphore, #tpu.memory_space<semaphore_mem>>
    %3 = tpu.memref_squeeze %2 : memref<1x!tpu.dma_semaphore, #tpu.memory_space<semaphore_mem>> -> memref<!tpu.dma_semaphore, #tpu.memory_space<semaphore_mem>>
    tpu.enqueue_dma source(%arg3 : memref<384x1536xbf16, #tpu.memory_space<any>>) target(%arg12 : memref<384x1536xbf16, #tpu.memory_space<vmem>>) target_semaphore(%3 : memref<!tpu.dma_semaphore, #tpu.memory_space<semaphore_mem>>)
    %c2_i32 = arith.constant 2 : i32
    %4 = tpu.memref_slice %arg18[%c2_i32] : memref<7x!tpu.dma_semaphore, #tpu.memory_space<semaphore_mem>> -> memref<1x!tpu.dma_semaphore, #tpu.memory_space<semaphore_mem>>
    %5 = tpu.memref_squeeze %4 : memref<1x!tpu.dma_semaphore, #tpu.memory_space<semaphore_mem>> -> memref<!tpu.dma_semaphore, #tpu.memory_space<semaphore_mem>>
    tpu.enqueue_dma source(%arg4 : memref<512x384xbf16, #tpu.memory_space<any>>) target(%arg13 : memref<512x384xbf16, #tpu.memory_space<vmem>>) target_semaphore(%5 : memref<!tpu.dma_semaphore, #tpu.memory_space<semaphore_mem>>)
    %c3_i32 = arith.constant 3 : i32
    %6 = tpu.memref_slice %arg18[%c3_i32] : memref<7x!tpu.dma_semaphore, #tpu.memory_space<semaphore_mem>> -> memref<1x!tpu.dma_semaphore, #tpu.memory_space<semaphore_mem>>
    %7 = tpu.memref_squeeze %6 : memref<1x!tpu.dma_semaphore, #tpu.memory_space<semaphore_mem>> -> memref<!tpu.dma_semaphore, #tpu.memory_space<semaphore_mem>>
    tpu.enqueue_dma source(%arg5 : memref<384x384xbf16, #tpu.memory_space<any>>) target(%arg14 : memref<384x384xbf16, #tpu.memory_space<vmem>>) target_semaphore(%7 : memref<!tpu.dma_semaphore, #tpu.memory_space<semaphore_mem>>)
    %c4_i32 = arith.constant 4 : i32
    %8 = tpu.memref_slice %arg18[%c4_i32] : memref<7x!tpu.dma_semaphore, #tpu.memory_space<semaphore_mem>> -> memref<1x!tpu.dma_semaphore, #tpu.memory_space<semaphore_mem>>
    %9 = tpu.memref_squeeze %8 : memref<1x!tpu.dma_semaphore, #tpu.memory_space<semaphore_mem>> -> memref<!tpu.dma_semaphore, #tpu.memory_space<semaphore_mem>>
    tpu.enqueue_dma source(%arg6 : memref<384x512xbf16, #tpu.memory_space<any>>) target(%arg15 : memref<384x512xbf16, #tpu.memory_space<vmem>>) target_semaphore(%9 : memref<!tpu.dma_semaphore, #tpu.memory_space<semaphore_mem>>)
    %c5_i32 = arith.constant 5 : i32
    %10 = tpu.memref_slice %arg18[%c5_i32] : memref<7x!tpu.dma_semaphore, #tpu.memory_space<semaphore_mem>> -> memref<1x!tpu.dma_semaphore, #tpu.memory_space<semaphore_mem>>
    %11 = tpu.memref_squeeze %10 : memref<1x!tpu.dma_semaphore, #tpu.memory_space<semaphore_mem>> -> memref<!tpu.dma_semaphore, #tpu.memory_space<semaphore_mem>>
    tpu.enqueue_dma source(%arg7 : memref<512x384xbf16, #tpu.memory_space<any>>) target(%arg16 : memref<512x384xbf16, #tpu.memory_space<vmem>>) target_semaphore(%11 : memref<!tpu.dma_semaphore, #tpu.memory_space<semaphore_mem>>)
    %c6_i32 = arith.constant 6 : i32
    %12 = tpu.memref_slice %arg18[%c6_i32] : memref<7x!tpu.dma_semaphore, #tpu.memory_space<semaphore_mem>> -> memref<1x!tpu.dma_semaphore, #tpu.memory_space<semaphore_mem>>
    %13 = tpu.memref_squeeze %12 : memref<1x!tpu.dma_semaphore, #tpu.memory_space<semaphore_mem>> -> memref<!tpu.dma_semaphore, #tpu.memory_space<semaphore_mem>>
    tpu.enqueue_dma source(%arg8 : memref<384x256xbf16, #tpu.memory_space<any>>) target(%arg17 : memref<384x256xbf16, #tpu.memory_space<vmem>>) target_semaphore(%13 : memref<!tpu.dma_semaphore, #tpu.memory_space<semaphore_mem>>)
    %c0 = arith.constant 0 : index
    %c0_0 = arith.constant 0 : index
    %14 = vector.load %arg0[%c0, %c0_0] : memref<8x256xf32, #tpu.memory_space<vmem>>, vector<8x256xf32>
    %c0_i32_1 = arith.constant 0 : i32
    %15 = tpu.memref_slice %arg18[%c0_i32_1] : memref<7x!tpu.dma_semaphore, #tpu.memory_space<semaphore_mem>> -> memref<1x!tpu.dma_semaphore, #tpu.memory_space<semaphore_mem>>
    %16 = tpu.memref_squeeze %15 : memref<1x!tpu.dma_semaphore, #tpu.memory_space<semaphore_mem>> -> memref<!tpu.dma_semaphore, #tpu.memory_space<semaphore_mem>>
    tpu.wait_dma2 semaphore(%16 : memref<!tpu.dma_semaphore, #tpu.memory_space<semaphore_mem>>) src(%arg2 : memref<256x384xbf16, #tpu.memory_space<any>>) dst(%arg11 : memref<256x384xbf16, #tpu.memory_space<vmem>>)
    %17 = arith.truncf %14 : vector<8x256xf32> to vector<8x256xbf16>
    %c0_2 = arith.constant 0 : index
    %c0_3 = arith.constant 0 : index
    %18 = vector.load %arg11[%c0_2, %c0_3] : memref<256x384xbf16, #tpu.memory_space<vmem>>, vector<256x384xbf16>
    %cst = arith.constant dense<0.000000e+00> : vector<8x384xf32>
    %19 = tpu.matmul %17, %18, %cst {dimension_numbers = #tpu.dot_dimension_numbers<[1], [0], [0], [1], [0, 0, 1, 1], [], []>} : vector<8x256xbf16>, vector<256x384xbf16>, vector<8x384xf32> -> vector<8x384xf32>
    %c0_4 = arith.constant 0 : index
    %c0_5 = arith.constant 0 : index
    %20 = vector.load %arg1[%c0_4, %c0_5] : memref<16x512xf32, #tpu.memory_space<vmem>>, vector<1x384xf32>
    %21 = vector.broadcast %20 : vector<1x384xf32> to vector<8x384xf32>
    %22 = arith.addf %19, %21 : vector<8x384xf32>
    %cst_6 = arith.constant 5.000000e-01 : f32
    %23 = vector.broadcast %cst_6 : f32 to vector<8x384xf32>
    %24 = arith.mulf %22, %23 : vector<8x384xf32>
    %cst_7 = arith.constant 0.707106769 : f32
    %25 = vector.broadcast %cst_7 : f32 to vector<8x384xf32>
    %26 = arith.mulf %22, %25 : vector<8x384xf32>
    %cst_8 = arith.constant 0.000000e+00 : f32
    %27 = vector.broadcast %cst_8 : f32 to vector<8x384xf32>
    %28 = arith.cmpf oge, %26, %27 : vector<8x384xf32>
    %cst_9 = arith.constant 1.000000e+00 : f32
    %cst_10 = arith.constant -1.000000e+00 : f32
    %29 = vector.broadcast %cst_9 : f32 to vector<8x384xf32>
    %30 = vector.broadcast %cst_10 : f32 to vector<8x384xf32>
    %31 = arith.select %28, %29, %30 : vector<8x384xi1>, vector<8x384xf32>
    %32 = math.absf %26 : vector<8x384xf32>
    %cst_11 = arith.constant 0.327591091 : f32
    %33 = vector.broadcast %cst_11 : f32 to vector<8x384xf32>
    %34 = arith.mulf %33, %32 : vector<8x384xf32>
    %cst_12 = arith.constant 1.000000e+00 : f32
    %35 = vector.broadcast %cst_12 : f32 to vector<8x384xf32>
    %36 = arith.addf %35, %34 : vector<8x384xf32>
    %cst_13 = arith.constant 1.000000e+00 : f32
    %37 = vector.broadcast %cst_13 : f32 to vector<8x384xf32>
    %38 = arith.divf %37, %36 : vector<8x384xf32>
    %cst_14 = arith.constant 1.06140542 : f32
    %39 = vector.broadcast %cst_14 : f32 to vector<8x384xf32>
    %40 = arith.mulf %39, %38 : vector<8x384xf32>
    %cst_15 = arith.constant -1.45315206 : f32
    %41 = vector.broadcast %cst_15 : f32 to vector<8x384xf32>
    %42 = arith.addf %40, %41 : vector<8x384xf32>
    %43 = arith.mulf %42, %38 : vector<8x384xf32>
    %cst_16 = arith.constant 1.42141378 : f32
    %44 = vector.broadcast %cst_16 : f32 to vector<8x384xf32>
    %45 = arith.addf %43, %44 : vector<8x384xf32>
    %46 = arith.mulf %45, %38 : vector<8x384xf32>
    %cst_17 = arith.constant -0.284496725 : f32
    %47 = vector.broadcast %cst_17 : f32 to vector<8x384xf32>
    %48 = arith.addf %46, %47 : vector<8x384xf32>
    %49 = arith.mulf %48, %38 : vector<8x384xf32>
    %cst_18 = arith.constant 0.254829586 : f32
    %50 = vector.broadcast %cst_18 : f32 to vector<8x384xf32>
    %51 = arith.addf %49, %50 : vector<8x384xf32>
    %52 = arith.mulf %51, %38 : vector<8x384xf32>
    %cst_19 = arith.constant 0.000000e+00 : f32
    %53 = vector.broadcast %cst_19 : f32 to vector<8x384xf32>
    %54 = arith.subf %53, %32 : vector<8x384xf32>
    %55 = arith.mulf %54, %32 : vector<8x384xf32>
    %56 = math.exp %55 : vector<8x384xf32>
    %57 = arith.mulf %52, %56 : vector<8x384xf32>
    %cst_20 = arith.constant 1.000000e+00 : f32
    %58 = vector.broadcast %cst_20 : f32 to vector<8x384xf32>
    %59 = arith.subf %58, %57 : vector<8x384xf32>
    %60 = arith.mulf %31, %59 : vector<8x384xf32>
    %cst_21 = arith.constant 1.000000e+00 : f32
    %61 = vector.broadcast %cst_21 : f32 to vector<8x384xf32>
    %62 = arith.addf %61, %60 : vector<8x384xf32>
    %63 = arith.mulf %24, %62 : vector<8x384xf32>
    %c1 = arith.constant 1 : index
    %c0_22 = arith.constant 0 : index
    %64 = vector.load %arg1[%c1, %c0_22] : memref<16x512xf32, #tpu.memory_space<vmem>>, vector<1x384xf32>
    %65 = vector.broadcast %64 : vector<1x384xf32> to vector<8x384xf32>
    %66 = arith.mulf %63, %65 : vector<8x384xf32>
    %c2 = arith.constant 2 : index
    %c0_23 = arith.constant 0 : index
    %67 = vector.load %arg1[%c2, %c0_23] : memref<16x512xf32, #tpu.memory_space<vmem>>, vector<1x384xf32>
    %68 = vector.broadcast %67 : vector<1x384xf32> to vector<8x384xf32>
    %69 = arith.addf %66, %68 : vector<8x384xf32>
    %c1_i32_24 = arith.constant 1 : i32
    %70 = tpu.memref_slice %arg18[%c1_i32_24] : memref<7x!tpu.dma_semaphore, #tpu.memory_space<semaphore_mem>> -> memref<1x!tpu.dma_semaphore, #tpu.memory_space<semaphore_mem>>
    %71 = tpu.memref_squeeze %70 : memref<1x!tpu.dma_semaphore, #tpu.memory_space<semaphore_mem>> -> memref<!tpu.dma_semaphore, #tpu.memory_space<semaphore_mem>>
    tpu.wait_dma2 semaphore(%71 : memref<!tpu.dma_semaphore, #tpu.memory_space<semaphore_mem>>) src(%arg3 : memref<384x1536xbf16, #tpu.memory_space<any>>) dst(%arg12 : memref<384x1536xbf16, #tpu.memory_space<vmem>>)
    %72 = arith.truncf %69 : vector<8x384xf32> to vector<8x384xbf16>
    %c0_25 = arith.constant 0 : index
    %c0_26 = arith.constant 0 : index
    %73 = vector.load %arg12[%c0_25, %c0_26] : memref<384x1536xbf16, #tpu.memory_space<vmem>>, vector<384x1536xbf16>
    %cst_27 = arith.constant dense<0.000000e+00> : vector<8x1536xf32>
    %74 = tpu.matmul %72, %73, %cst_27 {dimension_numbers = #tpu.dot_dimension_numbers<[1], [0], [0], [1], [0, 0, 1, 1], [], []>} : vector<8x384xbf16>, vector<384x1536xbf16>, vector<8x1536xf32> -> vector<8x1536xf32>
    %75 = tpu.iota {dimensions = array<i32: 1>} : vector<8x8xi32>
    %c4_i32_28 = arith.constant 4 : i32
    %76 = vector.broadcast %c4_i32_28 : i32 to vector<8x8xi32>
    %77 = arith.cmpi slt, %75, %76 : vector<8x8xi32>
    %78 = vector.extract_strided_slice %74 {offsets = [0, 0], sizes = [8, 128], strides = [1, 1]} : vector<8x1536xf32> to vector<8x128xf32>
    %79 = vector.extract_strided_slice %74 {offsets = [0, 512], sizes = [8, 128], strides = [1, 1]} : vector<8x1536xf32> to vector<8x128xf32>
    %80 = vector.extract_strided_slice %74 {offsets = [0, 1024], sizes = [8, 128], strides = [1, 1]} : vector<8x1536xf32> to vector<8x128xf32>
    %cst_29 = arith.constant dense<0.000000e+00> : vector<8x8xf32>
    %81 = tpu.matmul %78, %79, %cst_29 {dimension_numbers = #tpu.dot_dimension_numbers<[1], [1], [0], [0], [0, 0, 1, 0], [], []>} : vector<8x128xf32>, vector<8x128xf32>, vector<8x8xf32> -> vector<8x8xf32>
    %cst_30 = arith.constant 0.11043153 : f32
    %82 = vector.broadcast %cst_30 : f32 to vector<8x8xf32>
    %83 = arith.mulf %81, %82 : vector<8x8xf32>
    %cst_31 = arith.constant -1.000000e+30 : f32
    %84 = vector.broadcast %cst_31 : f32 to vector<8x8xf32>
    %85 = arith.select %77, %83, %84 : vector<8x8xi1>, vector<8x8xf32>
    %cst_32 = arith.constant dense<0xFF800000> : vector<8xf32>
    %86 = vector.multi_reduction <maximumf>, %85, %cst_32 [1] : vector<8x8xf32> to vector<8xf32>
    %87 = vector.shape_cast %86 : vector<8xf32> to vector<8x1xf32>
    %88 = vector.broadcast %87 : vector<8x1xf32> to vector<8x8xf32>
    %89 = arith.subf %85, %88 : vector<8x8xf32>
    %90 = math.exp %89 : vector<8x8xf32>
    %cst_33 = arith.constant dense<0.000000e+00> : vector<8xf32>
    %91 = vector.multi_reduction <add>, %90, %cst_33 [1] : vector<8x8xf32> to vector<8xf32>
    %92 = vector.shape_cast %91 : vector<8xf32> to vector<8x1xf32>
    %93 = vector.broadcast %92 : vector<8x1xf32> to vector<8x8xf32>
    %94 = arith.divf %90, %93 : vector<8x8xf32>
    %cst_34 = arith.constant dense<0.000000e+00> : vector<8x128xf32>
    %95 = tpu.matmul %94, %80, %cst_34 {dimension_numbers = #tpu.dot_dimension_numbers<[1], [0], [0], [1], [0, 0, 1, 1], [], []>} : vector<8x8xf32>, vector<8x128xf32>, vector<8x128xf32> -> vector<8x128xf32>
    %96 = vector.extract_strided_slice %74 {offsets = [0, 128], sizes = [8, 128], strides = [1, 1]} : vector<8x1536xf32> to vector<8x128xf32>
    %97 = vector.extract_strided_slice %74 {offsets = [0, 640], sizes = [8, 128], strides = [1, 1]} : vector<8x1536xf32> to vector<8x128xf32>
    %98 = vector.extract_strided_slice %74 {offsets = [0, 1152], sizes = [8, 128], strides = [1, 1]} : vector<8x1536xf32> to vector<8x128xf32>
    %cst_35 = arith.constant dense<0.000000e+00> : vector<8x8xf32>
    %99 = tpu.matmul %96, %97, %cst_35 {dimension_numbers = #tpu.dot_dimension_numbers<[1], [1], [0], [0], [0, 0, 1, 0], [], []>} : vector<8x128xf32>, vector<8x128xf32>, vector<8x8xf32> -> vector<8x8xf32>
    %cst_36 = arith.constant 0.11043153 : f32
    %100 = vector.broadcast %cst_36 : f32 to vector<8x8xf32>
    %101 = arith.mulf %99, %100 : vector<8x8xf32>
    %cst_37 = arith.constant -1.000000e+30 : f32
    %102 = vector.broadcast %cst_37 : f32 to vector<8x8xf32>
    %103 = arith.select %77, %101, %102 : vector<8x8xi1>, vector<8x8xf32>
    %cst_38 = arith.constant dense<0xFF800000> : vector<8xf32>
    %104 = vector.multi_reduction <maximumf>, %103, %cst_38 [1] : vector<8x8xf32> to vector<8xf32>
    %105 = vector.shape_cast %104 : vector<8xf32> to vector<8x1xf32>
    %106 = vector.broadcast %105 : vector<8x1xf32> to vector<8x8xf32>
    %107 = arith.subf %103, %106 : vector<8x8xf32>
    %108 = math.exp %107 : vector<8x8xf32>
    %cst_39 = arith.constant dense<0.000000e+00> : vector<8xf32>
    %109 = vector.multi_reduction <add>, %108, %cst_39 [1] : vector<8x8xf32> to vector<8xf32>
    %110 = vector.shape_cast %109 : vector<8xf32> to vector<8x1xf32>
    %111 = vector.broadcast %110 : vector<8x1xf32> to vector<8x8xf32>
    %112 = arith.divf %108, %111 : vector<8x8xf32>
    %cst_40 = arith.constant dense<0.000000e+00> : vector<8x128xf32>
    %113 = tpu.matmul %112, %98, %cst_40 {dimension_numbers = #tpu.dot_dimension_numbers<[1], [0], [0], [1], [0, 0, 1, 1], [], []>} : vector<8x8xf32>, vector<8x128xf32>, vector<8x128xf32> -> vector<8x128xf32>
    %114 = vector.extract_strided_slice %74 {offsets = [0, 256], sizes = [8, 128], strides = [1, 1]} : vector<8x1536xf32> to vector<8x128xf32>
    %115 = vector.extract_strided_slice %74 {offsets = [0, 768], sizes = [8, 128], strides = [1, 1]} : vector<8x1536xf32> to vector<8x128xf32>
    %116 = vector.extract_strided_slice %74 {offsets = [0, 1280], sizes = [8, 128], strides = [1, 1]} : vector<8x1536xf32> to vector<8x128xf32>
    %cst_41 = arith.constant dense<0.000000e+00> : vector<8x8xf32>
    %117 = tpu.matmul %114, %115, %cst_41 {dimension_numbers = #tpu.dot_dimension_numbers<[1], [1], [0], [0], [0, 0, 1, 0], [], []>} : vector<8x128xf32>, vector<8x128xf32>, vector<8x8xf32> -> vector<8x8xf32>
    %cst_42 = arith.constant 0.11043153 : f32
    %118 = vector.broadcast %cst_42 : f32 to vector<8x8xf32>
    %119 = arith.mulf %117, %118 : vector<8x8xf32>
    %cst_43 = arith.constant -1.000000e+30 : f32
    %120 = vector.broadcast %cst_43 : f32 to vector<8x8xf32>
    %121 = arith.select %77, %119, %120 : vector<8x8xi1>, vector<8x8xf32>
    %cst_44 = arith.constant dense<0xFF800000> : vector<8xf32>
    %122 = vector.multi_reduction <maximumf>, %121, %cst_44 [1] : vector<8x8xf32> to vector<8xf32>
    %123 = vector.shape_cast %122 : vector<8xf32> to vector<8x1xf32>
    %124 = vector.broadcast %123 : vector<8x1xf32> to vector<8x8xf32>
    %125 = arith.subf %121, %124 : vector<8x8xf32>
    %126 = math.exp %125 : vector<8x8xf32>
    %cst_45 = arith.constant dense<0.000000e+00> : vector<8xf32>
    %127 = vector.multi_reduction <add>, %126, %cst_45 [1] : vector<8x8xf32> to vector<8xf32>
    %128 = vector.shape_cast %127 : vector<8xf32> to vector<8x1xf32>
    %129 = vector.broadcast %128 : vector<8x1xf32> to vector<8x8xf32>
    %130 = arith.divf %126, %129 : vector<8x8xf32>
    %cst_46 = arith.constant dense<0.000000e+00> : vector<8x128xf32>
    %131 = tpu.matmul %130, %116, %cst_46 {dimension_numbers = #tpu.dot_dimension_numbers<[1], [0], [0], [1], [0, 0, 1, 1], [], []>} : vector<8x8xf32>, vector<8x128xf32>, vector<8x128xf32> -> vector<8x128xf32>
    %132 = vector.extract_strided_slice %74 {offsets = [0, 384], sizes = [8, 128], strides = [1, 1]} : vector<8x1536xf32> to vector<8x128xf32>
    %133 = vector.extract_strided_slice %74 {offsets = [0, 896], sizes = [8, 128], strides = [1, 1]} : vector<8x1536xf32> to vector<8x128xf32>
    %134 = vector.extract_strided_slice %74 {offsets = [0, 1408], sizes = [8, 128], strides = [1, 1]} : vector<8x1536xf32> to vector<8x128xf32>
    %cst_47 = arith.constant dense<0.000000e+00> : vector<8x8xf32>
    %135 = tpu.matmul %132, %133, %cst_47 {dimension_numbers = #tpu.dot_dimension_numbers<[1], [1], [0], [0], [0, 0, 1, 0], [], []>} : vector<8x128xf32>, vector<8x128xf32>, vector<8x8xf32> -> vector<8x8xf32>
    %cst_48 = arith.constant 0.11043153 : f32
    %136 = vector.broadcast %cst_48 : f32 to vector<8x8xf32>
    %137 = arith.mulf %135, %136 : vector<8x8xf32>
    %cst_49 = arith.constant -1.000000e+30 : f32
    %138 = vector.broadcast %cst_49 : f32 to vector<8x8xf32>
    %139 = arith.select %77, %137, %138 : vector<8x8xi1>, vector<8x8xf32>
    %cst_50 = arith.constant dense<0xFF800000> : vector<8xf32>
    %140 = vector.multi_reduction <maximumf>, %139, %cst_50 [1] : vector<8x8xf32> to vector<8xf32>
    %141 = vector.shape_cast %140 : vector<8xf32> to vector<8x1xf32>
    %142 = vector.broadcast %141 : vector<8x1xf32> to vector<8x8xf32>
    %143 = arith.subf %139, %142 : vector<8x8xf32>
    %144 = math.exp %143 : vector<8x8xf32>
    %cst_51 = arith.constant dense<0.000000e+00> : vector<8xf32>
    %145 = vector.multi_reduction <add>, %144, %cst_51 [1] : vector<8x8xf32> to vector<8xf32>
    %146 = vector.shape_cast %145 : vector<8xf32> to vector<8x1xf32>
    %147 = vector.broadcast %146 : vector<8x1xf32> to vector<8x8xf32>
    %148 = arith.divf %144, %147 : vector<8x8xf32>
    %cst_52 = arith.constant dense<0.000000e+00> : vector<8x128xf32>
    %149 = tpu.matmul %148, %134, %cst_52 {dimension_numbers = #tpu.dot_dimension_numbers<[1], [0], [0], [1], [0, 0, 1, 1], [], []>} : vector<8x8xf32>, vector<8x128xf32>, vector<8x128xf32> -> vector<8x128xf32>
    %150 = tpu.iota {dimensions = array<i32: 0>} : vector<8x512xi32>
    %cst_53 = arith.constant 0.000000e+00 : f32
    %151 = vector.broadcast %cst_53 : f32 to vector<8x512xf32>
    %152 = vector.extract_strided_slice %95 {offsets = [0, 0], sizes = [1, 128], strides = [1, 1]} : vector<8x128xf32> to vector<1x128xf32>
    %153 = vector.extract_strided_slice %95 {offsets = [1, 0], sizes = [1, 128], strides = [1, 1]} : vector<8x128xf32> to vector<1x128xf32>
    %154 = vector.extract_strided_slice %95 {offsets = [2, 0], sizes = [1, 128], strides = [1, 1]} : vector<8x128xf32> to vector<1x128xf32>
    %155 = vector.extract_strided_slice %95 {offsets = [3, 0], sizes = [1, 128], strides = [1, 1]} : vector<8x128xf32> to vector<1x128xf32>
    %156 = tpu.concatenate %152, %153, %154, %155 in 1 : vector<1x128xf32>, vector<1x128xf32>, vector<1x128xf32>, vector<1x128xf32> -> vector<1x512xf32>
    %c0_i32_54 = arith.constant 0 : i32
    %157 = vector.broadcast %c0_i32_54 : i32 to vector<8x512xi32>
    %158 = arith.cmpi eq, %150, %157 : vector<8x512xi32>
    %cst_55 = arith.constant 0.000000e+00 : f32
    %159 = vector.shape_cast %156 : vector<1x512xf32> to vector<1x512xf32>
    %160 = vector.broadcast %159 : vector<1x512xf32> to vector<8x512xf32>
    %161 = vector.broadcast %cst_55 : f32 to vector<8x512xf32>
    %162 = arith.select %158, %160, %161 : vector<8x512xi1>, vector<8x512xf32>
    %163 = arith.addf %151, %162 : vector<8x512xf32>
    %164 = vector.extract_strided_slice %113 {offsets = [0, 0], sizes = [1, 128], strides = [1, 1]} : vector<8x128xf32> to vector<1x128xf32>
    %165 = vector.extract_strided_slice %113 {offsets = [1, 0], sizes = [1, 128], strides = [1, 1]} : vector<8x128xf32> to vector<1x128xf32>
    %166 = vector.extract_strided_slice %113 {offsets = [2, 0], sizes = [1, 128], strides = [1, 1]} : vector<8x128xf32> to vector<1x128xf32>
    %167 = vector.extract_strided_slice %113 {offsets = [3, 0], sizes = [1, 128], strides = [1, 1]} : vector<8x128xf32> to vector<1x128xf32>
    %168 = tpu.concatenate %164, %165, %166, %167 in 1 : vector<1x128xf32>, vector<1x128xf32>, vector<1x128xf32>, vector<1x128xf32> -> vector<1x512xf32>
    %c1_i32_56 = arith.constant 1 : i32
    %169 = vector.broadcast %c1_i32_56 : i32 to vector<8x512xi32>
    %170 = arith.cmpi eq, %150, %169 : vector<8x512xi32>
    %cst_57 = arith.constant 0.000000e+00 : f32
    %171 = vector.shape_cast %168 : vector<1x512xf32> to vector<1x512xf32>
    %172 = vector.broadcast %171 : vector<1x512xf32> to vector<8x512xf32>
    %173 = vector.broadcast %cst_57 : f32 to vector<8x512xf32>
    %174 = arith.select %170, %172, %173 : vector<8x512xi1>, vector<8x512xf32>
    %175 = arith.addf %163, %174 : vector<8x512xf32>
    %176 = vector.extract_strided_slice %131 {offsets = [0, 0], sizes = [1, 128], strides = [1, 1]} : vector<8x128xf32> to vector<1x128xf32>
    %177 = vector.extract_strided_slice %131 {offsets = [1, 0], sizes = [1, 128], strides = [1, 1]} : vector<8x128xf32> to vector<1x128xf32>
    %178 = vector.extract_strided_slice %131 {offsets = [2, 0], sizes = [1, 128], strides = [1, 1]} : vector<8x128xf32> to vector<1x128xf32>
    %179 = vector.extract_strided_slice %131 {offsets = [3, 0], sizes = [1, 128], strides = [1, 1]} : vector<8x128xf32> to vector<1x128xf32>
    %180 = tpu.concatenate %176, %177, %178, %179 in 1 : vector<1x128xf32>, vector<1x128xf32>, vector<1x128xf32>, vector<1x128xf32> -> vector<1x512xf32>
    %c2_i32_58 = arith.constant 2 : i32
    %181 = vector.broadcast %c2_i32_58 : i32 to vector<8x512xi32>
    %182 = arith.cmpi eq, %150, %181 : vector<8x512xi32>
    %cst_59 = arith.constant 0.000000e+00 : f32
    %183 = vector.shape_cast %180 : vector<1x512xf32> to vector<1x512xf32>
    %184 = vector.broadcast %183 : vector<1x512xf32> to vector<8x512xf32>
    %185 = vector.broadcast %cst_59 : f32 to vector<8x512xf32>
    %186 = arith.select %182, %184, %185 : vector<8x512xi1>, vector<8x512xf32>
    %187 = arith.addf %175, %186 : vector<8x512xf32>
    %188 = vector.extract_strided_slice %149 {offsets = [0, 0], sizes = [1, 128], strides = [1, 1]} : vector<8x128xf32> to vector<1x128xf32>
    %189 = vector.extract_strided_slice %149 {offsets = [1, 0], sizes = [1, 128], strides = [1, 1]} : vector<8x128xf32> to vector<1x128xf32>
    %190 = vector.extract_strided_slice %149 {offsets = [2, 0], sizes = [1, 128], strides = [1, 1]} : vector<8x128xf32> to vector<1x128xf32>
    %191 = vector.extract_strided_slice %149 {offsets = [3, 0], sizes = [1, 128], strides = [1, 1]} : vector<8x128xf32> to vector<1x128xf32>
    %192 = tpu.concatenate %188, %189, %190, %191 in 1 : vector<1x128xf32>, vector<1x128xf32>, vector<1x128xf32>, vector<1x128xf32> -> vector<1x512xf32>
    %c3_i32_60 = arith.constant 3 : i32
    %193 = vector.broadcast %c3_i32_60 : i32 to vector<8x512xi32>
    %194 = arith.cmpi eq, %150, %193 : vector<8x512xi32>
    %cst_61 = arith.constant 0.000000e+00 : f32
    %195 = vector.shape_cast %192 : vector<1x512xf32> to vector<1x512xf32>
    %196 = vector.broadcast %195 : vector<1x512xf32> to vector<8x512xf32>
    %197 = vector.broadcast %cst_61 : f32 to vector<8x512xf32>
    %198 = arith.select %194, %196, %197 : vector<8x512xi1>, vector<8x512xf32>
    %199 = arith.addf %187, %198 : vector<8x512xf32>
    %c2_i32_62 = arith.constant 2 : i32
    %200 = tpu.memref_slice %arg18[%c2_i32_62] : memref<7x!tpu.dma_semaphore, #tpu.memory_space<semaphore_mem>> -> memref<1x!tpu.dma_semaphore, #tpu.memory_space<semaphore_mem>>
    %201 = tpu.memref_squeeze %200 : memref<1x!tpu.dma_semaphore, #tpu.memory_space<semaphore_mem>> -> memref<!tpu.dma_semaphore, #tpu.memory_space<semaphore_mem>>
    tpu.wait_dma2 semaphore(%201 : memref<!tpu.dma_semaphore, #tpu.memory_space<semaphore_mem>>) src(%arg4 : memref<512x384xbf16, #tpu.memory_space<any>>) dst(%arg13 : memref<512x384xbf16, #tpu.memory_space<vmem>>)
    %202 = arith.truncf %199 : vector<8x512xf32> to vector<8x512xbf16>
    %c0_63 = arith.constant 0 : index
    %c0_64 = arith.constant 0 : index
    %203 = vector.load %arg13[%c0_63, %c0_64] : memref<512x384xbf16, #tpu.memory_space<vmem>>, vector<512x384xbf16>
    %cst_65 = arith.constant dense<0.000000e+00> : vector<8x384xf32>
    %204 = tpu.matmul %202, %203, %cst_65 {dimension_numbers = #tpu.dot_dimension_numbers<[1], [0], [0], [1], [0, 0, 1, 1], [], []>} : vector<8x512xbf16>, vector<512x384xbf16>, vector<8x384xf32> -> vector<8x384xf32>
    %205 = arith.addf %204, %69 : vector<8x384xf32>
    %c3 = arith.constant 3 : index
    %c0_66 = arith.constant 0 : index
    %206 = vector.load %arg1[%c3, %c0_66] : memref<16x512xf32, #tpu.memory_space<vmem>>, vector<1x384xf32>
    %c4 = arith.constant 4 : index
    %c0_67 = arith.constant 0 : index
    %207 = vector.load %arg1[%c4, %c0_67] : memref<16x512xf32, #tpu.memory_space<vmem>>, vector<1x384xf32>
    %208 = tpu.iota {dimensions = array<i32: 1>} : vector<8x384xi32>
    %c330_i32 = arith.constant 330 : i32
    %209 = vector.broadcast %c330_i32 : i32 to vector<8x384xi32>
    %210 = arith.cmpi slt, %208, %209 : vector<8x384xi32>
    %211 = arith.extui %210 : vector<8x384xi1> to vector<8x384xi32>
    %212 = arith.sitofp %211 : vector<8x384xi32> to vector<8x384xf32>
    %213 = arith.mulf %205, %212 : vector<8x384xf32>
    %cst_68 = arith.constant dense<0.000000e+00> : vector<8xf32>
    %214 = vector.multi_reduction <add>, %213, %cst_68 [1] : vector<8x384xf32> to vector<8xf32>
    %215 = vector.shape_cast %214 : vector<8xf32> to vector<8x1xf32>
    %cst_69 = arith.constant 0.00303030293 : f32
    %216 = vector.broadcast %cst_69 : f32 to vector<8x1xf32>
    %217 = arith.mulf %215, %216 : vector<8x1xf32>
    %218 = vector.broadcast %217 : vector<8x1xf32> to vector<8x384xf32>
    %219 = arith.subf %213, %218 : vector<8x384xf32>
    %220 = arith.mulf %219, %212 : vector<8x384xf32>
    %221 = arith.mulf %220, %220 : vector<8x384xf32>
    %cst_70 = arith.constant dense<0.000000e+00> : vector<8xf32>
    %222 = vector.multi_reduction <add>, %221, %cst_70 [1] : vector<8x384xf32> to vector<8xf32>
    %223 = vector.shape_cast %222 : vector<8xf32> to vector<8x1xf32>
    %cst_71 = arith.constant 0.00303030293 : f32
    %224 = vector.broadcast %cst_71 : f32 to vector<8x1xf32>
    %225 = arith.mulf %223, %224 : vector<8x1xf32>
    %cst_72 = arith.constant 9.99999974E-6 : f32
    %226 = vector.broadcast %cst_72 : f32 to vector<8x1xf32>
    %227 = arith.addf %225, %226 : vector<8x1xf32>
    %228 = math.rsqrt %227 : vector<8x1xf32>
    %229 = vector.broadcast %228 : vector<8x1xf32> to vector<8x384xf32>
    %230 = arith.mulf %220, %229 : vector<8x384xf32>
    %231 = vector.broadcast %206 : vector<1x384xf32> to vector<8x384xf32>
    %232 = arith.mulf %230, %231 : vector<8x384xf32>
    %233 = vector.broadcast %207 : vector<1x384xf32> to vector<8x384xf32>
    %234 = arith.addf %232, %233 : vector<8x384xf32>
    %c3_i32_73 = arith.constant 3 : i32
    %235 = tpu.memref_slice %arg18[%c3_i32_73] : memref<7x!tpu.dma_semaphore, #tpu.memory_space<semaphore_mem>> -> memref<1x!tpu.dma_semaphore, #tpu.memory_space<semaphore_mem>>
    %236 = tpu.memref_squeeze %235 : memref<1x!tpu.dma_semaphore, #tpu.memory_space<semaphore_mem>> -> memref<!tpu.dma_semaphore, #tpu.memory_space<semaphore_mem>>
    tpu.wait_dma2 semaphore(%236 : memref<!tpu.dma_semaphore, #tpu.memory_space<semaphore_mem>>) src(%arg5 : memref<384x384xbf16, #tpu.memory_space<any>>) dst(%arg14 : memref<384x384xbf16, #tpu.memory_space<vmem>>)
    %237 = arith.truncf %234 : vector<8x384xf32> to vector<8x384xbf16>
    %c0_74 = arith.constant 0 : index
    %c0_75 = arith.constant 0 : index
    %238 = vector.load %arg14[%c0_74, %c0_75] : memref<384x384xbf16, #tpu.memory_space<vmem>>, vector<384x384xbf16>
    %cst_76 = arith.constant dense<0.000000e+00> : vector<8x384xf32>
    %239 = tpu.matmul %237, %238, %cst_76 {dimension_numbers = #tpu.dot_dimension_numbers<[1], [0], [0], [1], [0, 0, 1, 1], [], []>} : vector<8x384xbf16>, vector<384x384xbf16>, vector<8x384xf32> -> vector<8x384xf32>
    %c5 = arith.constant 5 : index
    %c0_77 = arith.constant 0 : index
    %240 = vector.load %arg1[%c5, %c0_77] : memref<16x512xf32, #tpu.memory_space<vmem>>, vector<1x384xf32>
    %241 = vector.broadcast %240 : vector<1x384xf32> to vector<8x384xf32>
    %242 = arith.addf %239, %241 : vector<8x384xf32>
    %243 = arith.addf %242, %234 : vector<8x384xf32>
    %c6 = arith.constant 6 : index
    %c0_78 = arith.constant 0 : index
    %244 = vector.load %arg1[%c6, %c0_78] : memref<16x512xf32, #tpu.memory_space<vmem>>, vector<1x384xf32>
    %c7 = arith.constant 7 : index
    %c0_79 = arith.constant 0 : index
    %245 = vector.load %arg1[%c7, %c0_79] : memref<16x512xf32, #tpu.memory_space<vmem>>, vector<1x384xf32>
    %246 = tpu.iota {dimensions = array<i32: 1>} : vector<8x384xi32>
    %c330_i32_80 = arith.constant 330 : i32
    %247 = vector.broadcast %c330_i32_80 : i32 to vector<8x384xi32>
    %248 = arith.cmpi slt, %246, %247 : vector<8x384xi32>
    %249 = arith.extui %248 : vector<8x384xi1> to vector<8x384xi32>
    %250 = arith.sitofp %249 : vector<8x384xi32> to vector<8x384xf32>
    %251 = arith.mulf %243, %250 : vector<8x384xf32>
    %cst_81 = arith.constant dense<0.000000e+00> : vector<8xf32>
    %252 = vector.multi_reduction <add>, %251, %cst_81 [1] : vector<8x384xf32> to vector<8xf32>
    %253 = vector.shape_cast %252 : vector<8xf32> to vector<8x1xf32>
    %cst_82 = arith.constant 0.00303030293 : f32
    %254 = vector.broadcast %cst_82 : f32 to vector<8x1xf32>
    %255 = arith.mulf %253, %254 : vector<8x1xf32>
    %256 = vector.broadcast %255 : vector<8x1xf32> to vector<8x384xf32>
    %257 = arith.subf %251, %256 : vector<8x384xf32>
    %258 = arith.mulf %257, %250 : vector<8x384xf32>
    %259 = arith.mulf %258, %258 : vector<8x384xf32>
    %cst_83 = arith.constant dense<0.000000e+00> : vector<8xf32>
    %260 = vector.multi_reduction <add>, %259, %cst_83 [1] : vector<8x384xf32> to vector<8xf32>
    %261 = vector.shape_cast %260 : vector<8xf32> to vector<8x1xf32>
    %cst_84 = arith.constant 0.00303030293 : f32
    %262 = vector.broadcast %cst_84 : f32 to vector<8x1xf32>
    %263 = arith.mulf %261, %262 : vector<8x1xf32>
    %cst_85 = arith.constant 9.99999974E-6 : f32
    %264 = vector.broadcast %cst_85 : f32 to vector<8x1xf32>
    %265 = arith.addf %263, %264 : vector<8x1xf32>
    %266 = math.rsqrt %265 : vector<8x1xf32>
    %267 = vector.broadcast %266 : vector<8x1xf32> to vector<8x384xf32>
    %268 = arith.mulf %258, %267 : vector<8x384xf32>
    %269 = vector.broadcast %244 : vector<1x384xf32> to vector<8x384xf32>
    %270 = arith.mulf %268, %269 : vector<8x384xf32>
    %271 = vector.broadcast %245 : vector<1x384xf32> to vector<8x384xf32>
    %272 = arith.addf %270, %271 : vector<8x384xf32>
    %c4_i32_86 = arith.constant 4 : i32
    %273 = tpu.memref_slice %arg18[%c4_i32_86] : memref<7x!tpu.dma_semaphore, #tpu.memory_space<semaphore_mem>> -> memref<1x!tpu.dma_semaphore, #tpu.memory_space<semaphore_mem>>
    %274 = tpu.memref_squeeze %273 : memref<1x!tpu.dma_semaphore, #tpu.memory_space<semaphore_mem>> -> memref<!tpu.dma_semaphore, #tpu.memory_space<semaphore_mem>>
    tpu.wait_dma2 semaphore(%274 : memref<!tpu.dma_semaphore, #tpu.memory_space<semaphore_mem>>) src(%arg6 : memref<384x512xbf16, #tpu.memory_space<any>>) dst(%arg15 : memref<384x512xbf16, #tpu.memory_space<vmem>>)
    %275 = arith.truncf %272 : vector<8x384xf32> to vector<8x384xbf16>
    %c0_87 = arith.constant 0 : index
    %c0_88 = arith.constant 0 : index
    %276 = vector.load %arg15[%c0_87, %c0_88] : memref<384x512xbf16, #tpu.memory_space<vmem>>, vector<384x512xbf16>
    %cst_89 = arith.constant dense<0.000000e+00> : vector<8x512xf32>
    %277 = tpu.matmul %275, %276, %cst_89 {dimension_numbers = #tpu.dot_dimension_numbers<[1], [0], [0], [1], [0, 0, 1, 1], [], []>} : vector<8x384xbf16>, vector<384x512xbf16>, vector<8x512xf32> -> vector<8x512xf32>
    %c8 = arith.constant 8 : index
    %c0_90 = arith.constant 0 : index
    %278 = vector.load %arg1[%c8, %c0_90] : memref<16x512xf32, #tpu.memory_space<vmem>>, vector<1x512xf32>
    %279 = vector.broadcast %278 : vector<1x512xf32> to vector<8x512xf32>
    %280 = arith.addf %277, %279 : vector<8x512xf32>
    %c0_91 = arith.constant 0 : index
    %c0_92 = arith.constant 0 : index
    %281 = vector.load %arg9[%c0_91, %c0_92] : memref<8x512xf32, #tpu.memory_space<vmem>>, vector<8x512xf32>
    tpu.vector_store %arg9[%c0_91, %c0_92], %280 {strides = array<i32>} : memref<8x512xf32, #tpu.memory_space<vmem>>, vector<8x512xf32>,
    %c5_i32_93 = arith.constant 5 : i32
    %282 = tpu.memref_slice %arg18[%c5_i32_93] : memref<7x!tpu.dma_semaphore, #tpu.memory_space<semaphore_mem>> -> memref<1x!tpu.dma_semaphore, #tpu.memory_space<semaphore_mem>>
    %283 = tpu.memref_squeeze %282 : memref<1x!tpu.dma_semaphore, #tpu.memory_space<semaphore_mem>> -> memref<!tpu.dma_semaphore, #tpu.memory_space<semaphore_mem>>
    tpu.wait_dma2 semaphore(%283 : memref<!tpu.dma_semaphore, #tpu.memory_space<semaphore_mem>>) src(%arg7 : memref<512x384xbf16, #tpu.memory_space<any>>) dst(%arg16 : memref<512x384xbf16, #tpu.memory_space<vmem>>)
    %284 = arith.truncf %280 : vector<8x512xf32> to vector<8x512xbf16>
    %c0_94 = arith.constant 0 : index
    %c0_95 = arith.constant 0 : index
    %285 = vector.load %arg16[%c0_94, %c0_95] : memref<512x384xbf16, #tpu.memory_space<vmem>>, vector<512x384xbf16>
    %cst_96 = arith.constant dense<0.000000e+00> : vector<8x384xf32>
    %286 = tpu.matmul %284, %285, %cst_96 {dimension_numbers = #tpu.dot_dimension_numbers<[1], [0], [0], [1], [0, 0, 1, 1], [], []>} : vector<8x512xbf16>, vector<512x384xbf16>, vector<8x384xf32> -> vector<8x384xf32>
    %c9 = arith.constant 9 : index
    %c0_97 = arith.constant 0 : index
    %287 = vector.load %arg1[%c9, %c0_97] : memref<16x512xf32, #tpu.memory_space<vmem>>, vector<1x384xf32>
    %288 = vector.broadcast %287 : vector<1x384xf32> to vector<8x384xf32>
    %289 = arith.addf %286, %288 : vector<8x384xf32>
    %cst_98 = arith.constant 5.000000e-01 : f32
    %290 = vector.broadcast %cst_98 : f32 to vector<8x384xf32>
    %291 = arith.mulf %289, %290 : vector<8x384xf32>
    %cst_99 = arith.constant 0.707106769 : f32
    %292 = vector.broadcast %cst_99 : f32 to vector<8x384xf32>
    %293 = arith.mulf %289, %292 : vector<8x384xf32>
    %cst_100 = arith.constant 0.000000e+00 : f32
    %294 = vector.broadcast %cst_100 : f32 to vector<8x384xf32>
    %295 = arith.cmpf oge, %293, %294 : vector<8x384xf32>
    %cst_101 = arith.constant 1.000000e+00 : f32
    %cst_102 = arith.constant -1.000000e+00 : f32
    %296 = vector.broadcast %cst_101 : f32 to vector<8x384xf32>
    %297 = vector.broadcast %cst_102 : f32 to vector<8x384xf32>
    %298 = arith.select %295, %296, %297 : vector<8x384xi1>, vector<8x384xf32>
    %299 = math.absf %293 : vector<8x384xf32>
    %cst_103 = arith.constant 0.327591091 : f32
    %300 = vector.broadcast %cst_103 : f32 to vector<8x384xf32>
    %301 = arith.mulf %300, %299 : vector<8x384xf32>
    %cst_104 = arith.constant 1.000000e+00 : f32
    %302 = vector.broadcast %cst_104 : f32 to vector<8x384xf32>
    %303 = arith.addf %302, %301 : vector<8x384xf32>
    %cst_105 = arith.constant 1.000000e+00 : f32
    %304 = vector.broadcast %cst_105 : f32 to vector<8x384xf32>
    %305 = arith.divf %304, %303 : vector<8x384xf32>
    %cst_106 = arith.constant 1.06140542 : f32
    %306 = vector.broadcast %cst_106 : f32 to vector<8x384xf32>
    %307 = arith.mulf %306, %305 : vector<8x384xf32>
    %cst_107 = arith.constant -1.45315206 : f32
    %308 = vector.broadcast %cst_107 : f32 to vector<8x384xf32>
    %309 = arith.addf %307, %308 : vector<8x384xf32>
    %310 = arith.mulf %309, %305 : vector<8x384xf32>
    %cst_108 = arith.constant 1.42141378 : f32
    %311 = vector.broadcast %cst_108 : f32 to vector<8x384xf32>
    %312 = arith.addf %310, %311 : vector<8x384xf32>
    %313 = arith.mulf %312, %305 : vector<8x384xf32>
    %cst_109 = arith.constant -0.284496725 : f32
    %314 = vector.broadcast %cst_109 : f32 to vector<8x384xf32>
    %315 = arith.addf %313, %314 : vector<8x384xf32>
    %316 = arith.mulf %315, %305 : vector<8x384xf32>
    %cst_110 = arith.constant 0.254829586 : f32
    %317 = vector.broadcast %cst_110 : f32 to vector<8x384xf32>
    %318 = arith.addf %316, %317 : vector<8x384xf32>
    %319 = arith.mulf %318, %305 : vector<8x384xf32>
    %cst_111 = arith.constant 0.000000e+00 : f32
    %320 = vector.broadcast %cst_111 : f32 to vector<8x384xf32>
    %321 = arith.subf %320, %299 : vector<8x384xf32>
    %322 = arith.mulf %321, %299 : vector<8x384xf32>
    %323 = math.exp %322 : vector<8x384xf32>
    %324 = arith.mulf %319, %323 : vector<8x384xf32>
    %cst_112 = arith.constant 1.000000e+00 : f32
    %325 = vector.broadcast %cst_112 : f32 to vector<8x384xf32>
    %326 = arith.subf %325, %324 : vector<8x384xf32>
    %327 = arith.mulf %298, %326 : vector<8x384xf32>
    %cst_113 = arith.constant 1.000000e+00 : f32
    %328 = vector.broadcast %cst_113 : f32 to vector<8x384xf32>
    %329 = arith.addf %328, %327 : vector<8x384xf32>
    %330 = arith.mulf %291, %329 : vector<8x384xf32>
    %c10 = arith.constant 10 : index
    %c0_114 = arith.constant 0 : index
    %331 = vector.load %arg1[%c10, %c0_114] : memref<16x512xf32, #tpu.memory_space<vmem>>, vector<1x384xf32>
    %332 = vector.broadcast %331 : vector<1x384xf32> to vector<8x384xf32>
    %333 = arith.mulf %330, %332 : vector<8x384xf32>
    %c11 = arith.constant 11 : index
    %c0_115 = arith.constant 0 : index
    %334 = vector.load %arg1[%c11, %c0_115] : memref<16x512xf32, #tpu.memory_space<vmem>>, vector<1x384xf32>
    %335 = vector.broadcast %334 : vector<1x384xf32> to vector<8x384xf32>
    %336 = arith.addf %333, %335 : vector<8x384xf32>
    %c6_i32_116 = arith.constant 6 : i32
    %337 = tpu.memref_slice %arg18[%c6_i32_116] : memref<7x!tpu.dma_semaphore, #tpu.memory_space<semaphore_mem>> -> memref<1x!tpu.dma_semaphore, #tpu.memory_space<semaphore_mem>>
    %338 = tpu.memref_squeeze %337 : memref<1x!tpu.dma_semaphore, #tpu.memory_space<semaphore_mem>> -> memref<!tpu.dma_semaphore, #tpu.memory_space<semaphore_mem>>
    tpu.wait_dma2 semaphore(%338 : memref<!tpu.dma_semaphore, #tpu.memory_space<semaphore_mem>>) src(%arg8 : memref<384x256xbf16, #tpu.memory_space<any>>) dst(%arg17 : memref<384x256xbf16, #tpu.memory_space<vmem>>)
    %339 = arith.truncf %336 : vector<8x384xf32> to vector<8x384xbf16>
    %c0_117 = arith.constant 0 : index
    %c0_118 = arith.constant 0 : index
    %340 = vector.load %arg17[%c0_117, %c0_118] : memref<384x256xbf16, #tpu.memory_space<vmem>>, vector<384x256xbf16>
    %cst_119 = arith.constant dense<0.000000e+00> : vector<8x256xf32>
    %341 = tpu.matmul %339, %340, %cst_119 {dimension_numbers = #tpu.dot_dimension_numbers<[1], [0], [0], [1], [0, 0, 1, 1], [], []>} : vector<8x384xbf16>, vector<384x256xbf16>, vector<8x256xf32> -> vector<8x256xf32>
    %c12 = arith.constant 12 : index
    %c0_120 = arith.constant 0 : index
    %342 = vector.load %arg1[%c12, %c0_120] : memref<16x512xf32, #tpu.memory_space<vmem>>, vector<1x256xf32>
    %343 = vector.broadcast %342 : vector<1x256xf32> to vector<8x256xf32>
    %344 = arith.addf %341, %343 : vector<8x256xf32>
    %c0_121 = arith.constant 0 : index
    %c0_122 = arith.constant 0 : index
    %345 = vector.load %arg10[%c0_121, %c0_122] : memref<8x256xf32, #tpu.memory_space<vmem>>, vector<8x256xf32>
    tpu.vector_store %arg10[%c0_121, %c0_122], %344 {strides = array<i32>} : memref<8x256xf32, #tpu.memory_space<vmem>>, vector<8x256xf32>,
    return
  }
}

</mosaic_0001>

<bundles_post_ra>
// kernel: _lambda_.1
= control target key start
LH: loop header
LB: loop body
LE: loop exit
PB: predicated region body
PF: predicated region fallthrough
CT: control target
= control target key end

     0   :  { %16 = vsyncpa [#allocation11], 0  ;;  %s9721_s13 = smov [#allocation10]   ;;  %s10210_s0 = inlined_call_operand.vmem [shape: f32[8,256], index: 0, kind: input, shape index: {}]   ;;  %s10211_s1 = inlined_call_operand.hbm [shape: f32[16,512], index: 1, kind: input, shape index: {}]   ;;  %s10212_s2 = inlined_call_operand.hbm [shape: bf16[256,384], index: 2, kind: input, shape index: {}]   ;;  %s10213_s3 = inlined_call_operand.hbm [shape: bf16[384,1536], index: 3, kind: input, shape index: {}]   ;;  %s10214_s4 = inlined_call_operand.hbm [shape: bf16[512,384], index: 4, kind: input, shape index: {}]   ;;  %s10215_s5 = inlined_call_operand.hbm [shape: bf16[384,384], index: 5, kind: input, shape index: {}]   ;;  %s10216_s6 = inlined_call_operand.hbm [shape: bf16[384,512], index: 6, kind: input, shape index: {}]   ;;  %s10217_s7 = inlined_call_operand.hbm [shape: bf16[512,384], index: 7, kind: input, shape index: {}]   ;;  %s10218_s8 = inlined_call_operand.hbm [shape: bf16[384,256], index: 8, kind: input, shape index: {}]   ;;  %s10219_s9 = inlined_call_operand.vmem [shape: f32[8,512], index: 9, kind: output, shape index: {0}]   ;;  %s10220_s10 = inlined_call_operand.vmem [shape: f32[8,256], index: 10, kind: output, shape index: {1}]  }
   0x1   :  { %s24_s14 = sshll.u32 %s9721_s13, 4  ;;  %s25_s14 = int_to_ptr.vmem [resolvable:$true] %s24_s14 }
   0x2   :  { %s9553_s15 = scalar_lea.vmem %s25_s14, 1024  ;;  %p9558_p1 = scmp.lt.s32.totalorder %s25_s14, %s25_s14 }
   0x3   :  { %p9554_p0 = scmp.ne.s32.totalorder %s25_s14, %s9553_s15  ;;  %p9559_p2 = scmp.lt.s32.totalorder %s9553_s15, %s9553_s15 }
   0x5   :  { %p9560_p3 = por %p9559_p2, %p9558_p1 }
   0x7   :  { %p9561_p4 = pnand %p9560_p3, %p9554_p0 }
   0x9   :  { %9564 = shalt.err (!%p9561_p4)
}
   0xa   :  { %s9722_s16 = smov 512   ;;  %s9723_s17 = smov 32  }
   0xb   :  { %30 = dma.hbm_to_vmem [thread:$0]  %s10211_s1, 1024, %s25_s14, [#allocation11], %s9722_s16, %s9722_s16, %s9723_s17  }
   0xc   :  { %9705 = dma.done.wait [#allocation11], 1024  }
   0xd   :  { %9706 = vsyncadd [#allocation11], 4294966272  ;;  %s9724_s20 = smov [#allocation2]   ;;  %s9725_s22 = smov [#allocation3]  }
   0xe   :  { %s42_s21 = sshll.u32 %s9724_s20, 4  ;;  %s54_s23 = sshll.u32 %s9725_s22, 4  ;;  %s43_s21 = int_to_ptr.vmem [resolvable:$true] %s42_s21  ;;  %s55_s23 = int_to_ptr.vmem [resolvable:$true] %s54_s23 }
   0xf   :  { %s9573_s24 = scalar_lea.vmem %s43_s21, 6144  ;;  %p9578_p6 = scmp.lt.s32.totalorder %s43_s21, %s43_s21 }
  0x10   :  { %p9574_p5 = scmp.ne.s32.totalorder %s43_s21, %s9573_s24  ;;  %p9579_p7 = scmp.lt.s32.totalorder %s9573_s24, %s9573_s24 }
  0x12   :  { %p9580_p8 = por %p9579_p7, %p9578_p6 }
  0x14   :  { %p9581_p9 = pnand %p9580_p8, %p9574_p5 }
  0x16   :  { %9584 = shalt.err (!%p9581_p9)  }
  0x17   :  { %45 = dma.hbm_to_vmem [thread:$0]  %s10212_s2, 6144, %s43_s21, [#allocation9] }
  0x18   :  { %s9593_s1 = scalar_lea.vmem %s55_s23, 36864  ;;  %p9598_p11 = scmp.lt.s32.totalorder %s55_s23, %s55_s23 }
  0x19   :  { %p9594_p10 = scmp.ne.s32.totalorder %s55_s23, %s9593_s1  ;;  %p9599_p12 = scmp.lt.s32.totalorder %s9593_s1, %s9593_s1 }
  0x1b   :  { %p9600_p13 = por %p9599_p12, %p9598_p11 }
  0x1d   :  { %p9601_p0 = pnand %p9600_p13, %p9594_p10 }
  0x1f   :  { %9604 = shalt.err (!%p9601_p0)  }
  0x20   :  { %57 = dma.hbm_to_vmem [thread:$0]  %s10213_s3, 36864, %s55_s23, [#allocation9 + $0x1]  ;;  %v9802_v0 = vld [vmem:[%s10210_s0] sm:$0xff]  ;;  %v119_v1 = vld [vmem:[%s10210_s0 + $0x8] sm:$0xff] }
  0x21   :  { %s9726_s29 = smov [#allocation4]   ;;  %s9727_s11 = smov [#allocation5]  }
  0x22   :  { %s66_s30 = sshll.u32 %s9726_s29, 4  ;;  %s78_s12 = sshll.u32 %s9727_s11, 4  ;;  %s67_s30 = int_to_ptr.vmem [resolvable:$true] %s66_s30  ;;  %s79_s12 = int_to_ptr.vmem [resolvable:$true] %s78_s12 }
  0x23   :  { %s9613_s16 = scalar_lea.vmem %s67_s30, 12288  ;;  %p9618_p2 = scmp.lt.s32.totalorder %s67_s30, %s67_s30 }
  0x24   :  { %p9614_p1 = scmp.ne.s32.totalorder %s67_s30, %s9613_s16  ;;  %p9619_p3 = scmp.lt.s32.totalorder %s9613_s16, %s9613_s16 }
  0x26   :  { %p9620_p4 = por %p9619_p3, %p9618_p2 }
  0x28   :  { %p9621_p5 = pnand %p9620_p4, %p9614_p1 }
  0x2a   :  { %9624 = shalt.err (!%p9621_p5)  }
  0x2b   :  { %69 = dma.hbm_to_vmem [thread:$0]  %s10214_s4, 12288, %s67_s30, [#allocation9 + $0x2] }
  0x2c   :  { %s9633_s18 = scalar_lea.vmem %s79_s12, 9216  ;;  %p9638_p7 = scmp.lt.s32.totalorder %s79_s12, %s79_s12 }
  0x2d   :  { %p9634_p6 = scmp.ne.s32.totalorder %s79_s12, %s9633_s18  ;;  %p9639_p8 = scmp.lt.s32.totalorder %s9633_s18, %s9633_s18 }
  0x2f   :  { %p9640_p9 = por %p9639_p8, %p9638_p7 }
  0x31   :  { %p9641_p10 = pnand %p9640_p9, %p9634_p6 }
  0x33   :  { %9644 = shalt.err (!%p9641_p10)  }
  0x34   :  { %81 = dma.hbm_to_vmem [thread:$0]  %s10215_s5, 9216, %s79_s12, [#allocation9 + $0x3] }
  0x35   :  { %s9728_s20 = smov [#allocation6]   ;;  %s9729_s22 = smov [#allocation7]  }
  0x36   :  { %s90_s21 = sshll.u32 %s9728_s20, 4  ;;  %s102_s23 = sshll.u32 %s9729_s22, 4  ;;  %s91_s21 = int_to_ptr.vmem [resolvable:$true] %s90_s21  ;;  %s103_s23 = int_to_ptr.vmem [resolvable:$true] %s102_s23 }
  0x37   :  { %s9653_s24 = scalar_lea.vmem %s91_s21, 12288  ;;  %p9658_p12 = scmp.lt.s32.totalorder %s91_s21, %s91_s21 }
  0x38   :  { %p9654_p11 = scmp.ne.s32.totalorder %s91_s21, %s9653_s24  ;;  %p9659_p13 = scmp.lt.s32.totalorder %s9653_s24, %s9653_s24 }
  0x3a   :  { %p9660_p0 = por %p9659_p13, %p9658_p12 }
  0x3c   :  { %p9661_p1 = pnand %p9660_p0, %p9654_p11 }
  0x3e   :  { %9664 = shalt.err (!%p9661_p1)  }
  0x3f   :  { %93 = dma.hbm_to_vmem [thread:$0]  %s10216_s6, 12288, %s91_s21, [#allocation9 + $0x4] }
  0x40   :  { %s9673_s26 = scalar_lea.vmem %s103_s23, 12288  ;;  %p9678_p3 = scmp.lt.s32.totalorder %s103_s23, %s103_s23 }
  0x41   :  { %p9674_p2 = scmp.ne.s32.totalorder %s103_s23, %s9673_s26  ;;  %p9679_p4 = scmp.lt.s32.totalorder %s9673_s26, %s9673_s26 }
  0x43   :  { %p9680_p5 = por %p9679_p4, %p9678_p3 }
  0x45   :  { %p9681_p6 = pnand %p9680_p5, %p9674_p2 }
  0x47   :  { %9684 = shalt.err (!%p9681_p6)  }
  0x48   :  { %105 = dma.hbm_to_vmem [thread:$0]  %s10217_s7, 12288, %s103_s23, [#allocation9 + $0x5] }
  0x49   :  { %s9730_s27 = smov [#allocation8]  }
  0x4a   :  { %s114_s28 = sshll.u32 %s9730_s27, 4  ;;  %s115_s28 = int_to_ptr.vmem [resolvable:$true] %s114_s28 }
  0x4b   :  { %s9693_s29 = scalar_lea.vmem %s115_s28, 6144  ;;  %p9698_p8 = scmp.lt.s32.totalorder %s115_s28, %s115_s28 }
  0x4c   :  { %p9694_p7 = scmp.ne.s32.totalorder %s115_s28, %s9693_s29  ;;  %p9699_p9 = scmp.lt.s32.totalorder %s9693_s29, %s9693_s29 }
  0x4e   :  { %p9700_p10 = por %p9699_p9, %p9698_p8 }
  0x50   :  { %p9701_p11 = pnand %p9700_p10, %p9694_p7 }
  0x52   :  { %9704 = shalt.err (!%p9701_p11)  }
  0x53   :  { %117 = dma.hbm_to_vmem [thread:$0]  %s10218_s8, 6144, %s115_s28, [#allocation9 + $0x6] }
  0x54   :  { %9707 = dma.done.wait [#allocation9], 6144 }
  0x55   :  { %9708 = vsyncadd [#allocation9], 4294961152  ;;  %v125_v2 = vpack.c.bf16 %v119_v1, %v119_v1  ;;  %v8437_v3 = vld [vmem:[#allocation2 + $0xac] ss:$12 sps:$4 sm:$0xff]   ;;  %v8439_v4 = vld [vmem:[#allocation2 + $0x170] ss:$12 sps:$4 sm:$0xff]   ;;  %v124_v36 = vpack.c.bf16 %v9802_v0, %v9802_v0  ;;  %v192_v52 = vlaneseq }
  0x56   :  { %463 = vmatprep.subr.bf16.mxu0 %v8437_v3  ;;  %v8440_v5 = vld [vmem:[#allocation2 + $0xa8] ss:$12 sps:$4 sm:$0xff]   ;;  %8206 = vmatprep.subr.bf16.mxu1 %v8439_v4  ;;  %v8441_v6 = vld [vmem:[#allocation2 + $0xb0] ss:$12 sps:$4 sm:$0xff]   ;;  %v8444_v8 = vld [vmem:[#allocation2 + $0x158] ss:$12 sps:$4 sm:$0xff]  }
  0x57   :  { %536 = vmatprep.mubr.bf16.mxu1 %v125_v2  ;;  %495 = vmatprep.mubr.bf16.mxu0 %v125_v2  ;;  %v8442_v7 = vld [vmem:[#allocation2 + $0x94] ss:$12 sps:$4 sm:$0xff]   ;;  %v8445_v9 = vld [vmem:[#allocation2 + $0x90] ss:$12 sps:$4 sm:$0xff]   ;;  %v8446_v10 = vld [vmem:[#allocation2 + $0x98] ss:$12 sps:$4 sm:$0xff]  }
  0x58   :  { %464 = vmatpush1.bf16.msra.mxu0 %v8440_v5  ;;  %8207 = vmatpush3.bf16.msra.mxu1 %v8441_v6  ;;  %v8447_v11 = vld [vmem:[#allocation2 + $0x7c] ss:$12 sps:$4 sm:$0xff]   ;;  %v8449_v12 = vld [vmem:[#allocation2 + $0x140] ss:$12 sps:$4 sm:$0xff]   ;;  %v8450_v13 = vld [vmem:[#allocation2 + $0x78] ss:$12 sps:$4 sm:$0xff]  }
  0x59   :  { %465 = vmatprep.subr.bf16.mxu0 %v8442_v7  ;;  %8208 = vmatprep.subr.bf16.mxu1 %v8444_v8  ;;  %v8451_v14 = vld [vmem:[#allocation2 + $0x80] ss:$12 sps:$4 sm:$0xff]   ;;  %v8452_v15 = vld [vmem:[#allocation2 + $0x64] ss:$12 sps:$4 sm:$0xff]   ;;  %v8454_v16 = vld [vmem:[#allocation2 + $0x128] ss:$12 sps:$4 sm:$0xff]  }
  0x5a   :  { %v8455_v17 = vld [vmem:[#allocation2 + $0x60] ss:$12 sps:$4 sm:$0xff]   ;;  %v8456_v18 = vld [vmem:[#allocation2 + $0x68] ss:$12 sps:$4 sm:$0xff]   ;;  %v8459_v20 = vld [vmem:[#allocation2 + $0x110] ss:$12 sps:$4 sm:$0xff]  }
  0x5b   :  { %v8457_v19 = vld [vmem:[#allocation2 + $0x4c] ss:$12 sps:$4 sm:$0xff]   ;;  %v8460_v21 = vld [vmem:[#allocation2 + $0x48] ss:$12 sps:$4 sm:$0xff]   ;;  %v8461_v22 = vld [vmem:[#allocation2 + $0x50] ss:$12 sps:$4 sm:$0xff]  }
  0x5c   :  { %466 = vmatpush1.bf16.msra.mxu0 %v8445_v9  ;;  %8209 = vmatpush3.bf16.msra.mxu1 %v8446_v10  ;;  %v8462_v23 = vld [vmem:[#allocation2 + $0x34] ss:$12 sps:$4 sm:$0xff]   ;;  %v8464_v24 = vld [vmem:[#allocation2 + $0xf8] ss:$12 sps:$4 sm:$0xff]   ;;  %v8465_v25 = vld [vmem:[#allocation2 + $0x30] ss:$12 sps:$4 sm:$0xff]  }
  0x5d   :  { %467 = vmatprep.subr.bf16.mxu0 %v8447_v11  ;;  %8210 = vmatprep.subr.bf16.mxu1 %v8449_v12  ;;  %v8466_v26 = vld [vmem:[#allocation2 + $0x38] ss:$12 sps:$4 sm:$0xff]   ;;  %v8467_v27 = vld [vmem:[#allocation2 + $0x1c] ss:$12 sps:$4 sm:$0xff]   ;;  %v8469_v28 = vld [vmem:[#allocation2 + $0xe0] ss:$12 sps:$4 sm:$0xff]  }
  0x5e   :  { %v8470_v29 = vld [vmem:[#allocation2 + $0x18] ss:$12 sps:$4 sm:$0xff]   ;;  %v8471_v30 = vld [vmem:[#allocation2 + $0x20] ss:$12 sps:$4 sm:$0xff]   ;;  %v8474_v32 = vld [vmem:[#allocation2 + $0xc8] ss:$12 sps:$4 sm:$0xff]  }
  0x5f   :  { %v8472_v31 = vld [vmem:[#allocation2 + $0x4] ss:$12 sps:$4 sm:$0xff]   ;;  %v8475_v33 = vld [vmem:[#allocation2] ss:$12 sps:$4 sm:$0xff]   ;;  %v8476_v34 = vld [vmem:[#allocation2 + $0x8] ss:$12 sps:$4 sm:$0xff]  }
  0x60   :  { %468 = vmatpush1.bf16.msra.mxu0 %v8450_v13  ;;  %8211 = vmatpush3.bf16.msra.mxu1 %v8451_v14  ;;  %v8477_v35 = vld [vmem:[#allocation2 + $0x16c] ss:$12 sps:$4 sm:$0xff]   ;;  %v8479_v37 = vld [vmem:[#allocation2 + $0x168] ss:$12 sps:$4 sm:$0xff]   ;;  %v8482_v39 = vld [vmem:[#allocation2 + $0x150] ss:$12 sps:$4 sm:$0xff]  }
  0x61   :  { %469 = vmatprep.subr.bf16.mxu0 %v8452_v15  ;;  %8212 = vmatprep.subr.bf16.mxu1 %v8454_v16  ;;  %v8480_v38 = vld [vmem:[#allocation2 + $0x154] ss:$12 sps:$4 sm:$0xff]   ;;  %v8483_v40 = vld [vmem:[#allocation2 + $0x13c] ss:$12 sps:$4 sm:$0xff]   ;;  %v8485_v41 = vld [vmem:[#allocation2 + $0x138] ss:$12 sps:$4 sm:$0xff]  }
  0x62   :  { %v8486_v42 = vld [vmem:[#allocation2 + $0x124] ss:$12 sps:$4 sm:$0xff]   ;;  %v8488_v43 = vld [vmem:[#allocation2 + $0x120] ss:$12 sps:$4 sm:$0xff]   ;;  %v8491_v45 = vld [vmem:[#allocation2 + $0x108] ss:$12 sps:$4 sm:$0xff]  }
  0x63   :  { %v8489_v44 = vld [vmem:[#allocation2 + $0x10c] ss:$12 sps:$4 sm:$0xff]   ;;  %v8492_v46 = vld [vmem:[#allocation2 + $0xf4] ss:$12 sps:$4 sm:$0xff]   ;;  %v8494_v47 = vld [vmem:[#allocation2 + $0xf0] ss:$12 sps:$4 sm:$0xff]  }
  0x64   :  { %470 = vmatpush1.bf16.msra.mxu0 %v8455_v17  ;;  %8213 = vmatpush3.bf16.msra.mxu1 %v8456_v18  ;;  %v8495_v48 = vld [vmem:[#allocation2 + $0xdc] ss:$12 sps:$4 sm:$0xff]   ;;  %v8497_v49 = vld [vmem:[#allocation2 + $0xd8] ss:$12 sps:$4 sm:$0xff]   ;;  %v8500_v51 = vld [vmem:[#allocation2 + $0xc0] ss:$12 sps:$4 sm:$0xff]  }
  0x65   :  { %471 = vmatprep.subr.bf16.mxu0 %v8457_v19  ;;  %8214 = vmatprep.subr.bf16.mxu1 %v8459_v20  ;;  %v8498_v50 = vld [vmem:[#allocation2 + $0xc4] ss:$12 sps:$4 sm:$0xff]   ;;  %v9825_v53 = vshrl.u32 %v192_v52, 7 }
  0x66   :  { %v190_v55 = vld [vmem:[#allocation10] ss:$8 sm:$0x7] }
  0x67   :  { %v9828_v54 = vsub.s32 2, %v9825_v53  ;;  %v9832_v5 = vsub.s32 0, %v9825_v53  ;;  %v9835_v6 = vsub.s32 1, %v9825_v53 }
  0x68   :  { %472 = vmatpush1.bf16.msra.mxu0 %v8460_v21  ;;  %8215 = vmatpush3.bf16.msra.mxu1 %v8461_v22 }
  0x69   :  { %473 = vmatprep.subr.bf16.mxu0 %v8462_v23  ;;  %8216 = vmatprep.subr.bf16.mxu1 %v8464_v24  ;;  %v203_v57 = vrot.slane %v190_v55, %v9828_v54  ;;  %v195_v9 = vrot.slane %v190_v55, %v9832_v5  ;;  %v199_v11 = vrot.slane %v190_v55, %v9835_v6 }
  0x6c   :  { %474 = vmatpush1.bf16.msra.mxu0 %v8465_v25  ;;  %8217 = vmatpush3.bf16.msra.mxu1 %v8466_v26 }
  0x6d   :  { %475 = vmatprep.subr.bf16.mxu0 %v8467_v27  ;;  %8218 = vmatprep.subr.bf16.mxu1 %v8469_v28 }
  0x70   :  { %476 = vmatpush1.bf16.msra.mxu0 %v8470_v29  ;;  %8219 = vmatpush3.bf16.msra.mxu1 %v8471_v30 }
  0x71   :  { %477 = vmatprep.subr.bf16.mxu0 %v8472_v31  ;;  %8220 = vmatprep.subr.bf16.mxu1 %v8474_v32 }
  0x74   :  { %478 = vmatpush1.bf16.msra.mxu0 %v8475_v33  ;;  %8221 = vmatpush3.bf16.msra.mxu1 %v8476_v34 }
  0x75   :  { %479 = vmatprep.subr.bf16.mxu0 %v8477_v35 }
  0x77   :  { %537 = vmatmul.mubr.bf16.vlgmr.msra.gmra.mxu1 %v124_v36 }
  0x78   :  { %480 = vmatpush2.bf16.msra.mxu0 %v8479_v37 }
  0x79   :  { %481 = vmatprep.subr.bf16.mxu0 %v8480_v38  ;;  %v9731_v38 = vmov -1.0  }
  0x7c   :  { %482 = vmatpush2.bf16.msra.mxu0 %v8482_v39 }
  0x7d   :  { %483 = vmatprep.subr.bf16.mxu0 %v8483_v40  ;;  %v626_v40 = vld [vmem:[#allocation10 + $0x1] ss:$8 sm:$0x7] }
  0x80   :  { %484 = vmatpush2.bf16.msra.mxu0 %v8485_v41 }
  0x81   :  { %485 = vmatprep.subr.bf16.mxu0 %v8486_v42 }
  0x84   :  { %486 = vmatpush2.bf16.msra.mxu0 %v8488_v43  ;;  %v647_v43 = vld [vmem:[#allocation10 + $0x2] ss:$8 sm:$0x7] }
  0x85   :  { %487 = vmatprep.subr.bf16.mxu0 %v8489_v44 }
  0x88   :  { %488 = vmatpush2.bf16.msra.mxu0 %v8491_v45 }
  0x89   :  { %489 = vmatprep.subr.bf16.mxu0 %v8492_v46 }
  0x8c   :  { %490 = vmatpush2.bf16.msra.mxu0 %v8494_v47  ;;  %v639_v47 = vrot.slane %v626_v40, %v9828_v54 }
  0x8d   :  { %491 = vmatprep.subr.bf16.mxu0 %v8495_v48 }
  0x90   :  { %492 = vmatpush2.bf16.msra.mxu0 %v8497_v49 }
  0x91   :  { %493 = vmatprep.subr.bf16.mxu0 %v8498_v50  ;;  %v660_v50 = vrot.slane %v647_v43, %v9828_v54 }
  0x94   :  { %494 = vmatpush2.bf16.msra.mxu0 %v8500_v51 }
  0x97   :  { %496 = vmatmul.mubr.bf16.vlgmr.msra.gmra.mxu0 %v124_v36 }
 0x137   :  { %v8222_v56 = vpop.f32.mrf.mxu1 }
 0x139   :  { %v8223_v58 = vpop.f32.mrf.mxu1 }
 0x13a   :  { %v8224_v59 = vadd.f32 %v8223_v58, %v8222_v56 }
 0x13b   :  { %v8225_v60 = vpop.f32.mrf.mxu1 }
 0x13c   :  { %v539_v61 = vadd.f32 %v8224_v59, %v203_v57 }
 0x13d   :  { %v8226_v62 = vpop.f32.mrf.mxu1 }
 0x13e   :  { %v549_v63 = vmul.f32 0.70710677, %v539_v61  ;;  %v546_v45 = vmul.f32 0.5, %v539_v61 }
 0x140   :  { %v558_v0 = vand.u32 2147483647, %v549_v63  ;;  %vm552_vm0 = vcmp.ge.f32.partialorder %v549_v63, 0.0 }
 0x141   :  { %v555_v39 = vsel %vm552_vm0, 1.0, %v9731_v38 }
 0x142   :  { %v561_v1 = vmul.f32 0.3275911, %v558_v0  ;;  %v600_v3 = vsub.f32 0.0, %v558_v0 }
 0x144   :  { %v564_v2 = vadd.f32 1.0, %v561_v1  ;;  %v603_v4 = vmul.f32 %v600_v3, %v558_v0 }
 0x146   :  { %8501 = vrcp.f32 %v564_v2  ;;  %v608_v7 = vmul.f32 1.442695, %v603_v4 }
 0x148   :  { %8503 = vpow2.f32 %v608_v7 }
 0x153   :  { %v8502_v8 = vpop.eup %8501 }
 0x154   :  { %v573_v10 = vmul.f32 1.0614054, %v8502_v8 }
 0x155   :  { %v8504_v33 = vpop.eup %8503 }
 0x156   :  { %v576_v12 = vadd.f32 -1.4531521, %v573_v10 }
 0x157   :  { %v497_v13 = vpop.f32.mrf.mxu0 }
 0x158   :  { %v9839_v14 = vadd.f32 %v497_v13, %v195_v9  ;;  %v579_v15 = vmul.f32 %v8502_v8, %v576_v12 }
 0x159   :  { %v499_v16 = vpop.f32.mrf.mxu0 }
 0x15a   :  { %v9842_v17 = vmul.f32 0.70710677, %v9839_v14  ;;  %v9844_v18 = vadd.f32 %v499_v16, %v199_v11  ;;  %v582_v19 = vadd.f32 1.4214138, %v579_v15 }
 0x15b   :  { %v501_v20 = vpop.f32.mrf.mxu0 }
 0x15c   :  { %v556_v21 = vand.u32 2147483647, %v9842_v17  ;;  %v9848_v22 = vmul.f32 0.70710677, %v9844_v18  ;;  %v585_v23 = vmul.f32 %v8502_v8, %v582_v19  ;;  %vm550_vm1 = vcmp.ge.f32.partialorder %v9842_v17, 0.0 }
 0x15d   :  { %v502_v24 = vpop.f32.mrf.mxu0 }
 0x15e   :  { %v559_v25 = vmul.f32 0.3275911, %v556_v21  ;;  %v557_v26 = vand.u32 2147483647, %v9848_v22  ;;  %v588_v27 = vadd.f32 -0.28449672, %v585_v23 }
 0x15f   :  { %v598_v36 = vsub.f32 0.0, %v556_v21  ;;  %v553_v24 = vsel %vm550_vm1, 1.0, %v9731_v38  ;;  %vm551_vm2 = vcmp.ge.f32.partialorder %v9848_v22, 0.0 }
 0x160   :  { %v562_v28 = vadd.f32 1.0, %v559_v25  ;;  %v560_v29 = vmul.f32 0.3275911, %v557_v26  ;;  %v591_v30 = vmul.f32 %v8502_v8, %v588_v27  ;;  %v599_v42 = vsub.f32 0.0, %v557_v26 }
 0x161   :  { %v601_v44 = vmul.f32 %v598_v36, %v556_v21  ;;  %v635_v36 = vrot.slane %v626_v40, %v9835_v6 }
 0x162   :  { %8505 = vrcp.f32 %v562_v28  ;;  %v563_v31 = vadd.f32 1.0, %v560_v29  ;;  %v594_v32 = vadd.f32 0.2548296, %v591_v30  ;;  %v602_v51 = vmul.f32 %v599_v42, %v557_v26 }
 0x163   :  { %v604_v56 = vmul.f32 1.442695, %v601_v44  ;;  %v544_v28 = vmul.f32 0.5, %v9839_v14  ;;  %v631_v30 = vrot.slane %v626_v40, %v9832_v5 }
 0x164   :  { %v597_v34 = vmul.f32 %v8502_v8, %v594_v32  ;;  %8507 = vrcp.f32 %v563_v31  ;;  %v606_v63 = vmul.f32 1.442695, %v602_v51  ;;  %v554_v31 = vsel %vm551_vm2, 1.0, %v9731_v38 }
 0x165   :  { %8509 = vpow2.f32 %v604_v56 }
 0x166   :  { %v612_v35 = vmul.f32 %v8504_v33, %v597_v34  ;;  %8511 = vpow2.f32 %v606_v63  ;;  %v652_v33 = vrot.slane %v647_v43, %v9832_v5  ;;  %v545_v34 = vmul.f32 0.5, %v9844_v18 }
 0x168   :  { %v615_v37 = vsub.f32 1.0, %v612_v35 }
 0x16a   :  { %v618_v41 = vmul.f32 %v615_v37, %v555_v39  ;;  %v656_v39 = vrot.slane %v647_v43, %v9835_v6 }
 0x16c   :  { %v621_v46 = vadd.f32 1.0, %v618_v41 }
 0x16e   :  { %v624_v49 = vmul.f32 %v621_v46, %v546_v45 }
 0x16f   :  { %v8506_v48 = vpop.eup %8505 }
 0x170   :  { %v571_v55 = vmul.f32 1.0614054, %v8506_v48  ;;  %v645_v57 = vmul.f32 %v639_v47, %v624_v49 }
 0x171   :  { %v8508_v58 = vpop.eup %8507 }
 0x172   :  { %v574_v59 = vadd.f32 -1.4531521, %v571_v55  ;;  %v9854_v60 = vadd.f32 %v660_v50, %v645_v57  ;;  %v572_v62 = vmul.f32 1.0614054, %v8508_v58  ;;  %v8510_v15 = vpop.eup %8509 }
 0x173   :  { %v8512_v21 = vpop.eup %8511 }
 0x174   :  { %v577_v0 = vmul.f32 %v8506_v48, %v574_v59  ;;  %v575_v61 = vadd.f32 -1.4531521, %v572_v62 }
 0x176   :  { %v580_v1 = vadd.f32 1.4214138, %v577_v0  ;;  %v578_v2 = vmul.f32 %v8508_v58, %v575_v61 }
 0x178   :  { %v583_v3 = vmul.f32 %v8506_v48, %v580_v1  ;;  %v581_v4 = vadd.f32 1.4214138, %v578_v2 }
 0x17a   :  { %v586_v7 = vadd.f32 -0.28449672, %v583_v3  ;;  %v584_v8 = vmul.f32 %v8508_v58, %v581_v4 }
 0x17c   :  { %v589_v9 = vmul.f32 %v8506_v48, %v586_v7  ;;  %v587_v10 = vadd.f32 -0.28449672, %v584_v8 }
 0x17e   :  { %v592_v11 = vadd.f32 0.2548296, %v589_v9  ;;  %v590_v12 = vmul.f32 %v8508_v58, %v587_v10 }
 0x180   :  { %v595_v13 = vmul.f32 %v8506_v48, %v592_v11  ;;  %v593_v16 = vadd.f32 0.2548296, %v590_v12 }
 0x182   :  { %v610_v19 = vmul.f32 %v8510_v15, %v595_v13  ;;  %v596_v20 = vmul.f32 %v8508_v58, %v593_v16 }
 0x184   :  { %v613_v23 = vsub.f32 1.0, %v610_v19  ;;  %v611_v25 = vmul.f32 %v8512_v21, %v596_v20 }
 0x186   :  { %v616_v26 = vmul.f32 %v613_v23, %v553_v24  ;;  %v614_v27 = vsub.f32 1.0, %v611_v25 }
 0x188   :  { %v619_v29 = vadd.f32 1.0, %v616_v26  ;;  %v617_v32 = vmul.f32 %v614_v27, %v554_v31 }
 0x18a   :  { %v622_v17 = vmul.f32 %v619_v29, %v544_v28  ;;  %v620_v35 = vadd.f32 1.0, %v617_v32 }
 0x18c   :  { %v643_v22 = vmul.f32 %v631_v30, %v622_v17  ;;  %v623_v37 = vmul.f32 %v620_v35, %v545_v34 }
 0x18e   :  { %v9866_v41 = vadd.f32 %v652_v33, %v643_v22  ;;  %v644_v14 = vmul.f32 %v635_v36, %v623_v37 }
 0x190   :  { %v9868_v42 = vadd.f32 %v656_v39, %v644_v14 }
 0x191   :  { %9709 = dma.done.wait [#allocation9 + $0x1], 36864 }
 0x192   :  { %9710 = vsyncadd [#allocation9 + $0x1], 4294930432  ;;  %v9872_v44 = vpack.c.bf16 %v9868_v42, %v9868_v42  ;;  %v9732_v45 = vmov 0   ;;  %v8513_v18 = vld [vmem:[#allocation3 + $0x2a4] ss:$48 sps:$4 sm:$0xff]   ;;  %v9878_v25 = vpack.c.bf16 %v9854_v60, %v9854_v60  ;;  %vm9734_vm3 = vmmov 0  }
 0x193   :  { %2475 = vmatprep.mubr.bf16.mxu0 %v9732_v45  ;;  %v8515_v40 = vld [vmem:[#allocation3 + $0x8a4] ss:$48 sps:$4 sm:$0xff]   ;;  %2402 = vmatprep.subr.bf16.mxu1 %v8513_v18  ;;  %v8517_v43 = vld [vmem:[#allocation3 + $0x2a0] ss:$48 sps:$4 sm:$0xff]   ;;  %v8565_v21 = vld [vmem:[#allocation3 + $0x2ac] ss:$48 sps:$4 sm:$0xff]  }
 0x194   :  { %2434 = vmatprep.mubr.bf16.mxu1 %v9872_v44  ;;  %v8518_v46 = vld [vmem:[#allocation3 + $0x8a0] ss:$48 sps:$4 sm:$0xff]   ;;  %2443 = vmatprep.subr.bf16.mxu0 %v8515_v40  ;;  %v8519_v47 = vld [vmem:[#allocation3 + $0x244] ss:$48 sps:$4 sm:$0xff]   ;;  %v8563_v23 = vld [vmem:[#allocation3 + $0x2a8] ss:$48 sps:$4 sm:$0xff]  }
 0x195   :  { %2403 = vmatpush1.bf16.msra.mxu1 %v8517_v43  ;;  %2444 = vmatpush1.bf16.msra.mxu0 %v8518_v46  ;;  %v8521_v48 = vld [vmem:[#allocation3 + $0x844] ss:$48 sps:$4 sm:$0xff]   ;;  %v8523_v49 = vld [vmem:[#allocation3 + $0x240] ss:$48 sps:$4 sm:$0xff]   ;;  %v8571_v27 = vld [vmem:[#allocation3 + $0x24c] ss:$48 sps:$4 sm:$0xff]  }
 0x196   :  { %2404 = vmatprep.subr.bf16.mxu1 %v8519_v47  ;;  %v8524_v50 = vld [vmem:[#allocation3 + $0x840] ss:$48 sps:$4 sm:$0xff]   ;;  %2445 = vmatprep.subr.bf16.mxu0 %v8521_v48  ;;  %v8525_v51 = vld [vmem:[#allocation3 + $0x1e4] ss:$48 sps:$4 sm:$0xff]   ;;  %v8569_v28 = vld [vmem:[#allocation3 + $0x248] ss:$48 sps:$4 sm:$0xff]  }
 0x197   :  { %v8527_v55 = vld [vmem:[#allocation3 + $0x7e4] ss:$48 sps:$4 sm:$0xff]   ;;  %v8529_v56 = vld [vmem:[#allocation3 + $0x1e0] ss:$48 sps:$4 sm:$0xff]   ;;  %v8577_v31 = vld [vmem:[#allocation3 + $0x1ec] ss:$48 sps:$4 sm:$0xff]  }
 0x198   :  { %v8530_v57 = vld [vmem:[#allocation3 + $0x7e0] ss:$48 sps:$4 sm:$0xff]   ;;  %v8531_v58 = vld [vmem:[#allocation3 + $0x184] ss:$48 sps:$4 sm:$0xff]   ;;  %v8575_v32 = vld [vmem:[#allocation3 + $0x1e8] ss:$48 sps:$4 sm:$0xff]  }
 0x199   :  { %2405 = vmatpush1.bf16.msra.mxu1 %v8523_v49  ;;  %2446 = vmatpush1.bf16.msra.mxu0 %v8524_v50  ;;  %v8533_v59 = vld [vmem:[#allocation3 + $0x784] ss:$48 sps:$4 sm:$0xff]   ;;  %v8535_v62 = vld [vmem:[#allocation3 + $0x180] ss:$48 sps:$4 sm:$0xff]   ;;  %v8583_v34 = vld [vmem:[#allocation3 + $0x18c] ss:$48 sps:$4 sm:$0xff]  }
 0x19a   :  { %2406 = vmatprep.subr.bf16.mxu1 %v8525_v51  ;;  %2447 = vmatprep.subr.bf16.mxu0 %v8527_v55  ;;  %v8536_v63 = vld [vmem:[#allocation3 + $0x780] ss:$48 sps:$4 sm:$0xff]   ;;  %v8537_v0 = vld [vmem:[#allocation3 + $0x124] ss:$48 sps:$4 sm:$0xff]   ;;  %v8581_v35 = vld [vmem:[#allocation3 + $0x188] ss:$48 sps:$4 sm:$0xff]  }
 0x19b   :  { %v8539_v61 = vld [vmem:[#allocation3 + $0x724] ss:$48 sps:$4 sm:$0xff]   ;;  %v8541_v1 = vld [vmem:[#allocation3 + $0x120] ss:$48 sps:$4 sm:$0xff]   ;;  %v8589_v37 = vld [vmem:[#allocation3 + $0x12c] ss:$48 sps:$4 sm:$0xff]  }
 0x19c   :  { %v8542_v2 = vld [vmem:[#allocation3 + $0x720] ss:$48 sps:$4 sm:$0xff]   ;;  %v8543_v3 = vld [vmem:[#allocation3 + $0xc4] ss:$48 sps:$4 sm:$0xff]   ;;  %v8587_v39 = vld [vmem:[#allocation3 + $0x128] ss:$48 sps:$4 sm:$0xff]  }
 0x19d   :  { %2407 = vmatpush1.bf16.msra.mxu1 %v8529_v56  ;;  %2448 = vmatpush1.bf16.msra.mxu0 %v8530_v57  ;;  %v8545_v4 = vld [vmem:[#allocation3 + $0x6c4] ss:$48 sps:$4 sm:$0xff]   ;;  %v8547_v7 = vld [vmem:[#allocation3 + $0xc0] ss:$48 sps:$4 sm:$0xff]   ;;  %v8595_v40 = vld [vmem:[#allocation3 + $0xcc] ss:$48 sps:$4 sm:$0xff]  }
 0x19e   :  { %2408 = vmatprep.subr.bf16.mxu1 %v8531_v58  ;;  %2449 = vmatprep.subr.bf16.mxu0 %v8533_v59  ;;  %v8548_v8 = vld [vmem:[#allocation3 + $0x6c0] ss:$48 sps:$4 sm:$0xff]   ;;  %v8549_v9 = vld [vmem:[#allocation3 + $0x64] ss:$48 sps:$4 sm:$0xff]   ;;  %v8593_v43 = vld [vmem:[#allocation3 + $0xc8] ss:$48 sps:$4 sm:$0xff]  }
 0x19f   :  { %v8551_v10 = vld [vmem:[#allocation3 + $0x664] ss:$48 sps:$4 sm:$0xff]   ;;  %v8553_v11 = vld [vmem:[#allocation3 + $0x60] ss:$48 sps:$4 sm:$0xff]   ;;  %v8601_v48 = vld [vmem:[#allocation3 + $0x6c] ss:$48 sps:$4 sm:$0xff]  }
 0x1a0   :  { %v8554_v12 = vld [vmem:[#allocation3 + $0x660] ss:$48 sps:$4 sm:$0xff]   ;;  %v8555_v13 = vld [vmem:[#allocation3 + $0x4] ss:$48 sps:$4 sm:$0xff]   ;;  %v8599_v49 = vld [vmem:[#allocation3 + $0x68] ss:$48 sps:$4 sm:$0xff]  }
 0x1a1   :  { %2409 = vmatpush1.bf16.msra.mxu1 %v8535_v62  ;;  %2450 = vmatpush1.bf16.msra.mxu0 %v8536_v63  ;;  %v8557_v15 = vld [vmem:[#allocation3 + $0x604] ss:$48 sps:$4 sm:$0xff]   ;;  %v8559_v16 = vld [vmem:[#allocation3] ss:$48 sps:$4 sm:$0xff]   ;;  %v8607_v55 = vld [vmem:[#allocation3 + $0xc] ss:$48 sps:$4 sm:$0xff]   ;;  %v9884_v62 = vpack.c.bf16 %v9866_v41, %v9866_v41 }
 0x1a2   :  { %2410 = vmatprep.subr.bf16.mxu1 %v8537_v0  ;;  %2451 = vmatprep.subr.bf16.mxu0 %v8539_v61  ;;  %v8560_v19 = vld [vmem:[#allocation3 + $0x600] ss:$48 sps:$4 sm:$0xff]   ;;  %v8561_v20 = vld [vmem:[#allocation3 + $0x5a4] ss:$48 sps:$4 sm:$0xff]   ;;  %v8605_v56 = vld [vmem:[#allocation3 + $0x8] ss:$48 sps:$4 sm:$0xff]  }
 0x1a3   :  { %v8566_v24 = vld [vmem:[#allocation3 + $0x5a0] ss:$48 sps:$4 sm:$0xff]   ;;  %v8567_v26 = vld [vmem:[#allocation3 + $0x544] ss:$48 sps:$4 sm:$0xff]   ;;  %v8611_v58 = vld [vmem:[#allocation3 + $0x5ac] ss:$48 sps:$4 sm:$0xff]  }
 0x1a4   :  { %v8572_v29 = vld [vmem:[#allocation3 + $0x540] ss:$48 sps:$4 sm:$0xff]   ;;  %v8573_v30 = vld [vmem:[#allocation3 + $0x4e4] ss:$48 sps:$4 sm:$0xff]   ;;  %v8614_v59 = vld [vmem:[#allocation3 + $0x8ac] ss:$48 sps:$4 sm:$0xff]  }
 0x1a5   :  { %2411 = vmatpush1.bf16.msra.mxu1 %v8541_v1  ;;  %2452 = vmatpush1.bf16.msra.mxu0 %v8542_v2  ;;  %v8578_v17 = vld [vmem:[#allocation3 + $0x4e0] ss:$48 sps:$4 sm:$0xff]   ;;  %v8579_v33 = vld [vmem:[#allocation3 + $0x484] ss:$48 sps:$4 sm:$0xff]   ;;  %v8609_v63 = vld [vmem:[#allocation3 + $0x5a8] ss:$48 sps:$4 sm:$0xff]  }
 0x1a6   :  { %2412 = vmatprep.subr.bf16.mxu1 %v8543_v3  ;;  %2453 = vmatprep.subr.bf16.mxu0 %v8545_v4  ;;  %v8584_v36 = vld [vmem:[#allocation3 + $0x480] ss:$48 sps:$4 sm:$0xff]   ;;  %v8585_v22 = vld [vmem:[#allocation3 + $0x424] ss:$48 sps:$4 sm:$0xff]   ;;  %v8612_v0 = vld [vmem:[#allocation3 + $0x8a8] ss:$48 sps:$4 sm:$0xff]  }
 0x1a7   :  { %v8590_v14 = vld [vmem:[#allocation3 + $0x420] ss:$48 sps:$4 sm:$0xff]   ;;  %v8591_v18 = vld [vmem:[#allocation3 + $0x3c4] ss:$48 sps:$4 sm:$0xff]   ;;  %v8617_v61 = vld [vmem:[#allocation3 + $0x54c] ss:$48 sps:$4 sm:$0xff]  }
 0x1a8   :  { %v8596_v46 = vld [vmem:[#allocation3 + $0x3c0] ss:$48 sps:$4 sm:$0xff]   ;;  %v8597_v47 = vld [vmem:[#allocation3 + $0x364] ss:$48 sps:$4 sm:$0xff]   ;;  %v8620_v1 = vld [vmem:[#allocation3 + $0x84c] ss:$48 sps:$4 sm:$0xff]  }
 0x1a9   :  { %2413 = vmatpush1.bf16.msra.mxu1 %v8547_v7  ;;  %2454 = vmatpush1.bf16.msra.mxu0 %v8548_v8  ;;  %v8602_v50 = vld [vmem:[#allocation3 + $0x360] ss:$48 sps:$4 sm:$0xff]   ;;  %v8603_v51 = vld [vmem:[#allocation3 + $0x304] ss:$48 sps:$4 sm:$0xff]   ;;  %v8615_v2 = vld [vmem:[#allocation3 + $0x548] ss:$48 sps:$4 sm:$0xff]  }
 0x1aa   :  { %2414 = vmatprep.subr.bf16.mxu1 %v8549_v9  ;;  %2455 = vmatprep.subr.bf16.mxu0 %v8551_v10  ;;  %v8608_v57 = vld [vmem:[#allocation3 + $0x300] ss:$48 sps:$4 sm:$0xff]   ;;  %v8618_v3 = vld [vmem:[#allocation3 + $0x848] ss:$48 sps:$4 sm:$0xff]   ;;  %v8623_v4 = vld [vmem:[#allocation3 + $0x4ec] ss:$48 sps:$4 sm:$0xff]  }
 0x1ab   :  { %v8626_v7 = vld [vmem:[#allocation3 + $0x7ec] ss:$48 sps:$4 sm:$0xff]   ;;  %v8621_v8 = vld [vmem:[#allocation3 + $0x4e8] ss:$48 sps:$4 sm:$0xff]   ;;  %vm2969_vm5 = vcmask 64512   ;;  %vm3531_vm6 = vcmp.eq.s32.totalorder %v9825_v53, 0 }
 0x1ac   :  { %v8624_v9 = vld [vmem:[#allocation3 + $0x7e8] ss:$48 sps:$4 sm:$0xff]   ;;  %v8629_v10 = vld [vmem:[#allocation3 + $0x48c] ss:$48 sps:$4 sm:$0xff]   ;;  %vm3563_vm7 = vcmp.eq.s32.totalorder %v9825_v53, 1  ;;  %vm3595_vm8 = vcmp.eq.s32.totalorder %v9825_v53, 2 }
 0x1ad   :  { %2415 = vmatpush1.bf16.msra.mxu1 %v8553_v11  ;;  %2456 = vmatpush1.bf16.msra.mxu0 %v8554_v12  ;;  %v8632_v11 = vld [vmem:[#allocation3 + $0x78c] ss:$48 sps:$4 sm:$0xff]   ;;  %v8627_v12 = vld [vmem:[#allocation3 + $0x488] ss:$48 sps:$4 sm:$0xff]   ;;  %vm3627_vm9 = vcmp.eq.s32.totalorder %v9825_v53, 3 }
 0x1ae   :  { %2416 = vmatprep.subr.bf16.mxu1 %v8555_v13  ;;  %2457 = vmatprep.subr.bf16.mxu0 %v8557_v15  ;;  %v8630_v13 = vld [vmem:[#allocation3 + $0x788] ss:$48 sps:$4 sm:$0xff]   ;;  %v8635_v15 = vld [vmem:[#allocation3 + $0x42c] ss:$48 sps:$4 sm:$0xff]  }
 0x1b1   :  { %2417 = vmatpush1.bf16.msra.mxu1 %v8559_v16  ;;  %2458 = vmatpush1.bf16.msra.mxu0 %v8560_v19  ;;  %v8638_v16 = vld [vmem:[#allocation3 + $0x72c] ss:$48 sps:$4 sm:$0xff]   ;;  %v8633_v19 = vld [vmem:[#allocation3 + $0x428] ss:$48 sps:$4 sm:$0xff]  }
 0x1b2   :  { %2418 = vmatprep.subr.bf16.mxu1 %v8561_v20  ;;  %2484 = vmatprep.subr.bf16.mxu0 %v8565_v21  ;;  %v8636_v20 = vld [vmem:[#allocation3 + $0x728] ss:$48 sps:$4 sm:$0xff]   ;;  %v8641_v21 = vld [vmem:[#allocation3 + $0x3cc] ss:$48 sps:$4 sm:$0xff]  }
 0x1b4   :  { %2476 = vmatmul.mubr.bf16.vlgmr.msra.gmra.mxu0 %v9878_v25 }
 0x1b5   :  { %2419 = vmatpush2.bf16.msra.mxu1 %v8566_v24  ;;  %2485 = vmatpush1.bf16.msra.mxu0 %v8563_v23  ;;  %v8644_v23 = vld [vmem:[#allocation3 + $0x6cc] ss:$48 sps:$4 sm:$0xff]   ;;  %v8639_v24 = vld [vmem:[#allocation3 + $0x3c8] ss:$48 sps:$4 sm:$0xff]  }
 0x1b6   :  { %2420 = vmatprep.subr.bf16.mxu1 %v8567_v26  ;;  %2486 = vmatprep.subr.bf16.mxu0 %v8571_v27  ;;  %v8642_v26 = vld [vmem:[#allocation3 + $0x6c8] ss:$48 sps:$4 sm:$0xff]   ;;  %v8647_v27 = vld [vmem:[#allocation3 + $0x36c] ss:$48 sps:$4 sm:$0xff]  }
 0x1b7   :  { %2516 = vmatprep.mubr.bf16.mxu0 %v9872_v44 }
 0x1b9   :  { %2421 = vmatpush2.bf16.msra.mxu1 %v8572_v29  ;;  %2487 = vmatpush1.bf16.msra.mxu0 %v8569_v28  ;;  %v8650_v28 = vld [vmem:[#allocation3 + $0x66c] ss:$48 sps:$4 sm:$0xff]   ;;  %v8645_v29 = vld [vmem:[#allocation3 + $0x368] ss:$48 sps:$4 sm:$0xff]  }
 0x1ba   :  { %2422 = vmatprep.subr.bf16.mxu1 %v8573_v30  ;;  %2488 = vmatprep.subr.bf16.mxu0 %v8577_v31  ;;  %v8648_v30 = vld [vmem:[#allocation3 + $0x668] ss:$48 sps:$4 sm:$0xff]   ;;  %v8653_v31 = vld [vmem:[#allocation3 + $0x30c] ss:$48 sps:$4 sm:$0xff]  }
 0x1bd   :  { %2423 = vmatpush2.bf16.msra.mxu1 %v8578_v17  ;;  %2489 = vmatpush1.bf16.msra.mxu0 %v8575_v32  ;;  %v8656_v32 = vld [vmem:[#allocation3 + $0x60c] ss:$48 sps:$4 sm:$0xff]   ;;  %v8651_v17 = vld [vmem:[#allocation3 + $0x308] ss:$48 sps:$4 sm:$0xff]  }
 0x1be   :  { %2424 = vmatprep.subr.bf16.mxu1 %v8579_v33  ;;  %2490 = vmatprep.subr.bf16.mxu0 %v8583_v34  ;;  %v8654_v33 = vld [vmem:[#allocation3 + $0x608] ss:$48 sps:$4 sm:$0xff]   ;;  %v8659_v34 = vld [vmem:[#allocation3 + $0x2b4] ss:$48 sps:$4 sm:$0xff]  }
 0x1c1   :  { %2425 = vmatpush2.bf16.msra.mxu1 %v8584_v36  ;;  %2491 = vmatpush1.bf16.msra.mxu0 %v8581_v35  ;;  %v8680_v35 = vld [vmem:[#allocation3 + $0x8b4] ss:$48 sps:$4 sm:$0xff]   ;;  %v8657_v36 = vld [vmem:[#allocation3 + $0x2b0] ss:$48 sps:$4 sm:$0xff]  }
 0x1c2   :  { %2426 = vmatprep.subr.bf16.mxu1 %v8585_v22  ;;  %2492 = vmatprep.subr.bf16.mxu0 %v8589_v37  ;;  %v8662_v22 = vld [vmem:[#allocation3 + $0x254] ss:$48 sps:$4 sm:$0xff]   ;;  %v8678_v37 = vld [vmem:[#allocation3 + $0x8b0] ss:$48 sps:$4 sm:$0xff]  }
 0x1c5   :  { %2427 = vmatpush2.bf16.msra.mxu1 %v8590_v14  ;;  %2493 = vmatpush1.bf16.msra.mxu0 %v8587_v39  ;;  %v8686_v39 = vld [vmem:[#allocation3 + $0x854] ss:$48 sps:$4 sm:$0xff]   ;;  %v8660_v14 = vld [vmem:[#allocation3 + $0x250] ss:$48 sps:$4 sm:$0xff]  }
 0x1c6   :  { %2428 = vmatprep.subr.bf16.mxu1 %v8591_v18  ;;  %2494 = vmatprep.subr.bf16.mxu0 %v8595_v40  ;;  %v8665_v18 = vld [vmem:[#allocation3 + $0x1f4] ss:$48 sps:$4 sm:$0xff]   ;;  %v8684_v40 = vld [vmem:[#allocation3 + $0x850] ss:$48 sps:$4 sm:$0xff]  }
 0x1c9   :  { %2429 = vmatpush2.bf16.msra.mxu1 %v8596_v46  ;;  %2495 = vmatpush1.bf16.msra.mxu0 %v8593_v43  ;;  %v8692_v43 = vld [vmem:[#allocation3 + $0x7f4] ss:$48 sps:$4 sm:$0xff]   ;;  %v8663_v46 = vld [vmem:[#allocation3 + $0x1f0] ss:$48 sps:$4 sm:$0xff]  }
 0x1ca   :  { %2430 = vmatprep.subr.bf16.mxu1 %v8597_v47  ;;  %2496 = vmatprep.subr.bf16.mxu0 %v8601_v48  ;;  %v8668_v47 = vld [vmem:[#allocation3 + $0x194] ss:$48 sps:$4 sm:$0xff]   ;;  %v8690_v48 = vld [vmem:[#allocation3 + $0x7f0] ss:$48 sps:$4 sm:$0xff]  }
 0x1cd   :  { %2431 = vmatpush2.bf16.msra.mxu1 %v8602_v50  ;;  %2497 = vmatpush1.bf16.msra.mxu0 %v8599_v49  ;;  %v8698_v49 = vld [vmem:[#allocation3 + $0x794] ss:$48 sps:$4 sm:$0xff]   ;;  %v8666_v50 = vld [vmem:[#allocation3 + $0x190] ss:$48 sps:$4 sm:$0xff]  }
 0x1ce   :  { %2432 = vmatprep.subr.bf16.mxu1 %v8603_v51  ;;  %2498 = vmatprep.subr.bf16.mxu0 %v8607_v55  ;;  %v8671_v51 = vld [vmem:[#allocation3 + $0x134] ss:$48 sps:$4 sm:$0xff]   ;;  %v8696_v55 = vld [vmem:[#allocation3 + $0x790] ss:$48 sps:$4 sm:$0xff]  }
 0x1d1   :  { %2433 = vmatpush2.bf16.msra.mxu1 %v8608_v57  ;;  %2499 = vmatpush1.bf16.msra.mxu0 %v8605_v56  ;;  %v8704_v56 = vld [vmem:[#allocation3 + $0x734] ss:$48 sps:$4 sm:$0xff]   ;;  %v8669_v57 = vld [vmem:[#allocation3 + $0x130] ss:$48 sps:$4 sm:$0xff]  }
 0x1d2   :  { %2500 = vmatprep.subr.bf16.mxu0 %v8611_v58  ;;  %2525 = vmatprep.subr.bf16.mxu1 %v8614_v59  ;;  %v8674_v58 = vld [vmem:[#allocation3 + $0xd4] ss:$48 sps:$4 sm:$0xff]   ;;  %v8702_v59 = vld [vmem:[#allocation3 + $0x730] ss:$48 sps:$4 sm:$0xff]  }
 0x1d4   :  { %2435 = vmatmul.mubr.bf16.vlgmr.msra.gmra.mxu1 %v9884_v62 }
 0x1d5   :  { %2501 = vmatpush2.bf16.msra.mxu0 %v8609_v63  ;;  %2526 = vmatpush1.bf16.msra.mxu1 %v8612_v0  ;;  %v8710_v63 = vld [vmem:[#allocation3 + $0x6d4] ss:$48 sps:$4 sm:$0xff]   ;;  %v8672_v0 = vld [vmem:[#allocation3 + $0xd0] ss:$48 sps:$4 sm:$0xff]  }
 0x1d6   :  { %2502 = vmatprep.subr.bf16.mxu0 %v8617_v61  ;;  %2527 = vmatprep.subr.bf16.mxu1 %v8620_v1  ;;  %v8677_v61 = vld [vmem:[#allocation3 + $0x74] ss:$48 sps:$4 sm:$0xff]   ;;  %v8708_v1 = vld [vmem:[#allocation3 + $0x6d0] ss:$48 sps:$4 sm:$0xff]  }
 0x1d7   :  { %2557 = vmatprep.mubr.bf16.mxu1 %v9732_v45 }
 0x1d9   :  { %2503 = vmatpush2.bf16.msra.mxu0 %v8615_v2  ;;  %2528 = vmatpush1.bf16.msra.mxu1 %v8618_v3  ;;  %v8716_v2 = vld [vmem:[#allocation3 + $0x674] ss:$48 sps:$4 sm:$0xff]   ;;  %v8675_v3 = vld [vmem:[#allocation3 + $0x70] ss:$48 sps:$4 sm:$0xff]  }
 0x1da   :  { %2504 = vmatprep.subr.bf16.mxu0 %v8623_v4  ;;  %2529 = vmatprep.subr.bf16.mxu1 %v8626_v7  ;;  %v8683_v4 = vld [vmem:[#allocation3 + $0x14] ss:$48 sps:$4 sm:$0xff]   ;;  %v8714_v7 = vld [vmem:[#allocation3 + $0x670] ss:$48 sps:$4 sm:$0xff]  }
 0x1dd   :  { %2505 = vmatpush2.bf16.msra.mxu0 %v8621_v8  ;;  %2530 = vmatpush1.bf16.msra.mxu1 %v8624_v9  ;;  %v8722_v8 = vld [vmem:[#allocation3 + $0x614] ss:$48 sps:$4 sm:$0xff]   ;;  %v8681_v9 = vld [vmem:[#allocation3 + $0x10] ss:$48 sps:$4 sm:$0xff]  }
 0x1de   :  { %2506 = vmatprep.subr.bf16.mxu0 %v8629_v10  ;;  %2531 = vmatprep.subr.bf16.mxu1 %v8632_v11  ;;  %v8689_v10 = vld [vmem:[#allocation3 + $0x5b4] ss:$48 sps:$4 sm:$0xff]   ;;  %v8720_v11 = vld [vmem:[#allocation3 + $0x610] ss:$48 sps:$4 sm:$0xff]  }
 0x1e1   :  { %2507 = vmatpush2.bf16.msra.mxu0 %v8627_v12  ;;  %2532 = vmatpush1.bf16.msra.mxu1 %v8630_v13  ;;  %v8731_v12 = vld [vmem:[#allocation3 + $0x2bc] ss:$48 sps:$4 sm:$0xff]   ;;  %v8687_v13 = vld [vmem:[#allocation3 + $0x5b0] ss:$48 sps:$4 sm:$0xff]  }
 0x1e2   :  { %2508 = vmatprep.subr.bf16.mxu0 %v8635_v15  ;;  %2533 = vmatprep.subr.bf16.mxu1 %v8638_v16  ;;  %v8695_v15 = vld [vmem:[#allocation3 + $0x554] ss:$48 sps:$4 sm:$0xff]   ;;  %v8729_v16 = vld [vmem:[#allocation3 + $0x2b8] ss:$48 sps:$4 sm:$0xff]  }
 0x1e5   :  { %2509 = vmatpush2.bf16.msra.mxu0 %v8633_v19  ;;  %2534 = vmatpush1.bf16.msra.mxu1 %v8636_v20  ;;  %v8734_v19 = vld [vmem:[#allocation3 + $0x25c] ss:$48 sps:$4 sm:$0xff]   ;;  %v8693_v20 = vld [vmem:[#allocation3 + $0x550] ss:$48 sps:$4 sm:$0xff]  }
 0x1e6   :  { %2510 = vmatprep.subr.bf16.mxu0 %v8641_v21  ;;  %2535 = vmatprep.subr.bf16.mxu1 %v8644_v23  ;;  %v8701_v21 = vld [vmem:[#allocation3 + $0x4f4] ss:$48 sps:$4 sm:$0xff]   ;;  %v8732_v23 = vld [vmem:[#allocation3 + $0x258] ss:$48 sps:$4 sm:$0xff]  }
 0x1e9   :  { %2511 = vmatpush2.bf16.msra.mxu0 %v8639_v24  ;;  %2536 = vmatpush1.bf16.msra.mxu1 %v8642_v26  ;;  %v8737_v24 = vld [vmem:[#allocation3 + $0x1fc] ss:$48 sps:$4 sm:$0xff]   ;;  %v8699_v26 = vld [vmem:[#allocation3 + $0x4f0] ss:$48 sps:$4 sm:$0xff]  }
 0x1ea   :  { %2512 = vmatprep.subr.bf16.mxu0 %v8647_v27  ;;  %2537 = vmatprep.subr.bf16.mxu1 %v8650_v28  ;;  %v8707_v27 = vld [vmem:[#allocation3 + $0x494] ss:$48 sps:$4 sm:$0xff]   ;;  %v8735_v28 = vld [vmem:[#allocation3 + $0x1f8] ss:$48 sps:$4 sm:$0xff]  }
 0x1ed   :  { %2513 = vmatpush2.bf16.msra.mxu0 %v8645_v29  ;;  %2538 = vmatpush1.bf16.msra.mxu1 %v8648_v30  ;;  %v8740_v29 = vld [vmem:[#allocation3 + $0x19c] ss:$48 sps:$4 sm:$0xff]   ;;  %v8705_v30 = vld [vmem:[#allocation3 + $0x490] ss:$48 sps:$4 sm:$0xff]  }
 0x1ee   :  { %2514 = vmatprep.subr.bf16.mxu0 %v8653_v31  ;;  %2539 = vmatprep.subr.bf16.mxu1 %v8656_v32  ;;  %v8713_v31 = vld [vmem:[#allocation3 + $0x434] ss:$48 sps:$4 sm:$0xff]   ;;  %v8738_v32 = vld [vmem:[#allocation3 + $0x198] ss:$48 sps:$4 sm:$0xff]  }
 0x1f1   :  { %2515 = vmatpush2.bf16.msra.mxu0 %v8651_v17  ;;  %2540 = vmatpush1.bf16.msra.mxu1 %v8654_v33  ;;  %v8743_v17 = vld [vmem:[#allocation3 + $0x13c] ss:$48 sps:$4 sm:$0xff]   ;;  %v8711_v33 = vld [vmem:[#allocation3 + $0x430] ss:$48 sps:$4 sm:$0xff]  }
 0x1f2   :  { %2566 = vmatprep.subr.bf16.mxu1 %v8659_v34  ;;  %2607 = vmatprep.subr.bf16.mxu0 %v8680_v35  ;;  %v8719_v34 = vld [vmem:[#allocation3 + $0x3d4] ss:$48 sps:$4 sm:$0xff]   ;;  %v8741_v35 = vld [vmem:[#allocation3 + $0x138] ss:$48 sps:$4 sm:$0xff]  }
 0x1f4   :  { %2517 = vmatmul.mubr.bf16.vlgmr.msra.gmra.mxu0 %v9884_v62  ;;  %2558 = vmatmul.mubr.bf16.vlgmr.msra.gmra.mxu1 %v9878_v25 }
 0x1f5   :  { %2567 = vmatpush1.bf16.msra.mxu1 %v8657_v36  ;;  %2608 = vmatpush1.bf16.msra.mxu0 %v8678_v37  ;;  %v8746_v36 = vld [vmem:[#allocation3 + $0xdc] ss:$48 sps:$4 sm:$0xff]   ;;  %v8725_v37 = vld [vmem:[#allocation3 + $0x374] ss:$48 sps:$4 sm:$0xff]  }
 0x1f6   :  { %2568 = vmatprep.subr.bf16.mxu1 %v8662_v22  ;;  %2609 = vmatprep.subr.bf16.mxu0 %v8686_v39  ;;  %v8717_v22 = vld [vmem:[#allocation3 + $0x3d0] ss:$48 sps:$4 sm:$0xff]   ;;  %v8744_v39 = vld [vmem:[#allocation3 + $0xd8] ss:$48 sps:$4 sm:$0xff]  }
 0x1f7   :  { %2639 = vmatprep.mubr.bf16.mxu0 %v9732_v45  ;;  %2598 = vmatprep.mubr.bf16.mxu1 %v9872_v44 }
 0x1f9   :  { %2569 = vmatpush1.bf16.msra.mxu1 %v8660_v14  ;;  %2610 = vmatpush1.bf16.msra.mxu0 %v8684_v40  ;;  %v8749_v14 = vld [vmem:[#allocation3 + $0x7c] ss:$48 sps:$4 sm:$0xff]   ;;  %v8747_v40 = vld [vmem:[#allocation3 + $0x78] ss:$48 sps:$4 sm:$0xff]  }
 0x1fa   :  { %2570 = vmatprep.subr.bf16.mxu1 %v8665_v18  ;;  %2611 = vmatprep.subr.bf16.mxu0 %v8692_v43  ;;  %v8723_v18 = vld [vmem:[#allocation3 + $0x370] ss:$48 sps:$4 sm:$0xff]   ;;  %v8728_v43 = vld [vmem:[#allocation3 + $0x314] ss:$48 sps:$4 sm:$0xff]  }
 0x1fd   :  { %2571 = vmatpush1.bf16.msra.mxu1 %v8663_v46  ;;  %2612 = vmatpush1.bf16.msra.mxu0 %v8690_v48  ;;  %v8752_v46 = vld [vmem:[#allocation3 + $0x1c] ss:$48 sps:$4 sm:$0xff]   ;;  %v8750_v48 = vld [vmem:[#allocation3 + $0x18] ss:$48 sps:$4 sm:$0xff]  }
 0x1fe   :  { %2572 = vmatprep.subr.bf16.mxu1 %v8668_v47  ;;  %2613 = vmatprep.subr.bf16.mxu0 %v8698_v49  ;;  %v8726_v47 = vld [vmem:[#allocation3 + $0x310] ss:$48 sps:$4 sm:$0xff]   ;;  %v8755_v49 = vld [vmem:[#allocation3 + $0x8bc] ss:$48 sps:$4 sm:$0xff]  }
 0x201   :  { %2573 = vmatpush1.bf16.msra.mxu1 %v8666_v50  ;;  %2614 = vmatpush1.bf16.msra.mxu0 %v8696_v55  ;;  %v8758_v50 = vld [vmem:[#allocation3 + $0x5bc] ss:$48 sps:$4 sm:$0xff]   ;;  %v8756_v55 = vld [vmem:[#allocation3 + $0x5b8] ss:$48 sps:$4 sm:$0xff]  }
 0x202   :  { %2574 = vmatprep.subr.bf16.mxu1 %v8671_v51  ;;  %2615 = vmatprep.subr.bf16.mxu0 %v8704_v56  ;;  %v8753_v51 = vld [vmem:[#allocation3 + $0x8b8] ss:$48 sps:$4 sm:$0xff]   ;;  %v8761_v56 = vld [vmem:[#allocation3 + $0x85c] ss:$48 sps:$4 sm:$0xff]  }
 0x205   :  { %2575 = vmatpush1.bf16.msra.mxu1 %v8669_v57  ;;  %2616 = vmatpush1.bf16.msra.mxu0 %v8702_v59  ;;  %v8764_v57 = vld [vmem:[#allocation3 + $0x55c] ss:$48 sps:$4 sm:$0xff]   ;;  %v8762_v59 = vld [vmem:[#allocation3 + $0x558] ss:$48 sps:$4 sm:$0xff]  }
 0x206   :  { %2576 = vmatprep.subr.bf16.mxu1 %v8674_v58  ;;  %2617 = vmatprep.subr.bf16.mxu0 %v8710_v63  ;;  %v8759_v58 = vld [vmem:[#allocation3 + $0x858] ss:$48 sps:$4 sm:$0xff]   ;;  %v8767_v63 = vld [vmem:[#allocation3 + $0x7fc] ss:$48 sps:$4 sm:$0xff]  }
 0x209   :  { %2577 = vmatpush1.bf16.msra.mxu1 %v8672_v0  ;;  %2618 = vmatpush1.bf16.msra.mxu0 %v8708_v1  ;;  %v8770_v0 = vld [vmem:[#allocation3 + $0x4fc] ss:$48 sps:$4 sm:$0xff]   ;;  %v8768_v1 = vld [vmem:[#allocation3 + $0x4f8] ss:$48 sps:$4 sm:$0xff]  }
 0x20a   :  { %2578 = vmatprep.subr.bf16.mxu1 %v8677_v61  ;;  %2619 = vmatprep.subr.bf16.mxu0 %v8716_v2  ;;  %v8765_v61 = vld [vmem:[#allocation3 + $0x7f8] ss:$48 sps:$4 sm:$0xff]   ;;  %v8773_v2 = vld [vmem:[#allocation3 + $0x79c] ss:$48 sps:$4 sm:$0xff]  }
 0x20d   :  { %2579 = vmatpush1.bf16.msra.mxu1 %v8675_v3  ;;  %2620 = vmatpush1.bf16.msra.mxu0 %v8714_v7  ;;  %v8776_v3 = vld [vmem:[#allocation3 + $0x49c] ss:$48 sps:$4 sm:$0xff]   ;;  %v8774_v7 = vld [vmem:[#allocation3 + $0x498] ss:$48 sps:$4 sm:$0xff]  }
 0x20e   :  { %2580 = vmatprep.subr.bf16.mxu1 %v8683_v4  ;;  %2621 = vmatprep.subr.bf16.mxu0 %v8722_v8  ;;  %v8771_v4 = vld [vmem:[#allocation3 + $0x798] ss:$48 sps:$4 sm:$0xff]   ;;  %v8779_v8 = vld [vmem:[#allocation3 + $0x73c] ss:$48 sps:$4 sm:$0xff]  }
 0x211   :  { %2581 = vmatpush1.bf16.msra.mxu1 %v8681_v9  ;;  %2622 = vmatpush1.bf16.msra.mxu0 %v8720_v11  ;;  %v8782_v9 = vld [vmem:[#allocation3 + $0x43c] ss:$48 sps:$4 sm:$0xff]   ;;  %v8780_v11 = vld [vmem:[#allocation3 + $0x438] ss:$48 sps:$4 sm:$0xff]  }
 0x212   :  { %2582 = vmatprep.subr.bf16.mxu1 %v8689_v10  ;;  %2648 = vmatprep.subr.bf16.mxu0 %v8731_v12  ;;  %v8777_v10 = vld [vmem:[#allocation3 + $0x738] ss:$48 sps:$4 sm:$0xff]   ;;  %v8785_v12 = vld [vmem:[#allocation3 + $0x6dc] ss:$48 sps:$4 sm:$0xff]  }
 0x214   :  { %2640 = vmatmul.mubr.bf16.vlgmr.msra.gmra.mxu0 %v9878_v25 }
 0x215   :  { %2583 = vmatpush2.bf16.msra.mxu1 %v8687_v13  ;;  %2649 = vmatpush1.bf16.msra.mxu0 %v8729_v16  ;;  %v8788_v13 = vld [vmem:[#allocation3 + $0x3dc] ss:$48 sps:$4 sm:$0xff]   ;;  %v8786_v16 = vld [vmem:[#allocation3 + $0x3d8] ss:$48 sps:$4 sm:$0xff]  }
 0x216   :  { %2584 = vmatprep.subr.bf16.mxu1 %v8695_v15  ;;  %2650 = vmatprep.subr.bf16.mxu0 %v8734_v19  ;;  %v8783_v15 = vld [vmem:[#allocation3 + $0x6d8] ss:$48 sps:$4 sm:$0xff]   ;;  %v8791_v19 = vld [vmem:[#allocation3 + $0x67c] ss:$48 sps:$4 sm:$0xff]  }
 0x217   :  { %2680 = vmatprep.mubr.bf16.mxu0 %v9872_v44 }
 0x219   :  { %2585 = vmatpush2.bf16.msra.mxu1 %v8693_v20  ;;  %2651 = vmatpush1.bf16.msra.mxu0 %v8732_v23  ;;  %v8794_v20 = vld [vmem:[#allocation3 + $0x37c] ss:$48 sps:$4 sm:$0xff]   ;;  %v8792_v23 = vld [vmem:[#allocation3 + $0x378] ss:$48 sps:$4 sm:$0xff]  }
 0x21a   :  { %2586 = vmatprep.subr.bf16.mxu1 %v8701_v21  ;;  %2652 = vmatprep.subr.bf16.mxu0 %v8737_v24  ;;  %v8789_v21 = vld [vmem:[#allocation3 + $0x678] ss:$48 sps:$4 sm:$0xff]   ;;  %v8797_v24 = vld [vmem:[#allocation3 + $0x61c] ss:$48 sps:$4 sm:$0xff]  }
 0x21d   :  { %2587 = vmatpush2.bf16.msra.mxu1 %v8699_v26  ;;  %2653 = vmatpush1.bf16.msra.mxu0 %v8735_v28  ;;  %v8800_v26 = vld [vmem:[#allocation3 + $0x31c] ss:$48 sps:$4 sm:$0xff]   ;;  %v8798_v28 = vld [vmem:[#allocation3 + $0x318] ss:$48 sps:$4 sm:$0xff]  }
 0x21e   :  { %2588 = vmatprep.subr.bf16.mxu1 %v8707_v27  ;;  %2654 = vmatprep.subr.bf16.mxu0 %v8740_v29  ;;  %v8795_v27 = vld [vmem:[#allocation3 + $0x618] ss:$48 sps:$4 sm:$0xff]   ;;  %v8803_v29 = vld [vmem:[#allocation3 + $0x2c4] ss:$48 sps:$4 sm:$0xff]  }
 0x221   :  { %2589 = vmatpush2.bf16.msra.mxu1 %v8705_v30  ;;  %2655 = vmatpush1.bf16.msra.mxu0 %v8738_v32  ;;  %v8809_v30 = vld [vmem:[#allocation3 + $0x8c4] ss:$48 sps:$4 sm:$0xff]   ;;  %v8807_v32 = vld [vmem:[#allocation3 + $0x8c0] ss:$48 sps:$4 sm:$0xff]  }
 0x222   :  { %2590 = vmatprep.subr.bf16.mxu1 %v8713_v31  ;;  %2656 = vmatprep.subr.bf16.mxu0 %v8743_v17  ;;  %v8801_v31 = vld [vmem:[#allocation3 + $0x2c0] ss:$48 sps:$4 sm:$0xff]   ;;  %v8806_v17 = vld [vmem:[#allocation3 + $0x264] ss:$48 sps:$4 sm:$0xff]  }
 0x225   :  { %2591 = vmatpush2.bf16.msra.mxu1 %v8711_v33  ;;  %2657 = vmatpush1.bf16.msra.mxu0 %v8741_v35  ;;  %v8815_v33 = vld [vmem:[#allocation3 + $0x864] ss:$48 sps:$4 sm:$0xff]   ;;  %v8813_v35 = vld [vmem:[#allocation3 + $0x860] ss:$48 sps:$4 sm:$0xff]  }
 0x226   :  { %2592 = vmatprep.subr.bf16.mxu1 %v8719_v34  ;;  %2658 = vmatprep.subr.bf16.mxu0 %v8746_v36  ;;  %v8804_v34 = vld [vmem:[#allocation3 + $0x260] ss:$48 sps:$4 sm:$0xff]   ;;  %v8812_v36 = vld [vmem:[#allocation3 + $0x204] ss:$48 sps:$4 sm:$0xff]  }
 0x229   :  { %2593 = vmatpush2.bf16.msra.mxu1 %v8717_v22  ;;  %2659 = vmatpush1.bf16.msra.mxu0 %v8744_v39  ;;  %v8821_v22 = vld [vmem:[#allocation3 + $0x804] ss:$48 sps:$4 sm:$0xff]   ;;  %v8819_v39 = vld [vmem:[#allocation3 + $0x800] ss:$48 sps:$4 sm:$0xff]  }
 0x22a   :  { %2594 = vmatprep.subr.bf16.mxu1 %v8725_v37  ;;  %2660 = vmatprep.subr.bf16.mxu0 %v8749_v14  ;;  %v8810_v37 = vld [vmem:[#allocation3 + $0x200] ss:$48 sps:$4 sm:$0xff]   ;;  %v8818_v14 = vld [vmem:[#allocation3 + $0x1a4] ss:$48 sps:$4 sm:$0xff]  }
 0x22d   :  { %2595 = vmatpush2.bf16.msra.mxu1 %v8723_v18  ;;  %2661 = vmatpush1.bf16.msra.mxu0 %v8747_v40  ;;  %v8827_v18 = vld [vmem:[#allocation3 + $0x7a4] ss:$48 sps:$4 sm:$0xff]   ;;  %v8816_v40 = vld [vmem:[#allocation3 + $0x1a0] ss:$48 sps:$4 sm:$0xff]  }
 0x22e   :  { %2596 = vmatprep.subr.bf16.mxu1 %v8728_v43  ;;  %2662 = vmatprep.subr.bf16.mxu0 %v8752_v46  ;;  %v8825_v43 = vld [vmem:[#allocation3 + $0x7a0] ss:$48 sps:$4 sm:$0xff]   ;;  %v8824_v46 = vld [vmem:[#allocation3 + $0x144] ss:$48 sps:$4 sm:$0xff]  }
 0x231   :  { %2597 = vmatpush2.bf16.msra.mxu1 %v8726_v47  ;;  %2663 = vmatpush1.bf16.msra.mxu0 %v8750_v48  ;;  %v8833_v47 = vld [vmem:[#allocation3 + $0x744] ss:$48 sps:$4 sm:$0xff]   ;;  %v8822_v48 = vld [vmem:[#allocation3 + $0x140] ss:$48 sps:$4 sm:$0xff]  }
 0x232   :  { %2689 = vmatprep.subr.bf16.mxu1 %v8755_v49  ;;  %2664 = vmatprep.subr.bf16.mxu0 %v8758_v50  ;;  %v8831_v49 = vld [vmem:[#allocation3 + $0x740] ss:$48 sps:$4 sm:$0xff]   ;;  %v8830_v50 = vld [vmem:[#allocation3 + $0xe4] ss:$48 sps:$4 sm:$0xff]  }
 0x234   :  { %2599 = vmatmul.mubr.bf16.vlgmr.msra.gmra.mxu1 %v9884_v62 }
 0x235   :  { %2690 = vmatpush1.bf16.msra.mxu1 %v8753_v51  ;;  %2665 = vmatpush2.bf16.msra.mxu0 %v8756_v55  ;;  %v8839_v51 = vld [vmem:[#allocation3 + $0x6e4] ss:$48 sps:$4 sm:$0xff]   ;;  %v8828_v55 = vld [vmem:[#allocation3 + $0xe0] ss:$48 sps:$4 sm:$0xff]  }
 0x236   :  { %2691 = vmatprep.subr.bf16.mxu1 %v8761_v56  ;;  %2666 = vmatprep.subr.bf16.mxu0 %v8764_v57  ;;  %v8837_v56 = vld [vmem:[#allocation3 + $0x6e0] ss:$48 sps:$4 sm:$0xff]   ;;  %v8836_v57 = vld [vmem:[#allocation3 + $0x84] ss:$48 sps:$4 sm:$0xff]  }
 0x237   :  { %2721 = vmatprep.mubr.bf16.mxu1 %v9732_v45 }
 0x239   :  { %2692 = vmatpush1.bf16.msra.mxu1 %v8759_v58  ;;  %2667 = vmatpush2.bf16.msra.mxu0 %v8762_v59  ;;  %v8845_v58 = vld [vmem:[#allocation3 + $0x684] ss:$48 sps:$4 sm:$0xff]   ;;  %v8834_v59 = vld [vmem:[#allocation3 + $0x80] ss:$48 sps:$4 sm:$0xff]  }
 0x23a   :  { %2693 = vmatprep.subr.bf16.mxu1 %v8767_v63  ;;  %2668 = vmatprep.subr.bf16.mxu0 %v8770_v0  ;;  %v8843_v63 = vld [vmem:[#allocation3 + $0x680] ss:$48 sps:$4 sm:$0xff]   ;;  %v8842_v0 = vld [vmem:[#allocation3 + $0x24] ss:$48 sps:$4 sm:$0xff]  }
 0x23d   :  { %2694 = vmatpush1.bf16.msra.mxu1 %v8765_v61  ;;  %2669 = vmatpush2.bf16.msra.mxu0 %v8768_v1  ;;  %v8851_v61 = vld [vmem:[#allocation3 + $0x624] ss:$48 sps:$4 sm:$0xff]   ;;  %v8840_v1 = vld [vmem:[#allocation3 + $0x20] ss:$48 sps:$4 sm:$0xff]  }
 0x23e   :  { %2695 = vmatprep.subr.bf16.mxu1 %v8773_v2  ;;  %2670 = vmatprep.subr.bf16.mxu0 %v8776_v3  ;;  %v8849_v2 = vld [vmem:[#allocation3 + $0x620] ss:$48 sps:$4 sm:$0xff]   ;;  %v8848_v3 = vld [vmem:[#allocation3 + $0x5c4] ss:$48 sps:$4 sm:$0xff]  }
 0x241   :  { %2696 = vmatpush1.bf16.msra.mxu1 %v8771_v4  ;;  %2671 = vmatpush2.bf16.msra.mxu0 %v8774_v7  ;;  %v8857_v4 = vld [vmem:[#allocation3 + $0x2cc] ss:$48 sps:$4 sm:$0xff]   ;;  %v8846_v7 = vld [vmem:[#allocation3 + $0x5c0] ss:$48 sps:$4 sm:$0xff]  }
 0x242   :  { %2697 = vmatprep.subr.bf16.mxu1 %v8779_v8  ;;  %2672 = vmatprep.subr.bf16.mxu0 %v8782_v9  ;;  %v8855_v8 = vld [vmem:[#allocation3 + $0x2c8] ss:$48 sps:$4 sm:$0xff]   ;;  %v8854_v9 = vld [vmem:[#allocation3 + $0x564] ss:$48 sps:$4 sm:$0xff]  }
 0x245   :  { %2698 = vmatpush1.bf16.msra.mxu1 %v8777_v10  ;;  %2673 = vmatpush2.bf16.msra.mxu0 %v8780_v11  ;;  %v8863_v10 = vld [vmem:[#allocation3 + $0x26c] ss:$48 sps:$4 sm:$0xff]  }
 0x246   :  { %2699 = vmatprep.subr.bf16.mxu1 %v8785_v12  ;;  %2674 = vmatprep.subr.bf16.mxu0 %v8788_v13  ;;  %v8852_v12 = vld [vmem:[#allocation3 + $0x560] ss:$48 sps:$4 sm:$0xff]   ;;  %v8861_v13 = vld [vmem:[#allocation3 + $0x268] ss:$48 sps:$4 sm:$0xff]  }
 0x249   :  { %2700 = vmatpush1.bf16.msra.mxu1 %v8783_v15  ;;  %2675 = vmatpush2.bf16.msra.mxu0 %v8786_v16  ;;  %v8860_v16 = vld [vmem:[#allocation3 + $0x504] ss:$48 sps:$4 sm:$0xff]  }
 0x24a   :  { %2701 = vmatprep.subr.bf16.mxu1 %v8791_v19  ;;  %2676 = vmatprep.subr.bf16.mxu0 %v8794_v20  ;;  %v8869_v19 = vld [vmem:[#allocation3 + $0x20c] ss:$48 sps:$4 sm:$0xff]  }
 0x24d   :  { %2702 = vmatpush1.bf16.msra.mxu1 %v8789_v21  ;;  %2677 = vmatpush2.bf16.msra.mxu0 %v8792_v23  ;;  %v8858_v21 = vld [vmem:[#allocation3 + $0x500] ss:$48 sps:$4 sm:$0xff]   ;;  %v8867_v23 = vld [vmem:[#allocation3 + $0x208] ss:$48 sps:$4 sm:$0xff]  }
 0x24e   :  { %2703 = vmatprep.subr.bf16.mxu1 %v8797_v24  ;;  %2678 = vmatprep.subr.bf16.mxu0 %v8800_v26  ;;  %v8866_v26 = vld [vmem:[#allocation3 + $0x4a4] ss:$48 sps:$4 sm:$0xff]  }
 0x251   :  { %2704 = vmatpush1.bf16.msra.mxu1 %v8795_v27  ;;  %2679 = vmatpush2.bf16.msra.mxu0 %v8798_v28  ;;  %v8875_v27 = vld [vmem:[#allocation3 + $0x1ac] ss:$48 sps:$4 sm:$0xff]   ;;  %v8864_v28 = vld [vmem:[#allocation3 + $0x4a0] ss:$48 sps:$4 sm:$0xff]  }
 0x252   :  { %2730 = vmatprep.subr.bf16.mxu1 %v8803_v29  ;;  %2771 = vmatprep.subr.bf16.mxu0 %v8809_v30  ;;  %v8873_v29 = vld [vmem:[#allocation3 + $0x1a8] ss:$48 sps:$4 sm:$0xff]   ;;  %v8872_v30 = vld [vmem:[#allocation3 + $0x444] ss:$48 sps:$4 sm:$0xff]  }
 0x254   :  { %2722 = vmatmul.mubr.bf16.vlgmr.msra.gmra.mxu1 %v9878_v25  ;;  %2681 = vmatmul.mubr.bf16.vlgmr.msra.gmra.mxu0 %v9884_v62 }
 0x255   :  { %2731 = vmatpush1.bf16.msra.mxu1 %v8801_v31  ;;  %2772 = vmatpush1.bf16.msra.mxu0 %v8807_v32  ;;  %v8881_v31 = vld [vmem:[#allocation3 + $0x14c] ss:$48 sps:$4 sm:$0xff]   ;;  %v8879_v32 = vld [vmem:[#allocation3 + $0x148] ss:$48 sps:$4 sm:$0xff]  }
 0x256   :  { %2732 = vmatprep.subr.bf16.mxu1 %v8806_v17  ;;  %2773 = vmatprep.subr.bf16.mxu0 %v8815_v33  ;;  %v8878_v17 = vld [vmem:[#allocation3 + $0x3e4] ss:$48 sps:$4 sm:$0xff]   ;;  %v8887_v33 = vld [vmem:[#allocation3 + $0xec] ss:$48 sps:$4 sm:$0xff]  }
 0x257   :  { %2803 = vmatprep.mubr.bf16.mxu0 %v9732_v45  ;;  %2762 = vmatprep.mubr.bf16.mxu1 %v9872_v44 }
 0x259   :  { %2733 = vmatpush1.bf16.msra.mxu1 %v8804_v34  ;;  %2774 = vmatpush1.bf16.msra.mxu0 %v8813_v35  ;;  %v8876_v34 = vld [vmem:[#allocation3 + $0x3e0] ss:$48 sps:$4 sm:$0xff]   ;;  %v8885_v35 = vld [vmem:[#allocation3 + $0xe8] ss:$48 sps:$4 sm:$0xff]  }
 0x25a   :  { %2734 = vmatprep.subr.bf16.mxu1 %v8812_v36  ;;  %2775 = vmatprep.subr.bf16.mxu0 %v8821_v22  ;;  %v8884_v36 = vld [vmem:[#allocation3 + $0x384] ss:$48 sps:$4 sm:$0xff]   ;;  %v8893_v22 = vld [vmem:[#allocation3 + $0x8c] ss:$48 sps:$4 sm:$0xff]  }
 0x25d   :  { %2735 = vmatpush1.bf16.msra.mxu1 %v8810_v37  ;;  %2776 = vmatpush1.bf16.msra.mxu0 %v8819_v39  ;;  %v8882_v37 = vld [vmem:[#allocation3 + $0x380] ss:$48 sps:$4 sm:$0xff]   ;;  %v8891_v39 = vld [vmem:[#allocation3 + $0x88] ss:$48 sps:$4 sm:$0xff]  }
 0x25e   :  { %2736 = vmatprep.subr.bf16.mxu1 %v8818_v14  ;;  %2777 = vmatprep.subr.bf16.mxu0 %v8827_v18  ;;  %v8890_v14 = vld [vmem:[#allocation3 + $0x324] ss:$48 sps:$4 sm:$0xff]   ;;  %v8896_v18 = vld [vmem:[#allocation3 + $0x2c] ss:$48 sps:$4 sm:$0xff]  }
 0x261   :  { %2737 = vmatpush1.bf16.msra.mxu1 %v8816_v40  ;;  %2778 = vmatpush1.bf16.msra.mxu0 %v8825_v43  ;;  %v8888_v40 = vld [vmem:[#allocation3 + $0x320] ss:$48 sps:$4 sm:$0xff]   ;;  %v8894_v43 = vld [vmem:[#allocation3 + $0x28] ss:$48 sps:$4 sm:$0xff]  }
 0x262   :  { %2738 = vmatprep.subr.bf16.mxu1 %v8824_v46  ;;  %2779 = vmatprep.subr.bf16.mxu0 %v8833_v47  ;;  %v8899_v46 = vld [vmem:[#allocation3 + $0x8cc] ss:$48 sps:$4 sm:$0xff]  }
 0x263   :  { %v8902_v47 = vld [vmem:[#allocation3 + $0x5cc] ss:$48 sps:$4 sm:$0xff]  }
 0x265   :  { %2739 = vmatpush1.bf16.msra.mxu1 %v8822_v48  ;;  %2780 = vmatpush1.bf16.msra.mxu0 %v8831_v49  ;;  %v8897_v48 = vld [vmem:[#allocation3 + $0x8c8] ss:$48 sps:$4 sm:$0xff]  }
 0x266   :  { %2740 = vmatprep.subr.bf16.mxu1 %v8830_v50  ;;  %2781 = vmatprep.subr.bf16.mxu0 %v8839_v51  ;;  %v8900_v49 = vld [vmem:[#allocation3 + $0x5c8] ss:$48 sps:$4 sm:$0xff]   ;;  %v8905_v50 = vld [vmem:[#allocation3 + $0x86c] ss:$48 sps:$4 sm:$0xff]  }
 0x267   :  { %v8908_v51 = vld [vmem:[#allocation3 + $0x56c] ss:$48 sps:$4 sm:$0xff]  }
 0x269   :  { %2741 = vmatpush1.bf16.msra.mxu1 %v8828_v55  ;;  %2782 = vmatpush1.bf16.msra.mxu0 %v8837_v56 }
 0x26a   :  { %2742 = vmatprep.subr.bf16.mxu1 %v8836_v57  ;;  %2783 = vmatprep.subr.bf16.mxu0 %v8845_v58  ;;  %v8903_v57 = vld [vmem:[#allocation3 + $0x868] ss:$48 sps:$4 sm:$0xff]  }
 0x26b   :  { %v8906_v58 = vld [vmem:[#allocation3 + $0x568] ss:$48 sps:$4 sm:$0xff]  }
 0x26d   :  { %2743 = vmatpush1.bf16.msra.mxu1 %v8834_v59  ;;  %2784 = vmatpush1.bf16.msra.mxu0 %v8843_v63  ;;  %v8911_v63 = vld [vmem:[#allocation3 + $0x80c] ss:$48 sps:$4 sm:$0xff]  }
 0x26e   :  { %2744 = vmatprep.subr.bf16.mxu1 %v8842_v0  ;;  %2785 = vmatprep.subr.bf16.mxu0 %v8851_v61  ;;  %v8914_v0 = vld [vmem:[#allocation3 + $0x50c] ss:$48 sps:$4 sm:$0xff]  }
 0x271   :  { %2745 = vmatpush1.bf16.msra.mxu1 %v8840_v1  ;;  %2786 = vmatpush1.bf16.msra.mxu0 %v8849_v2  ;;  %v8909_v2 = vld [vmem:[#allocation3 + $0x808] ss:$48 sps:$4 sm:$0xff]  }
 0x272   :  { %2746 = vmatprep.subr.bf16.mxu1 %v8848_v3  ;;  %2812 = vmatprep.subr.bf16.mxu0 %v8857_v4  ;;  %v8912_v3 = vld [vmem:[#allocation3 + $0x508] ss:$48 sps:$4 sm:$0xff]  }
 0x274   :  { %v9900_v11 = vpop.f32.mrf.mxu0  ;;  %2804 = vmatmul.mubr.bf16.vlgmr.msra.gmra.mxu0 %v9878_v25 }
 0x275   :  { %2747 = vmatpush2.bf16.msra.mxu1 %v8846_v7  ;;  %2813 = vmatpush1.bf16.msra.mxu0 %v8855_v8  ;;  %v8917_v7 = vld [vmem:[#allocation3 + $0x7ac] ss:$48 sps:$4 sm:$0xff]  }
 0x276   :  { %v9903_v15 = vpop.f32.mrf.mxu0  ;;  %2748 = vmatprep.subr.bf16.mxu1 %v8854_v9  ;;  %2814 = vmatprep.subr.bf16.mxu0 %v8863_v10  ;;  %v8920_v8 = vld [vmem:[#allocation3 + $0x4ac] ss:$48 sps:$4 sm:$0xff]   ;;  %v8915_v9 = vld [vmem:[#allocation3 + $0x7a8] ss:$48 sps:$4 sm:$0xff]  }
 0x277   :  { %2844 = vmatprep.mubr.bf16.mxu0 %v9872_v44  ;;  %v8870_v44 = vld [vmem:[#allocation3 + $0x440] ss:$48 sps:$4 sm:$0xff]   ;;  %v8918_v10 = vld [vmem:[#allocation3 + $0x4a8] ss:$48 sps:$4 sm:$0xff]  }
 0x278   :  { %v2481_v20 = vpop.f32.mrf.mxu0 }
 0x279   :  { %2749 = vmatpush2.bf16.msra.mxu1 %v8852_v12  ;;  %2815 = vmatpush1.bf16.msra.mxu0 %v8861_v13  ;;  %v8926_v12 = vld [vmem:[#allocation3 + $0x44c] ss:$48 sps:$4 sm:$0xff]   ;;  %v8921_v13 = vld [vmem:[#allocation3 + $0x748] ss:$48 sps:$4 sm:$0xff]  }
 0x27a   :  { %v2482_v24 = vpop.f32.mrf.mxu0  ;;  %2750 = vmatprep.subr.bf16.mxu1 %v8860_v16  ;;  %2816 = vmatprep.subr.bf16.mxu0 %v8869_v19  ;;  %v8929_v16 = vld [vmem:[#allocation3 + $0x6ec] ss:$48 sps:$4 sm:$0xff]   ;;  %v8927_v20 = vld [vmem:[#allocation3 + $0x6e8] ss:$48 sps:$4 sm:$0xff]  }
 0x27b   :  { %v8932_v19 = vld [vmem:[#allocation3 + $0x3ec] ss:$48 sps:$4 sm:$0xff]  }
 0x27c   :  { %v8938_v24 = vld [vmem:[#allocation3 + $0x38c] ss:$48 sps:$4 sm:$0xff]  }
 0x27d   :  { %2751 = vmatpush2.bf16.msra.mxu1 %v8858_v21  ;;  %2817 = vmatpush1.bf16.msra.mxu0 %v8867_v23  ;;  %v8930_v21 = vld [vmem:[#allocation3 + $0x3e8] ss:$48 sps:$4 sm:$0xff]   ;;  %v8935_v23 = vld [vmem:[#allocation3 + $0x68c] ss:$48 sps:$4 sm:$0xff]  }
 0x27e   :  { %2752 = vmatprep.subr.bf16.mxu1 %v8866_v26  ;;  %2818 = vmatprep.subr.bf16.mxu0 %v8875_v27  ;;  %v8933_v26 = vld [vmem:[#allocation3 + $0x688] ss:$48 sps:$4 sm:$0xff]  }
 0x27f   :  { %v8936_v27 = vld [vmem:[#allocation3 + $0x388] ss:$48 sps:$4 sm:$0xff]  }
 0x281   :  { %2753 = vmatpush2.bf16.msra.mxu1 %v8864_v28  ;;  %2819 = vmatpush1.bf16.msra.mxu0 %v8873_v29  ;;  %v8941_v28 = vld [vmem:[#allocation3 + $0x62c] ss:$48 sps:$4 sm:$0xff]  }
 0x282   :  { %2754 = vmatprep.subr.bf16.mxu1 %v8872_v30  ;;  %2820 = vmatprep.subr.bf16.mxu0 %v8881_v31  ;;  %v8944_v29 = vld [vmem:[#allocation3 + $0x32c] ss:$48 sps:$4 sm:$0xff]   ;;  %v8939_v30 = vld [vmem:[#allocation3 + $0x628] ss:$48 sps:$4 sm:$0xff]  }
 0x283   :  { %v8942_v31 = vld [vmem:[#allocation3 + $0x328] ss:$48 sps:$4 sm:$0xff]  }
 0x285   :  { %2755 = vmatpush2.bf16.msra.mxu1 %v8870_v44  ;;  %2821 = vmatpush1.bf16.msra.mxu0 %v8879_v32  ;;  %v9733_v44 = vmov 0.0  }
 0x286   :  { %2756 = vmatprep.subr.bf16.mxu1 %v8878_v17  ;;  %2822 = vmatprep.subr.bf16.mxu0 %v8887_v33 }
 0x289   :  { %2757 = vmatpush2.bf16.msra.mxu1 %v8876_v34  ;;  %2823 = vmatpush1.bf16.msra.mxu0 %v8885_v35 }
 0x28a   :  { %2758 = vmatprep.subr.bf16.mxu1 %v8884_v36  ;;  %2824 = vmatprep.subr.bf16.mxu0 %v8893_v22 }
 0x28d   :  { %2759 = vmatpush2.bf16.msra.mxu1 %v8882_v37  ;;  %2825 = vmatpush1.bf16.msra.mxu0 %v8891_v39 }
 0x28e   :  { %2760 = vmatprep.subr.bf16.mxu1 %v8890_v14  ;;  %2826 = vmatprep.subr.bf16.mxu0 %v8896_v18 }
 0x291   :  { %2761 = vmatpush2.bf16.msra.mxu1 %v8888_v40  ;;  %2827 = vmatpush1.bf16.msra.mxu0 %v8894_v43 }
 0x292   :  { %2853 = vmatprep.subr.bf16.mxu1 %v8899_v46  ;;  %2828 = vmatprep.subr.bf16.mxu0 %v8902_v47 }
 0x294   :  { %v2436_v55 = vpop.f32.mrf.mxu1  ;;  %2763 = vmatmul.mubr.bf16.vlgmr.msra.gmra.mxu1 %v9884_v62 }
 0x295   :  { %v9908_v56 = vadd.f32 %v9900_v11, %v2436_v55  ;;  %2854 = vmatpush1.bf16.msra.mxu1 %v8897_v48  ;;  %2829 = vmatpush2.bf16.msra.mxu0 %v8900_v49  ;;  %v8923_v11 = vld [vmem:[#allocation3 + $0x74c] ss:$48 sps:$4 sm:$0xff]  }
 0x296   :  { %v2438_v59 = vpop.f32.mrf.mxu1  ;;  %2855 = vmatprep.subr.bf16.mxu1 %v8905_v50  ;;  %2830 = vmatprep.subr.bf16.mxu0 %v8908_v51 }
 0x297   :  { %v9911_v61 = vadd.f32 %v9903_v15, %v2438_v59  ;;  %2885 = vmatprep.mubr.bf16.mxu1 %v9732_v45  ;;  %v8924_v15 = vld [vmem:[#allocation3 + $0x448] ss:$48 sps:$4 sm:$0xff]  }
 0x298   :  { %v2440_v1 = vpop.f32.mrf.mxu1 }
 0x299   :  { %2856 = vmatpush1.bf16.msra.mxu1 %v8903_v57  ;;  %2831 = vmatpush2.bf16.msra.mxu0 %v8906_v58 }
 0x29a   :  { %v2441_v4 = vpop.f32.mrf.mxu1  ;;  %2857 = vmatprep.subr.bf16.mxu1 %v8911_v63  ;;  %2832 = vmatprep.subr.bf16.mxu0 %v8914_v0 }
 0x29d   :  { %2858 = vmatpush1.bf16.msra.mxu1 %v8909_v2  ;;  %2833 = vmatpush2.bf16.msra.mxu0 %v8912_v3 }
 0x29e   :  { %2859 = vmatprep.subr.bf16.mxu1 %v8917_v7  ;;  %2834 = vmatprep.subr.bf16.mxu0 %v8920_v8 }
 0x2a1   :  { %2860 = vmatpush1.bf16.msra.mxu1 %v8915_v9  ;;  %2835 = vmatpush2.bf16.msra.mxu0 %v8918_v10 }
 0x2a2   :  { %2861 = vmatprep.subr.bf16.mxu1 %v8923_v11  ;;  %2836 = vmatprep.subr.bf16.mxu0 %v8926_v12 }
 0x2a5   :  { %2862 = vmatpush1.bf16.msra.mxu1 %v8921_v13  ;;  %2837 = vmatpush2.bf16.msra.mxu0 %v8924_v15 }
 0x2a6   :  { %2863 = vmatprep.subr.bf16.mxu1 %v8929_v16  ;;  %2838 = vmatprep.subr.bf16.mxu0 %v8932_v19 }
 0x2a9   :  { %2864 = vmatpush1.bf16.msra.mxu1 %v8927_v20  ;;  %2839 = vmatpush2.bf16.msra.mxu0 %v8930_v21 }
 0x2aa   :  { %2865 = vmatprep.subr.bf16.mxu1 %v8935_v23  ;;  %2840 = vmatprep.subr.bf16.mxu0 %v8938_v24 }
 0x2ad   :  { %2866 = vmatpush1.bf16.msra.mxu1 %v8933_v26  ;;  %2841 = vmatpush2.bf16.msra.mxu0 %v8936_v27 }
 0x2ae   :  { %2867 = vmatprep.subr.bf16.mxu1 %v8941_v28  ;;  %2842 = vmatprep.subr.bf16.mxu0 %v8944_v29 }
 0x2b1   :  { %2868 = vmatpush1.bf16.msra.mxu1 %v8939_v30  ;;  %2843 = vmatpush2.bf16.msra.mxu0 %v8942_v31  ;;  %v9935_v30 = vand.u32 127, %v192_v52 }
 0x2b2   :  { %8363 = vmatprep.subr.mxu1 %v9733_v44 }
 0x2b3   :  { %vm2896_vm4 = vcmp.lt.s32.totalorder %v9935_v30, 4 }
 0x2b4   :  { %v2518_v32 = vpop.f32.mrf.mxu0  ;;  %v2559_v17 = vpop.f32.mrf.mxu1  ;;  %2886 = vmatmul.mubr.bf16.vlgmr.msra.gmra.mxu1 %v9878_v25  ;;  %2845 = vmatmul.mubr.bf16.vlgmr.msra.gmra.mxu0 %v9884_v62 }
 0x2b5   :  { %v9917_v33 = vadd.f32 %v2559_v17, %v2518_v32  ;;  %8365 = vmatprep.mubr.msk.f32.mxu1 %vm9734_vm3, %v9733_v44 }
 0x2b6   :  { %v2520_v34 = vpop.f32.mrf.mxu0  ;;  %v2561_v35 = vpop.f32.mrf.mxu1 }
 0x2b7   :  { %v9921_v36 = vadd.f32 %v2561_v35, %v2520_v34 }
 0x2b8   :  { %v2563_v22 = vpop.f32.mrf.mxu1  ;;  %v2522_v37 = vpop.f32.mrf.mxu0 }
 0x2ba   :  { %v2564_v39 = vpop.f32.mrf.mxu1  ;;  %v2523_v14 = vpop.f32.mrf.mxu0 }
 0x2d4   :  { %v2641_v18 = vpop.f32.mrf.mxu0 }
 0x2d6   :  { %v2643_v40 = vpop.f32.mrf.mxu0 }
 0x2d8   :  { %v2645_v43 = vpop.f32.mrf.mxu0 }
 0x2da   :  { %v2646_v25 = vpop.f32.mrf.mxu0 }
 0x2f4   :  { %v2600_v46 = vpop.f32.mrf.mxu1 }
 0x2f5   :  { %v2642_v62 = vadd.f32 %v2641_v18, %v2600_v46 }
 0x2f6   :  { %v2602_v47 = vpop.f32.mrf.mxu1 }
 0x2f7   :  { %v2644_v48 = vadd.f32 %v2643_v40, %v2602_v47  ;;  %8364 = vmatpush3.xpose.msra.mxu1 %v2642_v62 }
 0x2f8   :  { %v2604_v49 = vpop.f32.mrf.mxu1  ;;  %8368 = vmatprep.subr.mxu1 %v9733_v44 }
 0x2fa   :  { %v2605_v50 = vpop.f32.mrf.mxu1  ;;  %8366 = vmatmul.mubr.f32.vlgmr.msra.gmra.mxu1 %v9908_v56 }
 0x2fb   :  { %8370 = vmatprep.mubr.msk.f32.mxu1 %vm9734_vm3, %v9733_v44 }
 0x314   :  { %v2723_v51 = vpop.f32.mrf.mxu1  ;;  %v2682_v55 = vpop.f32.mrf.mxu0 }
 0x315   :  { %v9927_v57 = vadd.f32 %v2723_v51, %v2682_v55 }
 0x316   :  { %v2725_v58 = vpop.f32.mrf.mxu1  ;;  %v2684_v59 = vpop.f32.mrf.mxu0 }
 0x317   :  { %v9929_v63 = vadd.f32 %v2725_v58, %v2684_v59 }
 0x318   :  { %v2727_v0 = vpop.f32.mrf.mxu1  ;;  %v2686_v1 = vpop.f32.mrf.mxu0 }
 0x31a   :  { %v2728_v2 = vpop.f32.mrf.mxu1  ;;  %v2687_v3 = vpop.f32.mrf.mxu0 }
 0x334   :  { %v2805_v4 = vpop.f32.mrf.mxu0 }
 0x336   :  { %v2807_v7 = vpop.f32.mrf.mxu0 }
 0x338   :  { %v2809_v8 = vpop.f32.mrf.mxu0 }
 0x33a   :  { %v2810_v9 = vpop.f32.mrf.mxu0 }
 0x354   :  { %v2764_v56 = vpop.f32.mrf.mxu1 }
 0x355   :  { %v2806_v10 = vadd.f32 %v2805_v4, %v2764_v56 }
 0x356   :  { %v2766_v11 = vpop.f32.mrf.mxu1 }
 0x357   :  { %v2808_v12 = vadd.f32 %v2807_v7, %v2766_v11  ;;  %8369 = vmatpush3.msra.mxu1 %v2806_v10 }
 0x358   :  { %v2768_v13 = vpop.f32.mrf.mxu1  ;;  %8373 = vmatprep.subr.mxu1 %v9733_v44 }
 0x35a   :  { %v2769_v15 = vpop.f32.mrf.mxu1 }
 0x374   :  { %v2887_v16 = vpop.f32.mrf.mxu1  ;;  %v2846_v19 = vpop.f32.mrf.mxu0 }
 0x375   :  { %v2888_v20 = vadd.f32 %v2887_v16, %v2846_v19 }
 0x376   :  { %v2889_v21 = vpop.f32.mrf.mxu1  ;;  %v2848_v23 = vpop.f32.mrf.mxu0 }
 0x377   :  { %v9932_v24 = vadd.f32 %v2889_v21, %v2848_v23 }
 0x378   :  { %v2891_v26 = vpop.f32.mrf.mxu1  ;;  %v2850_v27 = vpop.f32.mrf.mxu0 }
 0x37a   :  { %v2892_v28 = vpop.f32.mrf.mxu1  ;;  %v2851_v29 = vpop.f32.mrf.mxu0 }
 0x3ba   :  { %v2963_v31 = vpop.f32.mrf.mxu1 }
 0x3bb   :  { %v2967_v32 = vmul.f32 0.11043153, %v2963_v31 }
 0x3bc   :  { %v8367_v17 = vpop.f32.mrf.mxu1 }
 0x3bd   :  { %v2968_v34 = vsel %vm2896_vm4, %v2967_v32, -1e+30 }
 0x3be   :  { %v2970_v35 = vsel %vm2969_vm5, %v2968_v34, -inf }
 0x3bf   :  { %2971 = vmax.xlane.f32.xlu0 %v2970_v35 }
 0x448   :  { %v2972_v22 = vpop.xlane.xlu0 %2971 }
 0x449   :  { %v2973_v37 = vsub.f32 %v2968_v34, %v2972_v22 }
 0x44b   :  { %v2974_v39 = vmul.f32 1.442695, %v2973_v37 }
 0x44d   :  { %8945 = vpow2.f32 %v2974_v39 }
 0x45a   :  { %v8946_v14 = vpop.eup %8945 }
 0x45b   :  { %v2976_v52 = vsel %vm2969_vm5, %v8946_v14, 0.0 }
 0x45c   :  { %2977 = vadd.xlane.f32.xlu0 %v2976_v52 }
 0x4e5   :  { %v2978_v18 = vpop.xlane.xlu0 %2977 }
 0x4e6   :  { %8947 = vrcp.f32 %v2978_v18 }
 0x4f3   :  { %v8948_v40 = vpop.eup %8947 }
 0x4f4   :  { %v2980_v43 = vmul.f32 %v8948_v40, %v8946_v14 }
 0x4f6   :  { %8371 = vmatmul.mubr.msk.f32.vlgmr.msra.gmra.mxu1 %vm2969_vm5, %v2980_v43 }
 0x4f7   :  { %8374 = vmatpush3.xpose.msra.mxu1 %v2644_v48  ;;  %8375 = vmatprep.mubr.msk.f32.mxu1 %vm9734_vm3, %v9733_v44 }
 0x4f8   :  { %8378 = vmatprep.subr.mxu1 %v9733_v44 }
 0x4fa   :  { %8376 = vmatmul.mubr.f32.vlgmr.msra.gmra.mxu1 %v9911_v61 }
 0x4fb   :  { %8379 = vmatpush3.msra.mxu1 %v2808_v12  ;;  %8380 = vmatprep.mubr.msk.f32.mxu1 %vm9734_vm3, %v9733_v44 }
 0x4fc   :  { %8383 = vmatprep.subr.mxu1 %v9733_v44 }
 0x5b6   :  { %v3050_v25 = vpop.f32.mrf.mxu1 }
 0x5b7   :  { %v3525_v3 = vrot.slane %v3050_v25, 1  ;;  %v3527_v4 = vrot.slane %v3050_v25, 2  ;;  %v3529_v7 = vrot.slane %v3050_v25, 3  ;;  %v3535_v8 = vrot.slane %v3050_v25, %v9832_v5 }
 0x5b8   :  { %v8372_v46 = vpop.f32.mrf.mxu1 }
 0x5b9   :  { %v3543_v9 = vrot.slane %v3527_v4, %v9832_v5  ;;  %v3547_v56 = vrot.slane %v3529_v7, %v9832_v5  ;;  %v3548_v15 = vsel %vm3531_vm6, %v3535_v8, 0.0 }
 0x5ba   :  { %v3120_v62 = vpop.f32.mrf.mxu1 }
 0x5bb   :  { %v3124_v47 = vmul.f32 0.11043153, %v3120_v62  ;;  %v3550_v27 = vsel %vm3531_vm6, %v3543_v9, 0.0  ;;  %v3551_v28 = vsel %vm3531_vm6, %v3547_v56, 0.0 }
 0x5bc   :  { %v8377_v49 = vpop.f32.mrf.mxu1 }
 0x5bd   :  { %v3125_v48 = vsel %vm2896_vm4, %v3124_v47, -1e+30 }
 0x5be   :  { %v3126_v50 = vsel %vm2969_vm5, %v3125_v48, -inf }
 0x5bf   :  { %3127 = vmax.xlane.f32.xlu1 %v3126_v50 }
 0x648   :  { %v3128_v51 = vpop.xlane.xlu1 %3127 }
 0x649   :  { %v3129_v55 = vsub.f32 %v3125_v48, %v3128_v51 }
 0x64b   :  { %v3130_v61 = vmul.f32 1.442695, %v3129_v55 }
 0x64d   :  { %8949 = vpow2.f32 %v3130_v61 }
 0x65a   :  { %v8950_v58 = vpop.eup %8949 }
 0x65b   :  { %v3132_v59 = vsel %vm2969_vm5, %v8950_v58, 0.0 }
 0x65c   :  { %3133 = vadd.xlane.f32.xlu1 %v3132_v59 }
 0x6e5   :  { %v3134_v0 = vpop.xlane.xlu1 %3133 }
 0x6e6   :  { %8951 = vrcp.f32 %v3134_v0 }
 0x6f3   :  { %v8952_v1 = vpop.eup %8951 }
 0x6f4   :  { %v3136_v2 = vmul.f32 %v8952_v1, %v8950_v58 }
 0x6f6   :  { %8381 = vmatmul.mubr.msk.f32.vlgmr.msra.gmra.mxu1 %vm2969_vm5, %v3136_v2 }
 0x6f7   :  { %8384 = vmatpush3.xpose.msra.mxu1 %v9927_v57  ;;  %8385 = vmatprep.mubr.msk.f32.mxu1 %vm9734_vm3, %v9733_v44  ;;  %v3539_v57 = vrot.slane %v3525_v3, %v9832_v5 }
 0x6f8   :  { %8388 = vmatprep.subr.mxu1 %v9733_v44 }
 0x6f9   :  { %v3549_v26 = vsel %vm3531_vm6, %v3539_v57, 0.0 }
 0x6fa   :  { %8386 = vmatmul.mubr.f32.vlgmr.msra.gmra.mxu1 %v9917_v33 }
 0x6fb   :  { %8389 = vmatpush3.msra.mxu1 %v2888_v20  ;;  %8390 = vmatprep.mubr.msk.f32.mxu1 %vm9734_vm3, %v9733_v44 }
 0x6fc   :  { %8393 = vmatprep.subr.mxu1 %v9733_v44 }
 0x7b6   :  { %v3206_v33 = vpop.f32.mrf.mxu1 }
 0x7b7   :  { %v3557_v10 = vrot.slane %v3206_v33, 1  ;;  %v3559_v11 = vrot.slane %v3206_v33, 2  ;;  %v3561_v12 = vrot.slane %v3206_v33, 3  ;;  %v3567_v13 = vrot.slane %v3206_v33, %v9832_v5 }
 0x7b8   :  { %v8382_v16 = vpop.f32.mrf.mxu1 }
 0x7b9   :  { %v3571_v19 = vrot.slane %v3557_v10, %v9832_v5  ;;  %v3575_v20 = vrot.slane %v3559_v11, %v9832_v5  ;;  %v3579_v21 = vrot.slane %v3561_v12, %v9832_v5  ;;  %v3580_v23 = vsel %vm3563_vm7, %v3567_v13, 0.0 }
 0x7ba   :  { %v3584_v29 = vadd.f32 %v3580_v23, %v3548_v15  ;;  %v3276_v31 = vpop.f32.mrf.mxu1 }
 0x7bb   :  { %v3581_v32 = vsel %vm3563_vm7, %v3571_v19, 0.0  ;;  %v3582_v17 = vsel %vm3563_vm7, %v3575_v20, 0.0  ;;  %v3583_v34 = vsel %vm3563_vm7, %v3579_v21, 0.0  ;;  %v3280_v35 = vmul.f32 0.11043153, %v3276_v31 }
 0x7bc   :  { %v3585_v22 = vadd.f32 %v3581_v32, %v3549_v26  ;;  %v3586_v37 = vadd.f32 %v3582_v17, %v3550_v27  ;;  %v3587_v39 = vadd.f32 %v3583_v34, %v3551_v28  ;;  %v8387_v14 = vpop.f32.mrf.mxu1 }
 0x7bd   :  { %v3281_v52 = vsel %vm2896_vm4, %v3280_v35, -1e+30 }
 0x7be   :  { %v3282_v18 = vsel %vm2969_vm5, %v3281_v52, -inf }
 0x7bf   :  { %3283 = vmax.xlane.f32.xlu0 %v3282_v18 }
 0x848   :  { %v3284_v40 = vpop.xlane.xlu0 %3283 }
 0x849   :  { %v3285_v43 = vsub.f32 %v3281_v52, %v3284_v40 }
 0x84b   :  { %v3286_v25 = vmul.f32 1.442695, %v3285_v43 }
 0x84d   :  { %8953 = vpow2.f32 %v3286_v25 }
 0x85a   :  { %v8954_v46 = vpop.eup %8953 }
 0x85b   :  { %v3288_v62 = vsel %vm2969_vm5, %v8954_v46, 0.0 }
 0x85c   :  { %3289 = vadd.xlane.f32.xlu1 %v3288_v62 }
 0x8e5   :  { %v3290_v47 = vpop.xlane.xlu1 %3289 }
 0x8e6   :  { %8955 = vrcp.f32 %v3290_v47 }
 0x8f3   :  { %v8956_v49 = vpop.eup %8955 }
 0x8f4   :  { %v3292_v48 = vmul.f32 %v8956_v49, %v8954_v46 }
 0x8f6   :  { %8391 = vmatmul.mubr.msk.f32.vlgmr.msra.gmra.mxu1 %vm2969_vm5, %v3292_v48 }
 0x8f7   :  { %8394 = vmatpush3.xpose.msra.mxu1 %v9929_v63  ;;  %8395 = vmatprep.mubr.msk.f32.mxu1 %vm9734_vm3, %v9733_v44 }
 0x8f8   :  { %8398 = vmatprep.subr.mxu1 %v9733_v44 }
 0x8fa   :  { %8396 = vmatmul.mubr.f32.vlgmr.msra.gmra.mxu1 %v9921_v36 }
 0x8fb   :  { %8399 = vmatpush3.msra.mxu1 %v9932_v24  ;;  %8400 = vmatprep.mubr.msk.f32.mxu1 %vm9734_vm3, %v9733_v44 }
 0x9b6   :  { %v3362_v50 = vpop.f32.mrf.mxu1 }
 0x9b7   :  { %v3589_v51 = vrot.slane %v3362_v50, 1  ;;  %v3591_v55 = vrot.slane %v3362_v50, 2  ;;  %v3593_v61 = vrot.slane %v3362_v50, 3  ;;  %v3599_v63 = vrot.slane %v3362_v50, %v9832_v5 }
 0x9b8   :  { %v8392_v58 = vpop.f32.mrf.mxu1 }
 0x9b9   :  { %v3603_v59 = vrot.slane %v3589_v51, %v9832_v5  ;;  %v3607_v0 = vrot.slane %v3591_v55, %v9832_v5  ;;  %v3611_v36 = vrot.slane %v3593_v61, %v9832_v5  ;;  %v3612_v1 = vsel %vm3595_vm8, %v3599_v63, 0.0 }
 0x9ba   :  { %v3616_v24 = vadd.f32 %v3612_v1, %v3584_v29  ;;  %v3432_v2 = vpop.f32.mrf.mxu1 }
 0x9bb   :  { %v3613_v3 = vsel %vm3595_vm8, %v3603_v59, 0.0  ;;  %v3614_v4 = vsel %vm3595_vm8, %v3607_v0, 0.0  ;;  %v3615_v7 = vsel %vm3595_vm8, %v3611_v36, 0.0  ;;  %v3436_v8 = vmul.f32 0.11043153, %v3432_v2 }
 0x9bc   :  { %v3617_v57 = vadd.f32 %v3613_v3, %v3585_v22  ;;  %v3618_v9 = vadd.f32 %v3614_v4, %v3586_v37  ;;  %v3619_v56 = vadd.f32 %v3615_v7, %v3587_v39  ;;  %v8397_v33 = vpop.f32.mrf.mxu1 }
 0x9bd   :  { %v3437_v10 = vsel %vm2896_vm4, %v3436_v8, -1e+30 }
 0x9be   :  { %v3438_v11 = vsel %vm2969_vm5, %v3437_v10, -inf }
 0x9bf   :  { %3439 = vmax.xlane.f32.xlu0 %v3438_v11 }
 0xa48   :  { %v3440_v12 = vpop.xlane.xlu0 %3439 }
 0xa49   :  { %v3441_v13 = vsub.f32 %v3437_v10, %v3440_v12 }
 0xa4b   :  { %v3442_v15 = vmul.f32 1.442695, %v3441_v13 }
 0xa4d   :  { %8957 = vpow2.f32 %v3442_v15 }
 0xa5a   :  { %v8958_v16 = vpop.eup %8957 }
 0xa5b   :  { %v3444_v19 = vsel %vm2969_vm5, %v8958_v16, 0.0 }
 0xa5c   :  { %3445 = vadd.xlane.f32.xlu1 %v3444_v19 }
 0xae5   :  { %v3446_v20 = vpop.xlane.xlu1 %3445 }
 0xae6   :  { %8959 = vrcp.f32 %v3446_v20 }
 0xaf3   :  { %v8960_v21 = vpop.eup %8959 }
 0xaf4   :  { %v3448_v23 = vmul.f32 %v8960_v21, %v8958_v16 }
 0xaf6   :  { %8401 = vmatmul.mubr.msk.f32.vlgmr.msra.gmra.mxu1 %vm2969_vm5, %v3448_v23 }
 0xbb6   :  { %v3518_v26 = vpop.f32.mrf.mxu1 }
 0xbb7   :  { %v3621_v27 = vrot.slane %v3518_v26, 1  ;;  %v3623_v28 = vrot.slane %v3518_v26, 2  ;;  %v3625_v29 = vrot.slane %v3518_v26, 3  ;;  %v3631_v31 = vrot.slane %v3518_v26, %v9832_v5 }
 0xbb8   :  { %v8402_v32 = vpop.f32.mrf.mxu1 }
 0xbb9   :  { %v3635_v17 = vrot.slane %v3621_v27, %v9832_v5  ;;  %v3639_v34 = vrot.slane %v3623_v28, %v9832_v5  ;;  %v3643_v35 = vrot.slane %v3625_v29, %v9832_v5  ;;  %v3644_v22 = vsel %vm3627_vm9, %v3631_v31, 0.0 }
 0xbba   :  { %v10017_v37 = vadd.f32 %v3644_v22, %v3616_v24 }
 0xbbb   :  { %v3645_v39 = vsel %vm3627_vm9, %v3635_v17, 0.0  ;;  %v3646_v14 = vsel %vm3627_vm9, %v3639_v34, 0.0  ;;  %v3647_v52 = vsel %vm3627_vm9, %v3643_v35, 0.0 }
 0xbbc   :  { %v3649_v18 = vadd.f32 %v3645_v39, %v3617_v57  ;;  %v10019_v40 = vadd.f32 %v3646_v14, %v3618_v9  ;;  %v3651_v43 = vadd.f32 %v3647_v52, %v3619_v56 }
 0xbbd   :  { %9711 = dma.done.wait [#allocation9 + $0x2], 12288 }
 0xbbe   :  { %9712 = vsyncadd [#allocation9 + $0x2], 4294955008  ;;  %v10021_v25 = vpack.c.bf16 %v3649_v18, %v3649_v18  ;;  %v10023_v46 = vpack.c.bf16 %v3651_v43, %v3651_v43  ;;  %v8961_v62 = vld [vmem:[#allocation4 + $0xac] ss:$12 sps:$4 sm:$0xff]   ;;  %v8965_v49 = vld [vmem:[#allocation4 + $0xa8] ss:$12 sps:$4 sm:$0xff]  }
 0xbbf   :  { %v8963_v47 = vld [vmem:[#allocation4 + $0x22c] ss:$12 sps:$4 sm:$0xff]   ;;  %4300 = vmatprep.subr.bf16.mxu0 %v8961_v62  ;;  %v8966_v48 = vld [vmem:[#allocation4 + $0x228] ss:$12 sps:$4 sm:$0xff]   ;;  %v8971_v55 = vld [vmem:[#allocation4 + $0x90] ss:$12 sps:$4 sm:$0xff]  }
 0xbc0   :  { %4332 = vmatprep.mubr.bf16.mxu0 %v10021_v25  ;;  %4373 = vmatprep.mubr.bf16.mxu1 %v10023_v46  ;;  %v8967_v50 = vld [vmem:[#allocation4 + $0x94] ss:$12 sps:$4 sm:$0xff]   ;;  %v8972_v61 = vld [vmem:[#allocation4 + $0x210] ss:$12 sps:$4 sm:$0xff]   ;;  %v8977_v59 = vld [vmem:[#allocation4 + $0x78] ss:$12 sps:$4 sm:$0xff]  }
 0xbc1   :  { %4341 = vmatprep.subr.bf16.mxu1 %v8963_v47  ;;  %4301 = vmatpush1.bf16.msra.mxu0 %v8965_v49  ;;  %v8969_v51 = vld [vmem:[#allocation4 + $0x214] ss:$12 sps:$4 sm:$0xff]   ;;  %v8973_v63 = vld [vmem:[#allocation4 + $0x7c] ss:$12 sps:$4 sm:$0xff]   ;;  %v8978_v0 = vld [vmem:[#allocation4 + $0x1f8] ss:$12 sps:$4 sm:$0xff]  }
 0xbc2   :  { %4342 = vmatpush1.bf16.msra.mxu1 %v8966_v48  ;;  %4302 = vmatprep.subr.bf16.mxu0 %v8967_v50  ;;  %v8975_v58 = vld [vmem:[#allocation4 + $0x1fc] ss:$12 sps:$4 sm:$0xff]   ;;  %v8979_v36 = vld [vmem:[#allocation4 + $0x64] ss:$12 sps:$4 sm:$0xff]   ;;  %v8983_v24 = vld [vmem:[#allocation4 + $0x60] ss:$12 sps:$4 sm:$0xff]  }
 0xbc3   :  { %4343 = vmatprep.subr.bf16.mxu1 %v8969_v51  ;;  %v8981_v1 = vld [vmem:[#allocation4 + $0x1e4] ss:$12 sps:$4 sm:$0xff]   ;;  %v8984_v2 = vld [vmem:[#allocation4 + $0x1e0] ss:$12 sps:$4 sm:$0xff]   ;;  %v8989_v7 = vld [vmem:[#allocation4 + $0x48] ss:$12 sps:$4 sm:$0xff]  }
 0xbc4   :  { %v8985_v3 = vld [vmem:[#allocation4 + $0x4c] ss:$12 sps:$4 sm:$0xff]   ;;  %v8990_v8 = vld [vmem:[#allocation4 + $0x1c8] ss:$12 sps:$4 sm:$0xff]   ;;  %v8995_v56 = vld [vmem:[#allocation4 + $0x30] ss:$12 sps:$4 sm:$0xff]  }
 0xbc5   :  { %4303 = vmatpush1.bf16.msra.mxu0 %v8971_v55  ;;  %v8987_v4 = vld [vmem:[#allocation4 + $0x1cc] ss:$12 sps:$4 sm:$0xff]   ;;  %v8991_v57 = vld [vmem:[#allocation4 + $0x34] ss:$12 sps:$4 sm:$0xff]   ;;  %v8996_v33 = vld [vmem:[#allocation4 + $0x1b0] ss:$12 sps:$4 sm:$0xff]  }
 0xbc6   :  { %4344 = vmatpush1.bf16.msra.mxu1 %v8972_v61  ;;  %4304 = vmatprep.subr.bf16.mxu0 %v8973_v63  ;;  %v8993_v9 = vld [vmem:[#allocation4 + $0x1b4] ss:$12 sps:$4 sm:$0xff]   ;;  %v8997_v10 = vld [vmem:[#allocation4 + $0x1c] ss:$12 sps:$4 sm:$0xff]   ;;  %v9001_v12 = vld [vmem:[#allocation4 + $0x18] ss:$12 sps:$4 sm:$0xff]  }
 0xbc7   :  { %4345 = vmatprep.subr.bf16.mxu1 %v8975_v58  ;;  %v8999_v11 = vld [vmem:[#allocation4 + $0x19c] ss:$12 sps:$4 sm:$0xff]   ;;  %v9002_v13 = vld [vmem:[#allocation4 + $0x198] ss:$12 sps:$4 sm:$0xff]   ;;  %v9007_v19 = vld [vmem:[#allocation4] ss:$12 sps:$4 sm:$0xff]  }
 0xbc8   :  { %v9003_v15 = vld [vmem:[#allocation4 + $0x4] ss:$12 sps:$4 sm:$0xff]   ;;  %v9008_v20 = vld [vmem:[#allocation4 + $0x180] ss:$12 sps:$4 sm:$0xff]   ;;  %v9013_v26 = vld [vmem:[#allocation4 + $0x168] ss:$12 sps:$4 sm:$0xff]  }
 0xbc9   :  { %4305 = vmatpush1.bf16.msra.mxu0 %v8977_v59  ;;  %v9005_v16 = vld [vmem:[#allocation4 + $0x184] ss:$12 sps:$4 sm:$0xff]   ;;  %v9009_v21 = vld [vmem:[#allocation4 + $0x16c] ss:$12 sps:$4 sm:$0xff]   ;;  %v9014_v27 = vld [vmem:[#allocation4 + $0x2e8] ss:$12 sps:$4 sm:$0xff]  }
 0xbca   :  { %4346 = vmatpush1.bf16.msra.mxu1 %v8978_v0  ;;  %4306 = vmatprep.subr.bf16.mxu0 %v8979_v36  ;;  %v9011_v23 = vld [vmem:[#allocation4 + $0x2ec] ss:$12 sps:$4 sm:$0xff]   ;;  %v9015_v28 = vld [vmem:[#allocation4 + $0x154] ss:$12 sps:$4 sm:$0xff]   ;;  %v9019_v31 = vld [vmem:[#allocation4 + $0x150] ss:$12 sps:$4 sm:$0xff]  }
 0xbcb   :  { %4347 = vmatprep.subr.bf16.mxu1 %v8981_v1  ;;  %v9017_v29 = vld [vmem:[#allocation4 + $0x2d4] ss:$12 sps:$4 sm:$0xff]   ;;  %v9020_v32 = vld [vmem:[#allocation4 + $0x2d0] ss:$12 sps:$4 sm:$0xff]   ;;  %v9025_v35 = vld [vmem:[#allocation4 + $0x138] ss:$12 sps:$4 sm:$0xff]  }
 0xbcc   :  { %v9021_v17 = vld [vmem:[#allocation4 + $0x13c] ss:$12 sps:$4 sm:$0xff]   ;;  %v9026_v22 = vld [vmem:[#allocation4 + $0x2b8] ss:$12 sps:$4 sm:$0xff]   ;;  %v9031_v52 = vld [vmem:[#allocation4 + $0x120] ss:$12 sps:$4 sm:$0xff]  }
 0xbcd   :  { %4307 = vmatpush1.bf16.msra.mxu0 %v8983_v24  ;;  %v9023_v34 = vld [vmem:[#allocation4 + $0x2bc] ss:$12 sps:$4 sm:$0xff]   ;;  %v9027_v39 = vld [vmem:[#allocation4 + $0x124] ss:$12 sps:$4 sm:$0xff]   ;;  %v9032_v18 = vld [vmem:[#allocation4 + $0x2a0] ss:$12 sps:$4 sm:$0xff]  }
 0xbce   :  { %4348 = vmatpush1.bf16.msra.mxu1 %v8984_v2  ;;  %4308 = vmatprep.subr.bf16.mxu0 %v8985_v3  ;;  %v9029_v14 = vld [vmem:[#allocation4 + $0x2a4] ss:$12 sps:$4 sm:$0xff]   ;;  %v9033_v43 = vld [vmem:[#allocation4 + $0x10c] ss:$12 sps:$4 sm:$0xff]   ;;  %v9037_v47 = vld [vmem:[#allocation4 + $0x108] ss:$12 sps:$4 sm:$0xff]  }
 0xbcf   :  { %4349 = vmatprep.subr.bf16.mxu1 %v8987_v4  ;;  %v9035_v62 = vld [vmem:[#allocation4 + $0x28c] ss:$12 sps:$4 sm:$0xff]   ;;  %v9038_v49 = vld [vmem:[#allocation4 + $0x288] ss:$12 sps:$4 sm:$0xff]   ;;  %v9043_v51 = vld [vmem:[#allocation4 + $0xf0] ss:$12 sps:$4 sm:$0xff]  }
 0xbd0   :  { %v9039_v48 = vld [vmem:[#allocation4 + $0xf4] ss:$12 sps:$4 sm:$0xff]   ;;  %v9044_v55 = vld [vmem:[#allocation4 + $0x270] ss:$12 sps:$4 sm:$0xff]   ;;  %v9049_v58 = vld [vmem:[#allocation4 + $0xd8] ss:$12 sps:$4 sm:$0xff]  }
 0xbd1   :  { %4309 = vmatpush1.bf16.msra.mxu0 %v8989_v7  ;;  %v9041_v50 = vld [vmem:[#allocation4 + $0x274] ss:$12 sps:$4 sm:$0xff]   ;;  %v9045_v61 = vld [vmem:[#allocation4 + $0xdc] ss:$12 sps:$4 sm:$0xff]   ;;  %v9050_v59 = vld [vmem:[#allocation4 + $0x258] ss:$12 sps:$4 sm:$0xff]   ;;  %v10029_v7 = vpack.c.bf16 %v10017_v37, %v10017_v37 }
 0xbd2   :  { %4350 = vmatpush1.bf16.msra.mxu1 %v8990_v8  ;;  %4310 = vmatprep.subr.bf16.mxu0 %v8991_v57  ;;  %v9047_v63 = vld [vmem:[#allocation4 + $0x25c] ss:$12 sps:$4 sm:$0xff]   ;;  %v9051_v0 = vld [vmem:[#allocation4 + $0xc4] ss:$12 sps:$4 sm:$0xff]   ;;  %v9055_v1 = vld [vmem:[#allocation4 + $0xc0] ss:$12 sps:$4 sm:$0xff]   ;;  %v10033_v8 = vpack.c.bf16 %v10019_v40, %v10019_v40 }
 0xbd3   :  { %4351 = vmatprep.subr.bf16.mxu1 %v8993_v9  ;;  %v9053_v36 = vld [vmem:[#allocation4 + $0x244] ss:$12 sps:$4 sm:$0xff]   ;;  %v9056_v24 = vld [vmem:[#allocation4 + $0x240] ss:$12 sps:$4 sm:$0xff]  }
 0xbd4   :  { %v9057_v2 = vld [vmem:[#allocation4 + $0x170] ss:$12 sps:$4 sm:$0xff]   ;;  %v9061_v9 = vld [vmem:[#allocation4 + $0x158] ss:$12 sps:$4 sm:$0xff]   ;;  %v9065_v37 = vld [vmem:[#allocation4 + $0x140] ss:$12 sps:$4 sm:$0xff]  }
 0xbd5   :  { %4311 = vmatpush1.bf16.msra.mxu0 %v8995_v56  ;;  %v9058_v3 = vld [vmem:[#allocation4 + $0x2f0] ss:$12 sps:$4 sm:$0xff]   ;;  %v9062_v56 = vld [vmem:[#allocation4 + $0x2d8] ss:$12 sps:$4 sm:$0xff]   ;;  %v9066_v40 = vld [vmem:[#allocation4 + $0x2c0] ss:$12 sps:$4 sm:$0xff]  }
 0xbd6   :  { %4352 = vmatpush1.bf16.msra.mxu1 %v8996_v33  ;;  %4312 = vmatprep.subr.bf16.mxu0 %v8997_v10  ;;  %v9059_v4 = vld [vmem:[#allocation4 + $0xb0] ss:$12 sps:$4 sm:$0xff]   ;;  %v9063_v33 = vld [vmem:[#allocation4 + $0x98] ss:$12 sps:$4 sm:$0xff]  }
 0xbd7   :  { %4353 = vmatprep.subr.bf16.mxu1 %v8999_v11  ;;  %v9060_v57 = vld [vmem:[#allocation4 + $0x230] ss:$12 sps:$4 sm:$0xff]   ;;  %v9064_v10 = vld [vmem:[#allocation4 + $0x218] ss:$12 sps:$4 sm:$0xff]   ;;  %v9067_v11 = vld [vmem:[#allocation4 + $0x80] ss:$12 sps:$4 sm:$0xff]  }
 0xbd9   :  { %4313 = vmatpush1.bf16.msra.mxu0 %v9001_v12  ;;  %v9068_v12 = vld [vmem:[#allocation4 + $0x200] ss:$12 sps:$4 sm:$0xff]  }
 0xbda   :  { %4354 = vmatpush1.bf16.msra.mxu1 %v9002_v13  ;;  %4314 = vmatprep.subr.bf16.mxu0 %v9003_v15  ;;  %v9069_v13 = vld [vmem:[#allocation4 + $0x128] ss:$12 sps:$4 sm:$0xff]  }
 0xbdb   :  { %4355 = vmatprep.subr.bf16.mxu1 %v9005_v16  ;;  %v9070_v15 = vld [vmem:[#allocation4 + $0x2a8] ss:$12 sps:$4 sm:$0xff]  }
 0xbdc   :  { %v9071_v16 = vld [vmem:[#allocation4 + $0x68] ss:$12 sps:$4 sm:$0xff]  }
 0xbdd   :  { %4315 = vmatpush1.bf16.msra.mxu0 %v9007_v19  ;;  %v9072_v19 = vld [vmem:[#allocation4 + $0x1e8] ss:$12 sps:$4 sm:$0xff]  }
 0xbde   :  { %4356 = vmatpush1.bf16.msra.mxu1 %v9008_v20  ;;  %4316 = vmatprep.subr.bf16.mxu0 %v9009_v21  ;;  %v9073_v20 = vld [vmem:[#allocation4 + $0x110] ss:$12 sps:$4 sm:$0xff]  }
 0xbdf   :  { %4357 = vmatprep.subr.bf16.mxu1 %v9011_v23  ;;  %v9074_v21 = vld [vmem:[#allocation4 + $0x290] ss:$12 sps:$4 sm:$0xff]  }
 0xbe0   :  { %v9076_v23 = vld [vmem:[#allocation4 + $0x1d0] ss:$12 sps:$4 sm:$0xff]  }
 0xbe1   :  { %4317 = vmatpush2.bf16.msra.mxu0 %v9013_v26  ;;  %v9078_v26 = vld [vmem:[#allocation4 + $0x278] ss:$12 sps:$4 sm:$0xff]  }
 0xbe2   :  { %4358 = vmatpush2.bf16.msra.mxu1 %v9014_v27  ;;  %4318 = vmatprep.subr.bf16.mxu0 %v9015_v28  ;;  %v9079_v27 = vld [vmem:[#allocation4 + $0x38] ss:$12 sps:$4 sm:$0xff]  }
 0xbe3   :  { %4359 = vmatprep.subr.bf16.mxu1 %v9017_v29  ;;  %v9080_v28 = vld [vmem:[#allocation4 + $0x1b8] ss:$12 sps:$4 sm:$0xff]   ;;  %v9081_v29 = vld [vmem:[#allocation4 + $0xe0] ss:$12 sps:$4 sm:$0xff]  }
 0xbe5   :  { %4319 = vmatpush2.bf16.msra.mxu0 %v9019_v31  ;;  %v9082_v31 = vld [vmem:[#allocation4 + $0x260] ss:$12 sps:$4 sm:$0xff]  }
 0xbe6   :  { %4360 = vmatpush2.bf16.msra.mxu1 %v9020_v32  ;;  %4320 = vmatprep.subr.bf16.mxu0 %v9021_v17  ;;  %v9083_v32 = vld [vmem:[#allocation4 + $0x20] ss:$12 sps:$4 sm:$0xff]  }
 0xbe7   :  { %4361 = vmatprep.subr.bf16.mxu1 %v9023_v34  ;;  %v9084_v17 = vld [vmem:[#allocation4 + $0x1a0] ss:$12 sps:$4 sm:$0xff]   ;;  %v9085_v34 = vld [vmem:[#allocation4 + $0xc8] ss:$12 sps:$4 sm:$0xff]  }
 0xbe9   :  { %4321 = vmatpush2.bf16.msra.mxu0 %v9025_v35  ;;  %v9086_v35 = vld [vmem:[#allocation4 + $0x248] ss:$12 sps:$4 sm:$0xff]  }
 0xbea   :  { %4362 = vmatpush2.bf16.msra.mxu1 %v9026_v22  ;;  %4322 = vmatprep.subr.bf16.mxu0 %v9027_v39  ;;  %v9087_v22 = vld [vmem:[#allocation4 + $0x8] ss:$12 sps:$4 sm:$0xff]  }
 0xbeb   :  { %4363 = vmatprep.subr.bf16.mxu1 %v9029_v14  ;;  %v9088_v39 = vld [vmem:[#allocation4 + $0x188] ss:$12 sps:$4 sm:$0xff]  }
 0xbed   :  { %4323 = vmatpush2.bf16.msra.mxu0 %v9031_v52 }
 0xbee   :  { %4364 = vmatpush2.bf16.msra.mxu1 %v9032_v18  ;;  %4324 = vmatprep.subr.bf16.mxu0 %v9033_v43 }
 0xbef   :  { %4365 = vmatprep.subr.bf16.mxu1 %v9035_v62 }
 0xbf1   :  { %4325 = vmatpush2.bf16.msra.mxu0 %v9037_v47 }
 0xbf2   :  { %4366 = vmatpush2.bf16.msra.mxu1 %v9038_v49  ;;  %4326 = vmatprep.subr.bf16.mxu0 %v9039_v48 }
 0xbf3   :  { %4367 = vmatprep.subr.bf16.mxu1 %v9041_v50  ;;  %v4467_v50 = vadd.s32 256, %v9935_v30 }
 0xbf5   :  { %4327 = vmatpush2.bf16.msra.mxu0 %v9043_v51  ;;  %vm4470_vm10 = vcmp.lt.s32.totalorder %v4467_v50, 330 }
 0xbf6   :  { %4368 = vmatpush2.bf16.msra.mxu1 %v9044_v55  ;;  %4328 = vmatprep.subr.bf16.mxu0 %v9045_v61  ;;  %v10046_v30 = vsel %vm4470_vm10, 1.0, %v9733_v44 }
 0xbf7   :  { %4369 = vmatprep.subr.bf16.mxu1 %v9047_v63 }
 0xbf9   :  { %4329 = vmatpush2.bf16.msra.mxu0 %v9049_v58 }
 0xbfa   :  { %4370 = vmatpush2.bf16.msra.mxu1 %v9050_v59  ;;  %4330 = vmatprep.subr.bf16.mxu0 %v9051_v0 }
 0xbfb   :  { %4371 = vmatprep.subr.bf16.mxu1 %v9053_v36 }
 0xbfd   :  { %4331 = vmatpush2.bf16.msra.mxu0 %v9055_v1 }
 0xbfe   :  { %4372 = vmatpush2.bf16.msra.mxu1 %v9056_v24  ;;  %8244 = vmatprep.subr.bf16.mxu0 %v9057_v2 }
 0xbff   :  { %8266 = vmatprep.subr.bf16.mxu1 %v9058_v3 }
 0xc00   :  { %4333 = vmatmul.mubr.bf16.vlgmr.msra.gmra.mxu0 %v10029_v7 }
 0xc01   :  { %4374 = vmatmul.mubr.bf16.vlgmr.msra.gmra.mxu1 %v10033_v8  ;;  %8245 = vmatpush3.bf16.msra.mxu0 %v9059_v4 }
 0xc02   :  { %8267 = vmatpush3.bf16.msra.mxu1 %v9060_v57  ;;  %8246 = vmatprep.subr.bf16.mxu0 %v9061_v9 }
 0xc03   :  { %8268 = vmatprep.subr.bf16.mxu1 %v9062_v56  ;;  %4414 = vmatprep.mubr.bf16.mxu0 %v10021_v25  ;;  %v9075_v25 = vld [vmem:[#allocation4 + $0x50] ss:$12 sps:$4 sm:$0xff]  }
 0xc04   :  { %4454 = vmatprep.mubr.bf16.mxu1 %v10023_v46  ;;  %v9077_v46 = vld [vmem:[#allocation4 + $0xf8] ss:$12 sps:$4 sm:$0xff]  }
 0xc05   :  { %8247 = vmatpush3.bf16.msra.mxu0 %v9063_v33 }
 0xc06   :  { %8269 = vmatpush3.bf16.msra.mxu1 %v9064_v10  ;;  %8248 = vmatprep.subr.bf16.mxu0 %v9065_v37 }
 0xc07   :  { %8270 = vmatprep.subr.bf16.mxu1 %v9066_v40 }
 0xc09   :  { %8249 = vmatpush3.bf16.msra.mxu0 %v9067_v11 }
 0xc0a   :  { %8271 = vmatpush3.bf16.msra.mxu1 %v9068_v12  ;;  %8250 = vmatprep.subr.bf16.mxu0 %v9069_v13 }
 0xc0b   :  { %8272 = vmatprep.subr.bf16.mxu1 %v9070_v15 }
 0xc0d   :  { %8251 = vmatpush3.bf16.msra.mxu0 %v9071_v16 }
 0xc0e   :  { %8273 = vmatpush3.bf16.msra.mxu1 %v9072_v19  ;;  %8252 = vmatprep.subr.bf16.mxu0 %v9073_v20 }
 0xc0f   :  { %8274 = vmatprep.subr.bf16.mxu1 %v9074_v21 }
 0xc11   :  { %8253 = vmatpush3.bf16.msra.mxu0 %v9075_v25  ;;  %v4463_v25 = vld [vmem:[#allocation10 + $0x3] ss:$8 sm:$0x7] }
 0xc12   :  { %8275 = vmatpush3.bf16.msra.mxu1 %v9076_v23  ;;  %8254 = vmatprep.subr.bf16.mxu0 %v9077_v46  ;;  %v4465_v23 = vld [vmem:[#allocation10 + $0x4] ss:$8 sm:$0x7]  ;;  %v4508_v46 = vrot.slane %v4463_v25, %v9832_v5 }
 0xc13   :  { %8276 = vmatprep.subr.bf16.mxu1 %v9078_v26  ;;  %v4512_v26 = vrot.slane %v4463_v25, %v9835_v6 }
 0xc15   :  { %8255 = vmatpush3.bf16.msra.mxu0 %v9079_v27  ;;  %v4516_v27 = vrot.slane %v4463_v25, %v9828_v54 }
 0xc16   :  { %8277 = vmatpush3.bf16.msra.mxu1 %v9080_v28  ;;  %8256 = vmatprep.subr.bf16.mxu0 %v9081_v29  ;;  %v4527_v29 = vrot.slane %v4465_v23, %v9832_v5 }
 0xc17   :  { %8278 = vmatprep.subr.bf16.mxu1 %v9082_v31  ;;  %v4531_v31 = vrot.slane %v4465_v23, %v9835_v6 }
 0xc19   :  { %8257 = vmatpush3.bf16.msra.mxu0 %v9083_v32  ;;  %v4535_v32 = vrot.slane %v4465_v23, %v9828_v54 }
 0xc1a   :  { %8279 = vmatpush3.bf16.msra.mxu1 %v9084_v17  ;;  %8258 = vmatprep.subr.bf16.mxu0 %v9085_v34 }
 0xc1b   :  { %8280 = vmatprep.subr.bf16.mxu1 %v9086_v35 }
 0xc1d   :  { %8259 = vmatpush3.bf16.msra.mxu0 %v9087_v22 }
 0xc1e   :  { %8281 = vmatpush3.bf16.msra.mxu1 %v9088_v39 }
 0xc20   :  { %4415 = vmatmul.mubr.bf16.vlgmr.msra.gmra.mxu0 %v10029_v7 }
 0xc21   :  { %4455 = vmatmul.mubr.bf16.vlgmr.msra.gmra.mxu1 %v10033_v8 }
 0xcc0   :  { %v4334_v14 = vpop.f32.mrf.mxu0 }
 0xcc1   :  { %v4375_v52 = vpop.f32.mrf.mxu1  ;;  %v4335_v61 = vadd.f32 %v4334_v14, %v9866_v41 }
 0xcc2   :  { %v4336_v18 = vpop.f32.mrf.mxu0 }
 0xcc3   :  { %v4377_v43 = vpop.f32.mrf.mxu1  ;;  %v4337_v63 = vadd.f32 %v4336_v18, %v9868_v42  ;;  %v4376_v24 = vadd.f32 %v4375_v52, %v4335_v61 }
 0xcc4   :  { %v4338_v62 = vpop.f32.mrf.mxu0 }
 0xcc5   :  { %v4379_v47 = vpop.f32.mrf.mxu1  ;;  %v4378_v2 = vadd.f32 %v4377_v43, %v4337_v63 }
 0xcc6   :  { %v4339_v49 = vpop.f32.mrf.mxu0 }
 0xcc7   :  { %v4380_v48 = vpop.f32.mrf.mxu1  ;;  %v4480_v42 = vadd.f32 %v4378_v2, %v4376_v24 }
 0xce0   :  { %v8260_v51 = vpop.f32.mrf.mxu0 }
 0xce1   :  { %v8282_v55 = vpop.f32.mrf.mxu1 }
 0xce2   :  { %v8261_v58 = vpop.f32.mrf.mxu0 }
 0xce3   :  { %v8283_v59 = vpop.f32.mrf.mxu1  ;;  %v8262_v0 = vadd.f32 %v8261_v58, %v8260_v51 }
 0xce4   :  { %v8263_v36 = vpop.f32.mrf.mxu0  ;;  %v8284_v4 = vadd.f32 %v8283_v59, %v8282_v55 }
 0xce5   :  { %v8285_v1 = vpop.f32.mrf.mxu1  ;;  %v4417_v3 = vadd.f32 %v8262_v0, %v9854_v60 }
 0xce6   :  { %v8264_v7 = vpop.f32.mrf.mxu0 }
 0xce7   :  { %v8286_v8 = vpop.f32.mrf.mxu1  ;;  %v4457_v57 = vadd.f32 %v8284_v4, %v4417_v3 }
 0xce9   :  { %v4479_v41 = vmul.f32 %v10046_v30, %v4457_v57 }
 0xceb   :  { %v4481_v9 = vadd.f32 %v4480_v42, %v4479_v41 }
 0xced   :  { %4482 = vadd.xlane.f32.xlu0 %v4481_v9 }
 0xd76   :  { %v4483_v56 = vpop.xlane.xlu0 %4482 }
 0xd77   :  { %v4484_v33 = vmul.f32 0.003030303, %v4483_v56 }
 0xd79   :  { %v4485_v10 = vsub.f32 %v4376_v24, %v4484_v33  ;;  %v4486_v37 = vsub.f32 %v4378_v2, %v4484_v33  ;;  %v4487_v40 = vsub.f32 %v4479_v41, %v4484_v33 }
 0xd7b   :  { %v4490_v11 = vmul.f32 %v10046_v30, %v4487_v40  ;;  %v4491_v60 = vmul.f32 %v4485_v10, %v4485_v10  ;;  %v4492_v12 = vmul.f32 %v4486_v37, %v4486_v37 }
 0xd7d   :  { %v4493_v13 = vmul.f32 %v4490_v11, %v4490_v11  ;;  %v4494_v15 = vadd.f32 %v4492_v12, %v4491_v60 }
 0xd7f   :  { %v4495_v16 = vadd.f32 %v4494_v15, %v4493_v13 }
 0xd81   :  { %4496 = vadd.xlane.f32.xlu0 %v4495_v16 }
 0xe0a   :  { %v4497_v19 = vpop.xlane.xlu0 %4496 }
 0xe0b   :  { %v4498_v20 = vmul.f32 0.003030303, %v4497_v19 }
 0xe0d   :  { %v4499_v21 = vadd.f32 1e-05, %v4498_v20 }
 0xe0f   :  { %9089 = vrsqrt.f32 %v4499_v21 }
 0xe1c   :  { %v9090_v28 = vpop.eup %9089 }
 0xe1d   :  { %v4501_v17 = vmul.f32 %v9090_v28, %v4485_v10  ;;  %v4502_v34 = vmul.f32 %v9090_v28, %v4486_v37  ;;  %v4503_v35 = vmul.f32 %v9090_v28, %v4490_v11 }
 0xe1f   :  { %v4520_v22 = vmul.f32 %v4508_v46, %v4501_v17  ;;  %v4521_v39 = vmul.f32 %v4512_v26, %v4502_v34  ;;  %v4522_v14 = vmul.f32 %v4516_v27, %v4503_v35 }
 0xe21   :  { %v10056_v52 = vadd.f32 %v4527_v29, %v4520_v22  ;;  %v10058_v18 = vadd.f32 %v4531_v31, %v4521_v39  ;;  %v10060_v43 = vadd.f32 %v4535_v32, %v4522_v14 }
 0xe22   :  { %9713 = dma.done.wait [#allocation9 + $0x3], 9216 }
 0xe23   :  { %9714 = vsyncadd [#allocation9 + $0x3], 4294958080  ;;  %5119 = vmatprep.mubr.bf16.mxu1 %v9732_v45  ;;  %v10065_v62 = vpack.c.bf16 %v10058_v18, %v10058_v18  ;;  %v9091_v47 = vld [vmem:[#allocation5 + $0xac] ss:$12 sps:$4 sm:$0xff]   ;;  %v9093_v49 = vld [vmem:[#allocation5 + $0xa8] ss:$12 sps:$4 sm:$0xff]   ;;  %v10070_v26 = vpack.c.bf16 %v10060_v43, %v10060_v43 }
 0xe24   :  { %5046 = vmatprep.subr.bf16.mxu0 %v9091_v47  ;;  %v9094_v48 = vld [vmem:[#allocation5 + $0x94] ss:$12 sps:$4 sm:$0xff]   ;;  %v9096_v50 = vld [vmem:[#allocation5 + $0x90] ss:$12 sps:$4 sm:$0xff]   ;;  %v9099_v55 = vld [vmem:[#allocation5 + $0x78] ss:$12 sps:$4 sm:$0xff]  }
 0xe25   :  { %5078 = vmatprep.mubr.bf16.mxu0 %v10065_v62  ;;  %5047 = vmatpush1.bf16.msra.mxu0 %v9093_v49  ;;  %v9097_v51 = vld [vmem:[#allocation5 + $0x7c] ss:$12 sps:$4 sm:$0xff]   ;;  %v9100_v61 = vld [vmem:[#allocation5 + $0x64] ss:$12 sps:$4 sm:$0xff]   ;;  %v9108_v63 = vld [vmem:[#allocation5 + $0x22c] ss:$12 sps:$4 sm:$0xff]  }
 0xe26   :  { %5048 = vmatprep.subr.bf16.mxu0 %v9094_v48  ;;  %v9111_v58 = vld [vmem:[#allocation5 + $0x228] ss:$12 sps:$4 sm:$0xff]   ;;  %5087 = vmatprep.subr.bf16.mxu1 %v9108_v63  ;;  %v9102_v59 = vld [vmem:[#allocation5 + $0x60] ss:$12 sps:$4 sm:$0xff]   ;;  %v9117_v36 = vld [vmem:[#allocation5 + $0x210] ss:$12 sps:$4 sm:$0xff]  }
 0xe27   :  { %5088 = vmatpush1.bf16.msra.mxu1 %v9111_v58  ;;  %v9114_v0 = vld [vmem:[#allocation5 + $0x214] ss:$12 sps:$4 sm:$0xff]   ;;  %v9103_v1 = vld [vmem:[#allocation5 + $0x4c] ss:$12 sps:$4 sm:$0xff]   ;;  %v9120_v24 = vld [vmem:[#allocation5 + $0x1fc] ss:$12 sps:$4 sm:$0xff]  }
 0xe28   :  { %5089 = vmatprep.subr.bf16.mxu1 %v9114_v0  ;;  %v9105_v2 = vld [vmem:[#allocation5 + $0x48] ss:$12 sps:$4 sm:$0xff]   ;;  %v9123_v3 = vld [vmem:[#allocation5 + $0x1f8] ss:$12 sps:$4 sm:$0xff]   ;;  %v9110_v8 = vld [vmem:[#allocation5 + $0x30] ss:$12 sps:$4 sm:$0xff]  }
 0xe29   :  { %5049 = vmatpush1.bf16.msra.mxu0 %v9096_v50  ;;  %v9106_v4 = vld [vmem:[#allocation5 + $0x34] ss:$12 sps:$4 sm:$0xff]   ;;  %v9126_v7 = vld [vmem:[#allocation5 + $0x1e4] ss:$12 sps:$4 sm:$0xff]   ;;  %v9112_v57 = vld [vmem:[#allocation5 + $0x1c] ss:$12 sps:$4 sm:$0xff]  }
 0xe2a   :  { %5050 = vmatprep.subr.bf16.mxu0 %v9097_v51  ;;  %v9129_v41 = vld [vmem:[#allocation5 + $0x1e0] ss:$12 sps:$4 sm:$0xff]   ;;  %v9116_v9 = vld [vmem:[#allocation5 + $0x18] ss:$12 sps:$4 sm:$0xff]   ;;  %v9135_v56 = vld [vmem:[#allocation5 + $0x1c8] ss:$12 sps:$4 sm:$0xff]  }
 0xe2b   :  { %5090 = vmatpush1.bf16.msra.mxu1 %v9117_v36  ;;  %v9132_v42 = vld [vmem:[#allocation5 + $0x1cc] ss:$12 sps:$4 sm:$0xff]   ;;  %v9118_v33 = vld [vmem:[#allocation5 + $0x4] ss:$12 sps:$4 sm:$0xff]   ;;  %v9138_v10 = vld [vmem:[#allocation5 + $0x1b4] ss:$12 sps:$4 sm:$0xff]  }
 0xe2c   :  { %5091 = vmatprep.subr.bf16.mxu1 %v9120_v24  ;;  %v9122_v37 = vld [vmem:[#allocation5] ss:$12 sps:$4 sm:$0xff]   ;;  %v9141_v11 = vld [vmem:[#allocation5 + $0x1b0] ss:$12 sps:$4 sm:$0xff]   ;;  %v9128_v12 = vld [vmem:[#allocation5 + $0x168] ss:$12 sps:$4 sm:$0xff]  }
 0xe2d   :  { %5051 = vmatpush1.bf16.msra.mxu0 %v9099_v55  ;;  %v9124_v40 = vld [vmem:[#allocation5 + $0x16c] ss:$12 sps:$4 sm:$0xff]   ;;  %v9144_v60 = vld [vmem:[#allocation5 + $0x19c] ss:$12 sps:$4 sm:$0xff]   ;;  %v9130_v13 = vld [vmem:[#allocation5 + $0x154] ss:$12 sps:$4 sm:$0xff]  }
 0xe2e   :  { %5052 = vmatprep.subr.bf16.mxu0 %v9100_v61  ;;  %v9147_v15 = vld [vmem:[#allocation5 + $0x198] ss:$12 sps:$4 sm:$0xff]   ;;  %v9134_v19 = vld [vmem:[#allocation5 + $0x150] ss:$12 sps:$4 sm:$0xff]   ;;  %v9153_v20 = vld [vmem:[#allocation5 + $0x180] ss:$12 sps:$4 sm:$0xff]  }
 0xe2f   :  { %5092 = vmatpush1.bf16.msra.mxu1 %v9123_v3  ;;  %v9150_v16 = vld [vmem:[#allocation5 + $0x184] ss:$12 sps:$4 sm:$0xff]   ;;  %v9136_v21 = vld [vmem:[#allocation5 + $0x13c] ss:$12 sps:$4 sm:$0xff]   ;;  %v9146_v29 = vld [vmem:[#allocation5 + $0x120] ss:$12 sps:$4 sm:$0xff]  }
 0xe30   :  { %5093 = vmatprep.subr.bf16.mxu1 %v9126_v7  ;;  %v9156_v25 = vld [vmem:[#allocation5 + $0x170] ss:$12 sps:$4 sm:$0xff]   ;;  %v9140_v23 = vld [vmem:[#allocation5 + $0x138] ss:$12 sps:$4 sm:$0xff]   ;;  %v9166_v17 = vld [vmem:[#allocation5 + $0x140] ss:$12 sps:$4 sm:$0xff]  }
 0xe31   :  { %5053 = vmatpush1.bf16.msra.mxu0 %v9102_v59  ;;  %v9142_v46 = vld [vmem:[#allocation5 + $0x124] ss:$12 sps:$4 sm:$0xff]   ;;  %v9148_v31 = vld [vmem:[#allocation5 + $0x10c] ss:$12 sps:$4 sm:$0xff]   ;;  %v9152_v34 = vld [vmem:[#allocation5 + $0x108] ss:$12 sps:$4 sm:$0xff]   ;;  %v4545_v59 = vpack.c.bf16 %v10056_v52, %v10056_v52 }
 0xe32   :  { %5054 = vmatprep.subr.bf16.mxu0 %v9103_v1  ;;  %v9158_v27 = vld [vmem:[#allocation5 + $0xb0] ss:$12 sps:$4 sm:$0xff]   ;;  %v9161_v28 = vld [vmem:[#allocation5 + $0x158] ss:$12 sps:$4 sm:$0xff]   ;;  %v9154_v35 = vld [vmem:[#allocation5 + $0xf4] ss:$12 sps:$4 sm:$0xff]  }
 0xe33   :  { %5094 = vmatpush1.bf16.msra.mxu1 %v9129_v41  ;;  %v9163_v32 = vld [vmem:[#allocation5 + $0x98] ss:$12 sps:$4 sm:$0xff]   ;;  %v9168_v22 = vld [vmem:[#allocation5 + $0x80] ss:$12 sps:$4 sm:$0xff]   ;;  %v9169_v39 = vld [vmem:[#allocation5 + $0x128] ss:$12 sps:$4 sm:$0xff]  }
 0xe34   :  { %5095 = vmatprep.subr.bf16.mxu1 %v9132_v42  ;;  %v9157_v14 = vld [vmem:[#allocation5 + $0xf0] ss:$12 sps:$4 sm:$0xff]   ;;  %v9170_v49 = vld [vmem:[#allocation5 + $0x68] ss:$12 sps:$4 sm:$0xff]   ;;  %v9162_v50 = vld [vmem:[#allocation5 + $0xd8] ss:$12 sps:$4 sm:$0xff]  }
 0xe35   :  { %5055 = vmatpush1.bf16.msra.mxu0 %v9105_v2  ;;  %v9159_v47 = vld [vmem:[#allocation5 + $0xdc] ss:$12 sps:$4 sm:$0xff]   ;;  %v9175_v55 = vld [vmem:[#allocation5 + $0xf8] ss:$12 sps:$4 sm:$0xff]   ;;  %v9167_v61 = vld [vmem:[#allocation5 + $0xc0] ss:$12 sps:$4 sm:$0xff]  }
 0xe36   :  { %5056 = vmatprep.subr.bf16.mxu0 %v9106_v4  ;;  %v9172_v48 = vld [vmem:[#allocation5 + $0x110] ss:$12 sps:$4 sm:$0xff]   ;;  %v9176_v63 = vld [vmem:[#allocation5 + $0x38] ss:$12 sps:$4 sm:$0xff]   ;;  %v9178_v58 = vld [vmem:[#allocation5 + $0xe0] ss:$12 sps:$4 sm:$0xff]  }
 0xe37   :  { %5096 = vmatpush1.bf16.msra.mxu1 %v9135_v56  ;;  %v9173_v51 = vld [vmem:[#allocation5 + $0x50] ss:$12 sps:$4 sm:$0xff]   ;;  %v9179_v36 = vld [vmem:[#allocation5 + $0x20] ss:$12 sps:$4 sm:$0xff]   ;;  %v9181_v1 = vld [vmem:[#allocation5 + $0xc8] ss:$12 sps:$4 sm:$0xff]  }
 0xe38   :  { %5097 = vmatprep.subr.bf16.mxu1 %v9138_v10  ;;  %v9171_v0 = vld [vmem:[#allocation5 + $0x230] ss:$12 sps:$4 sm:$0xff]   ;;  %v9174_v24 = vld [vmem:[#allocation5 + $0x218] ss:$12 sps:$4 sm:$0xff]   ;;  %v9182_v2 = vld [vmem:[#allocation5 + $0x8] ss:$12 sps:$4 sm:$0xff]  }
 0xe39   :  { %5057 = vmatpush1.bf16.msra.mxu0 %v9110_v8  ;;  %v9177_v3 = vld [vmem:[#allocation5 + $0x200] ss:$12 sps:$4 sm:$0xff]   ;;  %v9180_v4 = vld [vmem:[#allocation5 + $0x1e8] ss:$12 sps:$4 sm:$0xff]   ;;  %v9183_v7 = vld [vmem:[#allocation5 + $0x1d0] ss:$12 sps:$4 sm:$0xff]  }
 0xe3a   :  { %5058 = vmatprep.subr.bf16.mxu0 %v9112_v57  ;;  %v9184_v8 = vld [vmem:[#allocation5 + $0x1b8] ss:$12 sps:$4 sm:$0xff]   ;;  %v9185_v57 = vld [vmem:[#allocation5 + $0x1a0] ss:$12 sps:$4 sm:$0xff]   ;;  %v9186_v41 = vld [vmem:[#allocation5 + $0x188] ss:$12 sps:$4 sm:$0xff]  }
 0xe3b   :  { %5098 = vmatpush1.bf16.msra.mxu1 %v9141_v11 }
 0xe3c   :  { %5099 = vmatprep.subr.bf16.mxu1 %v9144_v60 }
 0xe3d   :  { %5059 = vmatpush1.bf16.msra.mxu0 %v9116_v9 }
 0xe3e   :  { %5060 = vmatprep.subr.bf16.mxu0 %v9118_v33 }
 0xe3f   :  { %5100 = vmatpush1.bf16.msra.mxu1 %v9147_v15 }
 0xe40   :  { %5101 = vmatprep.subr.bf16.mxu1 %v9150_v16  ;;  %v4645_v16 = vld [vmem:[#allocation10 + $0x5] ss:$8 sm:$0x7] }
 0xe41   :  { %5061 = vmatpush1.bf16.msra.mxu0 %v9122_v37 }
 0xe42   :  { %5062 = vmatprep.subr.bf16.mxu0 %v9124_v40 }
 0xe43   :  { %5102 = vmatpush1.bf16.msra.mxu1 %v9153_v20 }
 0xe44   :  { %8288 = vmatprep.subr.bf16.mxu1 %v9156_v25 }
 0xe45   :  { %5063 = vmatpush2.bf16.msra.mxu0 %v9128_v12 }
 0xe46   :  { %5064 = vmatprep.subr.bf16.mxu0 %v9130_v13  ;;  %5120 = vmatmul.mubr.bf16.vlgmr.msra.gmra.mxu1 %v10070_v26 }
 0xe47   :  { %8289 = vmatpush3.bf16.msra.mxu1 %v9158_v27  ;;  %5160 = vmatprep.mubr.bf16.mxu1 %v10065_v62  ;;  %v9164_v62 = vld [vmem:[#allocation5 + $0xc4] ss:$12 sps:$4 sm:$0xff]  }
 0xe48   :  { %8290 = vmatprep.subr.bf16.mxu1 %v9161_v28 }
 0xe49   :  { %5065 = vmatpush2.bf16.msra.mxu0 %v9134_v19  ;;  %v4654_v19 = vrot.slane %v4645_v16, %v9835_v6 }
 0xe4a   :  { %5066 = vmatprep.subr.bf16.mxu0 %v9136_v21 }
 0xe4b   :  { %8291 = vmatpush3.bf16.msra.mxu1 %v9163_v32 }
 0xe4c   :  { %8292 = vmatprep.subr.bf16.mxu1 %v9166_v17 }
 0xe4d   :  { %5067 = vmatpush2.bf16.msra.mxu0 %v9140_v23  ;;  %v4658_v23 = vrot.slane %v4645_v16, %v9828_v54 }
 0xe4e   :  { %5068 = vmatprep.subr.bf16.mxu0 %v9142_v46 }
 0xe4f   :  { %8293 = vmatpush3.bf16.msra.mxu1 %v9168_v22 }
 0xe50   :  { %8294 = vmatprep.subr.bf16.mxu1 %v9169_v39 }
 0xe51   :  { %5069 = vmatpush2.bf16.msra.mxu0 %v9146_v29 }
 0xe52   :  { %5070 = vmatprep.subr.bf16.mxu0 %v9148_v31 }
 0xe53   :  { %8295 = vmatpush3.bf16.msra.mxu1 %v9170_v49 }
 0xe54   :  { %8296 = vmatprep.subr.bf16.mxu1 %v9172_v48 }
 0xe55   :  { %5071 = vmatpush2.bf16.msra.mxu0 %v9152_v34 }
 0xe56   :  { %5072 = vmatprep.subr.bf16.mxu0 %v9154_v35 }
 0xe57   :  { %8297 = vmatpush3.bf16.msra.mxu1 %v9173_v51 }
 0xe58   :  { %8298 = vmatprep.subr.bf16.mxu1 %v9175_v55 }
 0xe59   :  { %5073 = vmatpush2.bf16.msra.mxu0 %v9157_v14 }
 0xe5a   :  { %5074 = vmatprep.subr.bf16.mxu0 %v9159_v47 }
 0xe5b   :  { %8299 = vmatpush3.bf16.msra.mxu1 %v9176_v63 }
 0xe5c   :  { %8300 = vmatprep.subr.bf16.mxu1 %v9178_v58 }
 0xe5d   :  { %5075 = vmatpush2.bf16.msra.mxu0 %v9162_v50 }
 0xe5e   :  { %5076 = vmatprep.subr.bf16.mxu0 %v9164_v62 }
 0xe5f   :  { %8301 = vmatpush3.bf16.msra.mxu1 %v9179_v36  ;;  %v5212_v36 = vld [vmem:[#allocation10 + $0x6] ss:$8 sm:$0x7] }
 0xe60   :  { %8302 = vmatprep.subr.bf16.mxu1 %v9181_v1  ;;  %v5214_v1 = vld [vmem:[#allocation10 + $0x7] ss:$8 sm:$0x7] }
 0xe61   :  { %5077 = vmatpush2.bf16.msra.mxu0 %v9167_v61 }
 0xe62   :  { %8403 = vmatprep.subr.bf16.mxu0 %v9733_v44 }
 0xe63   :  { %8303 = vmatpush3.bf16.msra.mxu1 %v9182_v2  ;;  %v5250_v2 = vrot.slane %v5212_v36, %v9835_v6 }
 0xe64   :  { %5079 = vmatmul.mubr.bf16.vlgmr.msra.gmra.mxu0 %v4545_v59 }
 0xe65   :  { %8404 = vmatpush3.bf16.msra.mxu0 %v9171_v0  ;;  %8419 = vmatprep.mubr.msk.bf16.mxu0 %vm9734_vm3, %v9733_v44 }
 0xe66   :  { %8405 = vmatprep.subr.bf16.mxu0 %v9733_v44  ;;  %5161 = vmatmul.mubr.bf16.vlgmr.msra.gmra.mxu1 %v4545_v59 }
 0xe69   :  { %8406 = vmatpush3.bf16.msra.mxu0 %v9174_v24  ;;  %v5246_v24 = vrot.slane %v5212_v36, %v9832_v5 }
 0xe6a   :  { %8407 = vmatprep.subr.bf16.mxu0 %v9733_v44 }
 0xe6d   :  { %8408 = vmatpush3.bf16.msra.mxu0 %v9177_v3  ;;  %v5254_v3 = vrot.slane %v5212_v36, %v9828_v54 }
 0xe6e   :  { %8409 = vmatprep.subr.bf16.mxu0 %v9733_v44 }
 0xe71   :  { %8410 = vmatpush3.bf16.msra.mxu0 %v9180_v4 }
 0xe72   :  { %8411 = vmatprep.subr.bf16.mxu0 %v9733_v44 }
 0xe75   :  { %8412 = vmatpush3.bf16.msra.mxu0 %v9183_v7  ;;  %v5269_v7 = vrot.slane %v5214_v1, %v9835_v6 }
 0xe76   :  { %8413 = vmatprep.subr.bf16.mxu0 %v9733_v44 }
 0xe79   :  { %8414 = vmatpush3.bf16.msra.mxu0 %v9184_v8  ;;  %v5273_v8 = vrot.slane %v5214_v1, %v9828_v54 }
 0xe7a   :  { %8415 = vmatprep.subr.bf16.mxu0 %v9733_v44 }
 0xe7d   :  { %8416 = vmatpush3.bf16.msra.mxu0 %v9185_v57 }
 0xe7e   :  { %8417 = vmatprep.subr.bf16.mxu0 %v9733_v44  ;;  %v4650_v44 = vrot.slane %v4645_v16, %v9832_v5 }
 0xe81   :  { %8418 = vmatpush3.bf16.msra.mxu0 %v9186_v41 }
 0xe84   :  { %8420 = vmatmul.mubr.bf16.vlgmr.msra.gmra.mxu0 %v10070_v26 }
 0xf06   :  { %v5121_v42 = vpop.f32.mrf.mxu1 }
 0xf08   :  { %v5123_v9 = vpop.f32.mrf.mxu1 }
 0xf0a   :  { %v5125_v56 = vpop.f32.mrf.mxu1 }
 0xf0c   :  { %v5126_v33 = vpop.f32.mrf.mxu1 }
 0xf24   :  { %v5080_v10 = vpop.f32.mrf.mxu0 }
 0xf25   :  { %v5081_v21 = vadd.f32 %v5080_v10, %v4650_v44 }
 0xf26   :  { %v5082_v37 = vpop.f32.mrf.mxu0  ;;  %v8304_v60 = vpop.f32.mrf.mxu1 }
 0xf27   :  { %v5083_v20 = vadd.f32 %v5082_v37, %v4654_v19  ;;  %v5122_v26 = vadd.f32 %v5121_v42, %v5081_v21 }
 0xf28   :  { %v5084_v40 = vpop.f32.mrf.mxu0  ;;  %v8305_v12 = vpop.f32.mrf.mxu1 }
 0xf29   :  { %v8306_v25 = vadd.f32 %v8305_v12, %v8304_v60  ;;  %v5124_v46 = vadd.f32 %v5123_v9, %v5083_v20  ;;  %v5208_v17 = vadd.f32 %v5122_v26, %v10056_v52 }
 0xf2a   :  { %v5085_v11 = vpop.f32.mrf.mxu0  ;;  %v8307_v13 = vpop.f32.mrf.mxu1 }
 0xf2b   :  { %v5163_v27 = vadd.f32 %v8306_v25, %v4658_v23  ;;  %v5209_v29 = vadd.f32 %v5124_v46, %v10058_v18 }
 0xf2c   :  { %v8308_v15 = vpop.f32.mrf.mxu1 }
 0xf2d   :  { %v5218_v39 = vadd.f32 %v5209_v29, %v5208_v17 }
 0xf44   :  { %v5202_v28 = vpop.f32.mrf.mxu0 }
 0xf45   :  { %v5203_v31 = vadd.f32 %v5202_v28, %v5163_v27 }
 0xf46   :  { %v8421_v32 = vpop.f32.mrf.mxu0 }
 0xf47   :  { %v5210_v34 = vadd.f32 %v5203_v31, %v10060_v43 }
 0xf48   :  { %v5205_v35 = vpop.f32.mrf.mxu0 }
 0xf49   :  { %v5217_v22 = vmul.f32 %v10046_v30, %v5210_v34 }
 0xf4a   :  { %v8422_v14 = vpop.f32.mrf.mxu0 }
 0xf4b   :  { %v5219_v47 = vadd.f32 %v5218_v39, %v5217_v22 }
 0xf4d   :  { %5220 = vadd.xlane.f32.xlu0 %v5219_v47 }
 0xfd6   :  { %v5221_v49 = vpop.xlane.xlu0 %5220 }
 0xfd7   :  { %v5222_v48 = vmul.f32 0.003030303, %v5221_v49 }
 0xfd9   :  { %v5223_v50 = vsub.f32 %v5208_v17, %v5222_v48  ;;  %v5224_v51 = vsub.f32 %v5209_v29, %v5222_v48  ;;  %v5225_v62 = vsub.f32 %v5217_v22, %v5222_v48 }
 0xfdb   :  { %v5228_v18 = vmul.f32 %v10046_v30, %v5225_v62  ;;  %v5229_v55 = vmul.f32 %v5223_v50, %v5223_v50  ;;  %v5230_v61 = vmul.f32 %v5224_v51, %v5224_v51  ;;  %v5265_v30 = vrot.slane %v5214_v1, %v9832_v5 }
 0xfdd   :  { %v5231_v63 = vmul.f32 %v5228_v18, %v5228_v18  ;;  %v5232_v52 = vadd.f32 %v5230_v61, %v5229_v55 }
 0xfdf   :  { %v5233_v58 = vadd.f32 %v5232_v52, %v5231_v63 }
 0xfe1   :  { %5234 = vadd.xlane.f32.xlu0 %v5233_v58 }
0x106a   :  { %v5235_v43 = vpop.xlane.xlu0 %5234 }
0x106b   :  { %v5236_v59 = vmul.f32 0.003030303, %v5235_v43 }
0x106d   :  { %v5237_v0 = vadd.f32 1e-05, %v5236_v59 }
0x106f   :  { %9187 = vrsqrt.f32 %v5237_v0 }
0x107c   :  { %v9188_v4 = vpop.eup %9187 }
0x107d   :  { %v5239_v57 = vmul.f32 %v9188_v4, %v5223_v50  ;;  %v5240_v41 = vmul.f32 %v9188_v4, %v5224_v51  ;;  %v5241_v42 = vmul.f32 %v9188_v4, %v5228_v18 }
0x107f   :  { %v5258_v9 = vmul.f32 %v5246_v24, %v5239_v57  ;;  %v5259_v56 = vmul.f32 %v5250_v2, %v5240_v41  ;;  %v5260_v33 = vmul.f32 %v5254_v3, %v5241_v42 }
0x1081   :  { %v10101_v10 = vadd.f32 %v5265_v30, %v5258_v9  ;;  %v5278_v37 = vadd.f32 %v5269_v7, %v5259_v56  ;;  %v10103_v40 = vadd.f32 %v5273_v8, %v5260_v33 }
0x1082   :  { %9715 = dma.done.wait [#allocation9 + $0x4], 12288 }
0x1083   :  { %9716 = vsyncadd [#allocation9 + $0x4], 4294955008  ;;  %5958 = vmatprep.mubr.bf16.mxu0 %v9732_v45  ;;  %v10106_v11 = vpack.c.bf16 %v5278_v37, %v5278_v37  ;;  %v9189_v60 = vld [vmem:[#allocation6 + $0xe4] ss:$16 sps:$4 sm:$0xff]   ;;  %v9193_v13 = vld [vmem:[#allocation6 + $0xe0] ss:$16 sps:$4 sm:$0xff]   ;;  %v10111_v52 = vpack.c.bf16 %v10103_v40, %v10103_v40 }
0x1084   :  { %v9191_v12 = vld [vmem:[#allocation6 + $0x2e4] ss:$16 sps:$4 sm:$0xff]   ;;  %5885 = vmatprep.subr.bf16.mxu1 %v9189_v60  ;;  %v9194_v15 = vld [vmem:[#allocation6 + $0x2e0] ss:$16 sps:$4 sm:$0xff]   ;;  %v9241_v63 = vld [vmem:[#allocation6 + $0xec] ss:$16 sps:$4 sm:$0xff]  }
0x1085   :  { %5917 = vmatprep.mubr.bf16.mxu1 %v10106_v11  ;;  %5926 = vmatprep.subr.bf16.mxu0 %v9191_v12  ;;  %v9195_v16 = vld [vmem:[#allocation6 + $0xc4] ss:$16 sps:$4 sm:$0xff]   ;;  %v9199_v44 = vld [vmem:[#allocation6 + $0xc0] ss:$16 sps:$4 sm:$0xff]   ;;  %v9239_v58 = vld [vmem:[#allocation6 + $0xe8] ss:$16 sps:$4 sm:$0xff]  }
0x1086   :  { %5886 = vmatpush1.bf16.msra.mxu1 %v9193_v13  ;;  %5927 = vmatpush1.bf16.msra.mxu0 %v9194_v15  ;;  %v9197_v19 = vld [vmem:[#allocation6 + $0x2c4] ss:$16 sps:$4 sm:$0xff]   ;;  %v9200_v20 = vld [vmem:[#allocation6 + $0x2c0] ss:$16 sps:$4 sm:$0xff]   ;;  %v9247_v0 = vld [vmem:[#allocation6 + $0xcc] ss:$16 sps:$4 sm:$0xff]  }
0x1087   :  { %5887 = vmatprep.subr.bf16.mxu1 %v9195_v16  ;;  %5928 = vmatprep.subr.bf16.mxu0 %v9197_v19  ;;  %v9201_v21 = vld [vmem:[#allocation6 + $0xa4] ss:$16 sps:$4 sm:$0xff]   ;;  %v9205_v23 = vld [vmem:[#allocation6 + $0xa0] ss:$16 sps:$4 sm:$0xff]   ;;  %v9245_v36 = vld [vmem:[#allocation6 + $0xc8] ss:$16 sps:$4 sm:$0xff]  }
0x1088   :  { %v9203_v25 = vld [vmem:[#allocation6 + $0x2a4] ss:$16 sps:$4 sm:$0xff]   ;;  %v9206_v46 = vld [vmem:[#allocation6 + $0x2a0] ss:$16 sps:$4 sm:$0xff]   ;;  %v9253_v2 = vld [vmem:[#allocation6 + $0xac] ss:$16 sps:$4 sm:$0xff]  }
0x1089   :  { %v9207_v26 = vld [vmem:[#allocation6 + $0x84] ss:$16 sps:$4 sm:$0xff]   ;;  %v9211_v28 = vld [vmem:[#allocation6 + $0x80] ss:$16 sps:$4 sm:$0xff]   ;;  %v9251_v3 = vld [vmem:[#allocation6 + $0xa8] ss:$16 sps:$4 sm:$0xff]  }
0x108a   :  { %5888 = vmatpush1.bf16.msra.mxu1 %v9199_v44  ;;  %5929 = vmatpush1.bf16.msra.mxu0 %v9200_v20  ;;  %v9209_v27 = vld [vmem:[#allocation6 + $0x284] ss:$16 sps:$4 sm:$0xff]   ;;  %v9212_v29 = vld [vmem:[#allocation6 + $0x280] ss:$16 sps:$4 sm:$0xff]   ;;  %v9259_v7 = vld [vmem:[#allocation6 + $0x8c] ss:$16 sps:$4 sm:$0xff]  }
0x108b   :  { %5889 = vmatprep.subr.bf16.mxu1 %v9201_v21  ;;  %5930 = vmatprep.subr.bf16.mxu0 %v9203_v25  ;;  %v9213_v31 = vld [vmem:[#allocation6 + $0x64] ss:$16 sps:$4 sm:$0xff]   ;;  %v9217_v17 = vld [vmem:[#allocation6 + $0x60] ss:$16 sps:$4 sm:$0xff]   ;;  %v9257_v8 = vld [vmem:[#allocation6 + $0x88] ss:$16 sps:$4 sm:$0xff]  }
0x108c   :  { %v9215_v32 = vld [vmem:[#allocation6 + $0x264] ss:$16 sps:$4 sm:$0xff]   ;;  %v9218_v34 = vld [vmem:[#allocation6 + $0x260] ss:$16 sps:$4 sm:$0xff]   ;;  %v9265_v42 = vld [vmem:[#allocation6 + $0x6c] ss:$16 sps:$4 sm:$0xff]  }
0x108d   :  { %v9219_v35 = vld [vmem:[#allocation6 + $0x44] ss:$16 sps:$4 sm:$0xff]   ;;  %v9223_v39 = vld [vmem:[#allocation6 + $0x40] ss:$16 sps:$4 sm:$0xff]   ;;  %v9263_v9 = vld [vmem:[#allocation6 + $0x68] ss:$16 sps:$4 sm:$0xff]  }
0x108e   :  { %5890 = vmatpush1.bf16.msra.mxu1 %v9205_v23  ;;  %5931 = vmatpush1.bf16.msra.mxu0 %v9206_v46  ;;  %v9221_v22 = vld [vmem:[#allocation6 + $0x244] ss:$16 sps:$4 sm:$0xff]   ;;  %v9224_v14 = vld [vmem:[#allocation6 + $0x240] ss:$16 sps:$4 sm:$0xff]   ;;  %v9271_v37 = vld [vmem:[#allocation6 + $0x4c] ss:$16 sps:$4 sm:$0xff]   ;;  %v10117_v23 = vpack.c.bf16 %v10101_v10, %v10101_v10 }
0x108f   :  { %5891 = vmatprep.subr.bf16.mxu1 %v9207_v26  ;;  %5932 = vmatprep.subr.bf16.mxu0 %v9209_v27  ;;  %v9225_v47 = vld [vmem:[#allocation6 + $0x24] ss:$16 sps:$4 sm:$0xff]   ;;  %v9229_v48 = vld [vmem:[#allocation6 + $0x20] ss:$16 sps:$4 sm:$0xff]   ;;  %v9269_v40 = vld [vmem:[#allocation6 + $0x48] ss:$16 sps:$4 sm:$0xff]  }
0x1090   :  { %v9227_v49 = vld [vmem:[#allocation6 + $0x224] ss:$16 sps:$4 sm:$0xff]   ;;  %v9230_v50 = vld [vmem:[#allocation6 + $0x220] ss:$16 sps:$4 sm:$0xff]   ;;  %v9277_v12 = vld [vmem:[#allocation6 + $0x2c] ss:$16 sps:$4 sm:$0xff]  }
0x1091   :  { %v9231_v51 = vld [vmem:[#allocation6 + $0x4] ss:$16 sps:$4 sm:$0xff]   ;;  %v9235_v18 = vld [vmem:[#allocation6] ss:$16 sps:$4 sm:$0xff]   ;;  %v9275_v13 = vld [vmem:[#allocation6 + $0x28] ss:$16 sps:$4 sm:$0xff]  }
0x1092   :  { %5892 = vmatpush1.bf16.msra.mxu1 %v9211_v28  ;;  %5933 = vmatpush1.bf16.msra.mxu0 %v9212_v29  ;;  %v9233_v62 = vld [vmem:[#allocation6 + $0x204] ss:$16 sps:$4 sm:$0xff]   ;;  %v9236_v55 = vld [vmem:[#allocation6 + $0x200] ss:$16 sps:$4 sm:$0xff]   ;;  %v9283_v19 = vld [vmem:[#allocation6 + $0xc] ss:$16 sps:$4 sm:$0xff]  }
0x1093   :  { %5893 = vmatprep.subr.bf16.mxu1 %v9213_v31  ;;  %5934 = vmatprep.subr.bf16.mxu0 %v9215_v32  ;;  %v9237_v61 = vld [vmem:[#allocation6 + $0x1e4] ss:$16 sps:$4 sm:$0xff]   ;;  %v9242_v43 = vld [vmem:[#allocation6 + $0x1e0] ss:$16 sps:$4 sm:$0xff]   ;;  %v9281_v44 = vld [vmem:[#allocation6 + $0x8] ss:$16 sps:$4 sm:$0xff]  }
0x1094   :  { %v9243_v59 = vld [vmem:[#allocation6 + $0x1c4] ss:$16 sps:$4 sm:$0xff]   ;;  %v9248_v1 = vld [vmem:[#allocation6 + $0x1c0] ss:$16 sps:$4 sm:$0xff]   ;;  %v9287_v21 = vld [vmem:[#allocation6 + $0x1ec] ss:$16 sps:$4 sm:$0xff]  }
0x1095   :  { %v9249_v24 = vld [vmem:[#allocation6 + $0x1a4] ss:$16 sps:$4 sm:$0xff]   ;;  %v9254_v4 = vld [vmem:[#allocation6 + $0x1a0] ss:$16 sps:$4 sm:$0xff]   ;;  %v9290_v25 = vld [vmem:[#allocation6 + $0x2ec] ss:$16 sps:$4 sm:$0xff]  }
0x1096   :  { %5894 = vmatpush1.bf16.msra.mxu1 %v9217_v17  ;;  %5935 = vmatpush1.bf16.msra.mxu0 %v9218_v34  ;;  %v9255_v30 = vld [vmem:[#allocation6 + $0x184] ss:$16 sps:$4 sm:$0xff]   ;;  %v9260_v57 = vld [vmem:[#allocation6 + $0x180] ss:$16 sps:$4 sm:$0xff]   ;;  %v9285_v46 = vld [vmem:[#allocation6 + $0x1e8] ss:$16 sps:$4 sm:$0xff]  }
0x1097   :  { %5895 = vmatprep.subr.bf16.mxu1 %v9219_v35  ;;  %5936 = vmatprep.subr.bf16.mxu0 %v9221_v22  ;;  %v9261_v41 = vld [vmem:[#allocation6 + $0x164] ss:$16 sps:$4 sm:$0xff]   ;;  %v9266_v56 = vld [vmem:[#allocation6 + $0x160] ss:$16 sps:$4 sm:$0xff]   ;;  %v9288_v26 = vld [vmem:[#allocation6 + $0x2e8] ss:$16 sps:$4 sm:$0xff]  }
0x1098   :  { %v9267_v33 = vld [vmem:[#allocation6 + $0x144] ss:$16 sps:$4 sm:$0xff]   ;;  %v9278_v15 = vld [vmem:[#allocation6 + $0x120] ss:$16 sps:$4 sm:$0xff]   ;;  %v9293_v27 = vld [vmem:[#allocation6 + $0x1cc] ss:$16 sps:$4 sm:$0xff]  }
0x1099   :  { %v9273_v60 = vld [vmem:[#allocation6 + $0x124] ss:$16 sps:$4 sm:$0xff]   ;;  %v9284_v20 = vld [vmem:[#allocation6 + $0x100] ss:$16 sps:$4 sm:$0xff]   ;;  %v9296_v28 = vld [vmem:[#allocation6 + $0x2cc] ss:$16 sps:$4 sm:$0xff]  }
0x109a   :  { %5896 = vmatpush1.bf16.msra.mxu1 %v9223_v39  ;;  %5937 = vmatpush1.bf16.msra.mxu0 %v9224_v14  ;;  %v9279_v16 = vld [vmem:[#allocation6 + $0x104] ss:$16 sps:$4 sm:$0xff]   ;;  %v9291_v29 = vld [vmem:[#allocation6 + $0x1c8] ss:$16 sps:$4 sm:$0xff]   ;;  %v9299_v32 = vld [vmem:[#allocation6 + $0x1ac] ss:$16 sps:$4 sm:$0xff]  }
0x109b   :  { %5897 = vmatprep.subr.bf16.mxu1 %v9225_v47  ;;  %5938 = vmatprep.subr.bf16.mxu0 %v9227_v49  ;;  %v9294_v31 = vld [vmem:[#allocation6 + $0x2c8] ss:$16 sps:$4 sm:$0xff]   ;;  %v9302_v17 = vld [vmem:[#allocation6 + $0x2ac] ss:$16 sps:$4 sm:$0xff]  }
0x109c   :  { %v9297_v10 = vld [vmem:[#allocation6 + $0x1a8] ss:$16 sps:$4 sm:$0xff]   ;;  %v9305_v35 = vld [vmem:[#allocation6 + $0x18c] ss:$16 sps:$4 sm:$0xff]  }
0x109d   :  { %v9300_v34 = vld [vmem:[#allocation6 + $0x2a8] ss:$16 sps:$4 sm:$0xff]   ;;  %v9308_v22 = vld [vmem:[#allocation6 + $0x28c] ss:$16 sps:$4 sm:$0xff]  }
0x109e   :  { %5898 = vmatpush1.bf16.msra.mxu1 %v9229_v48  ;;  %5939 = vmatpush1.bf16.msra.mxu0 %v9230_v50  ;;  %v9303_v39 = vld [vmem:[#allocation6 + $0x188] ss:$16 sps:$4 sm:$0xff]   ;;  %v9311_v47 = vld [vmem:[#allocation6 + $0x16c] ss:$16 sps:$4 sm:$0xff]  }
0x109f   :  { %5899 = vmatprep.subr.bf16.mxu1 %v9231_v51  ;;  %5940 = vmatprep.subr.bf16.mxu0 %v9233_v62  ;;  %v9306_v14 = vld [vmem:[#allocation6 + $0x288] ss:$16 sps:$4 sm:$0xff]   ;;  %v9314_v49 = vld [vmem:[#allocation6 + $0x26c] ss:$16 sps:$4 sm:$0xff]  }
0x10a0   :  { %v9309_v48 = vld [vmem:[#allocation6 + $0x168] ss:$16 sps:$4 sm:$0xff]   ;;  %v9317_v51 = vld [vmem:[#allocation6 + $0x14c] ss:$16 sps:$4 sm:$0xff]  }
0x10a1   :  { %v9312_v50 = vld [vmem:[#allocation6 + $0x268] ss:$16 sps:$4 sm:$0xff]   ;;  %v9320_v62 = vld [vmem:[#allocation6 + $0x24c] ss:$16 sps:$4 sm:$0xff]  }
0x10a2   :  { %5900 = vmatpush1.bf16.msra.mxu1 %v9235_v18  ;;  %5941 = vmatpush1.bf16.msra.mxu0 %v9236_v55  ;;  %v9315_v18 = vld [vmem:[#allocation6 + $0x148] ss:$16 sps:$4 sm:$0xff]  }
0x10a3   :  { %5901 = vmatprep.subr.bf16.mxu1 %v9237_v61  ;;  %5967 = vmatprep.subr.bf16.mxu0 %v9241_v63  ;;  %v9318_v55 = vld [vmem:[#allocation6 + $0x248] ss:$16 sps:$4 sm:$0xff]   ;;  %v9323_v61 = vld [vmem:[#allocation6 + $0x12c] ss:$16 sps:$4 sm:$0xff]  }
0x10a4   :  { %v9326_v63 = vld [vmem:[#allocation6 + $0x22c] ss:$16 sps:$4 sm:$0xff]  }
0x10a5   :  { %5959 = vmatmul.mubr.bf16.vlgmr.msra.gmra.mxu0 %v10111_v52 }
0x10a6   :  { %5902 = vmatpush2.bf16.msra.mxu1 %v9242_v43  ;;  %5968 = vmatpush1.bf16.msra.mxu0 %v9239_v58  ;;  %v9321_v58 = vld [vmem:[#allocation6 + $0x128] ss:$16 sps:$4 sm:$0xff]  }
0x10a7   :  { %5903 = vmatprep.subr.bf16.mxu1 %v9243_v59  ;;  %5969 = vmatprep.subr.bf16.mxu0 %v9247_v0  ;;  %v9324_v43 = vld [vmem:[#allocation6 + $0x228] ss:$16 sps:$4 sm:$0xff]   ;;  %v9329_v59 = vld [vmem:[#allocation6 + $0x10c] ss:$16 sps:$4 sm:$0xff]  }
0x10a8   :  { %5999 = vmatprep.mubr.bf16.mxu0 %v10106_v11  ;;  %v9272_v11 = vld [vmem:[#allocation6 + $0x140] ss:$16 sps:$4 sm:$0xff]   ;;  %v9332_v0 = vld [vmem:[#allocation6 + $0x20c] ss:$16 sps:$4 sm:$0xff]  }
0x10aa   :  { %5904 = vmatpush2.bf16.msra.mxu1 %v9248_v1  ;;  %5970 = vmatpush1.bf16.msra.mxu0 %v9245_v36  ;;  %v9327_v36 = vld [vmem:[#allocation6 + $0x108] ss:$16 sps:$4 sm:$0xff]  }
0x10ab   :  { %5905 = vmatprep.subr.bf16.mxu1 %v9249_v24  ;;  %5971 = vmatprep.subr.bf16.mxu0 %v9253_v2  ;;  %v9330_v1 = vld [vmem:[#allocation6 + $0x208] ss:$16 sps:$4 sm:$0xff]  }
0x10ae   :  { %5906 = vmatpush2.bf16.msra.mxu1 %v9254_v4  ;;  %5972 = vmatpush1.bf16.msra.mxu0 %v9251_v3 }
0x10af   :  { %5907 = vmatprep.subr.bf16.mxu1 %v9255_v30  ;;  %5973 = vmatprep.subr.bf16.mxu0 %v9259_v7  ;;  %v5383_v30 = vld [vmem:[#allocation10 + $0x20] ss:$8 sm:$0xf] }
0x10b0   :  { %v5388_v7 = vrot.slane %v5383_v30, %v9832_v5 }
0x10b2   :  { %5908 = vmatpush2.bf16.msra.mxu1 %v9260_v57  ;;  %5974 = vmatpush1.bf16.msra.mxu0 %v9257_v8  ;;  %v5392_v8 = vrot.slane %v5383_v30, %v9835_v6 }
0x10b3   :  { %5909 = vmatprep.subr.bf16.mxu1 %v9261_v41  ;;  %5975 = vmatprep.subr.bf16.mxu0 %v9265_v42 }
0x10b6   :  { %5910 = vmatpush2.bf16.msra.mxu1 %v9266_v56  ;;  %5976 = vmatpush1.bf16.msra.mxu0 %v9263_v9 }
0x10b7   :  { %5911 = vmatprep.subr.bf16.mxu1 %v9267_v33  ;;  %5977 = vmatprep.subr.bf16.mxu0 %v9271_v37 }
0x10ba   :  { %5912 = vmatpush2.bf16.msra.mxu1 %v9272_v11  ;;  %5978 = vmatpush1.bf16.msra.mxu0 %v9269_v40  ;;  %v5399_v40 = vsub.s32 3, %v9825_v53  ;;  %v5396_v11 = vrot.slane %v5383_v30, %v9828_v54 }
0x10bb   :  { %5913 = vmatprep.subr.bf16.mxu1 %v9273_v60  ;;  %5979 = vmatprep.subr.bf16.mxu0 %v9277_v12 }
0x10bc   :  { %v5400_v60 = vrot.slane %v5383_v30, %v5399_v40 }
0x10be   :  { %5914 = vmatpush2.bf16.msra.mxu1 %v9278_v15  ;;  %5980 = vmatpush1.bf16.msra.mxu0 %v9275_v13 }
0x10bf   :  { %5915 = vmatprep.subr.bf16.mxu1 %v9279_v16  ;;  %5981 = vmatprep.subr.bf16.mxu0 %v9283_v19 }
0x10c2   :  { %5916 = vmatpush2.bf16.msra.mxu1 %v9284_v20  ;;  %5982 = vmatpush1.bf16.msra.mxu0 %v9281_v44 }
0x10c3   :  { %5983 = vmatprep.subr.bf16.mxu0 %v9287_v21  ;;  %6008 = vmatprep.subr.bf16.mxu1 %v9290_v25 }
0x10c5   :  { %5918 = vmatmul.mubr.bf16.vlgmr.msra.gmra.mxu1 %v10117_v23 }
0x10c6   :  { %5984 = vmatpush2.bf16.msra.mxu0 %v9285_v46  ;;  %6009 = vmatpush1.bf16.msra.mxu1 %v9288_v26 }
0x10c7   :  { %5985 = vmatprep.subr.bf16.mxu0 %v9293_v27  ;;  %6010 = vmatprep.subr.bf16.mxu1 %v9296_v28 }
0x10c8   :  { %6040 = vmatprep.mubr.bf16.mxu1 %v9732_v45 }
0x10ca   :  { %5986 = vmatpush2.bf16.msra.mxu0 %v9291_v29  ;;  %6011 = vmatpush1.bf16.msra.mxu1 %v9294_v31 }
0x10cb   :  { %5987 = vmatprep.subr.bf16.mxu0 %v9299_v32  ;;  %6012 = vmatprep.subr.bf16.mxu1 %v9302_v17 }
0x10ce   :  { %5988 = vmatpush2.bf16.msra.mxu0 %v9297_v10  ;;  %6013 = vmatpush1.bf16.msra.mxu1 %v9300_v34 }
0x10cf   :  { %5989 = vmatprep.subr.bf16.mxu0 %v9305_v35  ;;  %6014 = vmatprep.subr.bf16.mxu1 %v9308_v22 }
0x10d2   :  { %5990 = vmatpush2.bf16.msra.mxu0 %v9303_v39  ;;  %6015 = vmatpush1.bf16.msra.mxu1 %v9306_v14 }
0x10d3   :  { %5991 = vmatprep.subr.bf16.mxu0 %v9311_v47  ;;  %6016 = vmatprep.subr.bf16.mxu1 %v9314_v49 }
0x10d6   :  { %5992 = vmatpush2.bf16.msra.mxu0 %v9309_v48  ;;  %6017 = vmatpush1.bf16.msra.mxu1 %v9312_v50 }
0x10d7   :  { %5993 = vmatprep.subr.bf16.mxu0 %v9317_v51  ;;  %6018 = vmatprep.subr.bf16.mxu1 %v9320_v62 }
0x10da   :  { %5994 = vmatpush2.bf16.msra.mxu0 %v9315_v18  ;;  %6019 = vmatpush1.bf16.msra.mxu1 %v9318_v55 }
0x10db   :  { %5995 = vmatprep.subr.bf16.mxu0 %v9323_v61  ;;  %6020 = vmatprep.subr.bf16.mxu1 %v9326_v63 }
0x10de   :  { %5996 = vmatpush2.bf16.msra.mxu0 %v9321_v58  ;;  %6021 = vmatpush1.bf16.msra.mxu1 %v9324_v43 }
0x10df   :  { %5997 = vmatprep.subr.bf16.mxu0 %v9329_v59  ;;  %6022 = vmatprep.subr.bf16.mxu1 %v9332_v0 }
0x10e2   :  { %5998 = vmatpush2.bf16.msra.mxu0 %v9327_v36  ;;  %6023 = vmatpush1.bf16.msra.mxu1 %v9330_v1 }
0x10e5   :  { %6000 = vmatmul.mubr.bf16.vlgmr.msra.gmra.mxu0 %v10117_v23  ;;  %6041 = vmatmul.mubr.bf16.vlgmr.msra.gmra.mxu1 %v10111_v52 }
0x1165   :  { %v5960_v24 = vpop.f32.mrf.mxu0 }
0x1167   :  { %v5962_v2 = vpop.f32.mrf.mxu0 }
0x1169   :  { %v5964_v3 = vpop.f32.mrf.mxu0 }
0x116b   :  { %v5965_v4 = vpop.f32.mrf.mxu0 }
0x1185   :  { %v5919_v57 = vpop.f32.mrf.mxu1 }
0x1186   :  { %v5920_v41 = vadd.f32 %v5919_v57, %v5388_v7 }
0x1187   :  { %v5921_v42 = vpop.f32.mrf.mxu1 }
0x1188   :  { %v10125_v9 = vadd.f32 %v5960_v24, %v5920_v41  ;;  %v5922_v56 = vadd.f32 %v5921_v42, %v5392_v8 }
0x1189   :  { %v5923_v33 = vpop.f32.mrf.mxu1 }
0x118a   :  { %6049 = vst [vmem:[%s10219_s9] sm:$0xff] %v10125_v9  ;;  %v5963_v52 = vadd.f32 %v5962_v2, %v5922_v56 }
0x118b   :  { %v5924_v37 = vpop.f32.mrf.mxu1 }
0x118c   :  { %6050 = vst [vmem:[%s10219_s9 + $0x8] sm:$0xff] %v5963_v52 }
0x11a5   :  { %v6001_v12 = vpop.f32.mrf.mxu0  ;;  %v6042_v13 = vpop.f32.mrf.mxu1 }
0x11a6   :  { %v6002_v15 = vadd.f32 %v6001_v12, %v5396_v11 }
0x11a7   :  { %v6003_v16 = vpop.f32.mrf.mxu0  ;;  %v6044_v19 = vpop.f32.mrf.mxu1 }
0x11a8   :  { %v10136_v44 = vadd.f32 %v6042_v13, %v6002_v15  ;;  %v6004_v20 = vadd.f32 %v6003_v16, %v5400_v60 }
0x11a9   :  { %v6005_v21 = vpop.f32.mrf.mxu0  ;;  %v6046_v25 = vpop.f32.mrf.mxu1 }
0x11aa   :  { %6051 = vst [vmem:[%s10219_s9 + $0x10] sm:$0xff] %v10136_v44  ;;  %v6045_v23 = vadd.f32 %v6044_v19, %v6004_v20 }
0x11ab   :  { %v6006_v53 = vpop.f32.mrf.mxu0  ;;  %v6047_v46 = vpop.f32.mrf.mxu1 }
0x11ac   :  { %6052 = vst [vmem:[%s10219_s9 + $0x18] sm:$0xff] %v6045_v23 }
0x11ad   :  { %9717 = dma.done.wait [#allocation9 + $0x5], 12288 }
0x11ae   :  { %9718 = vsyncadd [#allocation9 + $0x5], 4294955008  ;;  %v10145_v26 = vpack.c.bf16 %v5963_v52, %v5963_v52  ;;  %v10147_v27 = vpack.c.bf16 %v6045_v23, %v6045_v23  ;;  %v9333_v28 = vld [vmem:[#allocation7 + $0xac] ss:$12 sps:$4 sm:$0xff]   ;;  %v9337_v31 = vld [vmem:[#allocation7 + $0xa8] ss:$12 sps:$4 sm:$0xff]  }
0x11af   :  { %v9335_v29 = vld [vmem:[#allocation7 + $0x22c] ss:$12 sps:$4 sm:$0xff]   ;;  %6717 = vmatprep.subr.bf16.mxu1 %v9333_v28  ;;  %v9338_v32 = vld [vmem:[#allocation7 + $0x228] ss:$12 sps:$4 sm:$0xff]   ;;  %v9343_v34 = vld [vmem:[#allocation7 + $0x90] ss:$12 sps:$4 sm:$0xff]  }
0x11b0   :  { %6749 = vmatprep.mubr.bf16.mxu1 %v10145_v26  ;;  %6790 = vmatprep.mubr.bf16.mxu0 %v10147_v27  ;;  %v9339_v17 = vld [vmem:[#allocation7 + $0x94] ss:$12 sps:$4 sm:$0xff]   ;;  %v9344_v35 = vld [vmem:[#allocation7 + $0x210] ss:$12 sps:$4 sm:$0xff]   ;;  %v9349_v14 = vld [vmem:[#allocation7 + $0x78] ss:$12 sps:$4 sm:$0xff]  }
0x11b1   :  { %6758 = vmatprep.subr.bf16.mxu0 %v9335_v29  ;;  %6718 = vmatpush1.bf16.msra.mxu1 %v9337_v31  ;;  %v9341_v10 = vld [vmem:[#allocation7 + $0x214] ss:$12 sps:$4 sm:$0xff]   ;;  %v9345_v22 = vld [vmem:[#allocation7 + $0x7c] ss:$12 sps:$4 sm:$0xff]   ;;  %v9350_v47 = vld [vmem:[#allocation7 + $0x1f8] ss:$12 sps:$4 sm:$0xff]  }
0x11b2   :  { %6759 = vmatpush1.bf16.msra.mxu0 %v9338_v32  ;;  %6719 = vmatprep.subr.bf16.mxu1 %v9339_v17  ;;  %v9347_v39 = vld [vmem:[#allocation7 + $0x1fc] ss:$12 sps:$4 sm:$0xff]   ;;  %v9351_v49 = vld [vmem:[#allocation7 + $0x64] ss:$12 sps:$4 sm:$0xff]   ;;  %v9355_v50 = vld [vmem:[#allocation7 + $0x60] ss:$12 sps:$4 sm:$0xff]  }
0x11b3   :  { %6760 = vmatprep.subr.bf16.mxu0 %v9341_v10  ;;  %v9353_v48 = vld [vmem:[#allocation7 + $0x1e4] ss:$12 sps:$4 sm:$0xff]   ;;  %v9356_v51 = vld [vmem:[#allocation7 + $0x1e0] ss:$12 sps:$4 sm:$0xff]   ;;  %v9361_v55 = vld [vmem:[#allocation7 + $0x48] ss:$12 sps:$4 sm:$0xff]  }
0x11b4   :  { %v9357_v62 = vld [vmem:[#allocation7 + $0x4c] ss:$12 sps:$4 sm:$0xff]   ;;  %v9362_v61 = vld [vmem:[#allocation7 + $0x1c8] ss:$12 sps:$4 sm:$0xff]   ;;  %v9367_v43 = vld [vmem:[#allocation7 + $0x30] ss:$12 sps:$4 sm:$0xff]  }
0x11b5   :  { %6720 = vmatpush1.bf16.msra.mxu1 %v9343_v34  ;;  %v9359_v18 = vld [vmem:[#allocation7 + $0x1cc] ss:$12 sps:$4 sm:$0xff]   ;;  %v9363_v63 = vld [vmem:[#allocation7 + $0x34] ss:$12 sps:$4 sm:$0xff]   ;;  %v9368_v59 = vld [vmem:[#allocation7 + $0x1b0] ss:$12 sps:$4 sm:$0xff]  }
0x11b6   :  { %6761 = vmatpush1.bf16.msra.mxu0 %v9344_v35  ;;  %6721 = vmatprep.subr.bf16.mxu1 %v9345_v22  ;;  %v9365_v58 = vld [vmem:[#allocation7 + $0x1b4] ss:$12 sps:$4 sm:$0xff]   ;;  %v9369_v0 = vld [vmem:[#allocation7 + $0x1c] ss:$12 sps:$4 sm:$0xff]   ;;  %v9373_v1 = vld [vmem:[#allocation7 + $0x18] ss:$12 sps:$4 sm:$0xff]  }
0x11b7   :  { %6762 = vmatprep.subr.bf16.mxu0 %v9347_v39  ;;  %v9371_v36 = vld [vmem:[#allocation7 + $0x19c] ss:$12 sps:$4 sm:$0xff]   ;;  %v9374_v24 = vld [vmem:[#allocation7 + $0x198] ss:$12 sps:$4 sm:$0xff]   ;;  %v9379_v4 = vld [vmem:[#allocation7] ss:$12 sps:$4 sm:$0xff]  }
0x11b8   :  { %v9375_v2 = vld [vmem:[#allocation7 + $0x4] ss:$12 sps:$4 sm:$0xff]   ;;  %v9380_v30 = vld [vmem:[#allocation7 + $0x180] ss:$12 sps:$4 sm:$0xff]   ;;  %v9385_v57 = vld [vmem:[#allocation7 + $0x168] ss:$12 sps:$4 sm:$0xff]  }
0x11b9   :  { %6722 = vmatpush1.bf16.msra.mxu1 %v9349_v14  ;;  %v9377_v3 = vld [vmem:[#allocation7 + $0x184] ss:$12 sps:$4 sm:$0xff]   ;;  %v9381_v7 = vld [vmem:[#allocation7 + $0x16c] ss:$12 sps:$4 sm:$0xff]   ;;  %v9386_v41 = vld [vmem:[#allocation7 + $0x2e8] ss:$12 sps:$4 sm:$0xff]  }
0x11ba   :  { %6763 = vmatpush1.bf16.msra.mxu0 %v9350_v47  ;;  %6723 = vmatprep.subr.bf16.mxu1 %v9351_v49  ;;  %v9383_v8 = vld [vmem:[#allocation7 + $0x2ec] ss:$12 sps:$4 sm:$0xff]   ;;  %v9387_v42 = vld [vmem:[#allocation7 + $0x154] ss:$12 sps:$4 sm:$0xff]   ;;  %v9391_v33 = vld [vmem:[#allocation7 + $0x150] ss:$12 sps:$4 sm:$0xff]   ;;  %v10153_v49 = vpack.c.bf16 %v10125_v9, %v10125_v9 }
0x11bb   :  { %6764 = vmatprep.subr.bf16.mxu0 %v9353_v48  ;;  %v9389_v56 = vld [vmem:[#allocation7 + $0x2d4] ss:$12 sps:$4 sm:$0xff]   ;;  %v9392_v52 = vld [vmem:[#allocation7 + $0x2d0] ss:$12 sps:$4 sm:$0xff]   ;;  %v9397_v11 = vld [vmem:[#allocation7 + $0x138] ss:$12 sps:$4 sm:$0xff]   ;;  %v10157_v48 = vpack.c.bf16 %v10136_v44, %v10136_v44 }
0x11bc   :  { %v9393_v37 = vld [vmem:[#allocation7 + $0x13c] ss:$12 sps:$4 sm:$0xff]   ;;  %v9398_v60 = vld [vmem:[#allocation7 + $0x2b8] ss:$12 sps:$4 sm:$0xff]   ;;  %v9403_v15 = vld [vmem:[#allocation7 + $0x120] ss:$12 sps:$4 sm:$0xff]  }
0x11bd   :  { %6724 = vmatpush1.bf16.msra.mxu1 %v9355_v50  ;;  %v9395_v40 = vld [vmem:[#allocation7 + $0x2bc] ss:$12 sps:$4 sm:$0xff]   ;;  %v9399_v12 = vld [vmem:[#allocation7 + $0x124] ss:$12 sps:$4 sm:$0xff]   ;;  %v9404_v16 = vld [vmem:[#allocation7 + $0x2a0] ss:$12 sps:$4 sm:$0xff]  }
0x11be   :  { %6765 = vmatpush1.bf16.msra.mxu0 %v9356_v51  ;;  %6725 = vmatprep.subr.bf16.mxu1 %v9357_v62  ;;  %v9401_v13 = vld [vmem:[#allocation7 + $0x2a4] ss:$12 sps:$4 sm:$0xff]   ;;  %v9405_v19 = vld [vmem:[#allocation7 + $0x10c] ss:$12 sps:$4 sm:$0xff]   ;;  %v9409_v21 = vld [vmem:[#allocation7 + $0x108] ss:$12 sps:$4 sm:$0xff]  }
0x11bf   :  { %6766 = vmatprep.subr.bf16.mxu0 %v9359_v18  ;;  %v9407_v20 = vld [vmem:[#allocation7 + $0x28c] ss:$12 sps:$4 sm:$0xff]   ;;  %v9410_v25 = vld [vmem:[#allocation7 + $0x288] ss:$12 sps:$4 sm:$0xff]   ;;  %v9415_v46 = vld [vmem:[#allocation7 + $0xf0] ss:$12 sps:$4 sm:$0xff]  }
0x11c0   :  { %v9411_v23 = vld [vmem:[#allocation7 + $0xf4] ss:$12 sps:$4 sm:$0xff]   ;;  %v9416_v28 = vld [vmem:[#allocation7 + $0x270] ss:$12 sps:$4 sm:$0xff]   ;;  %v9421_v32 = vld [vmem:[#allocation7 + $0xd8] ss:$12 sps:$4 sm:$0xff]  }
0x11c1   :  { %6726 = vmatpush1.bf16.msra.mxu1 %v9361_v55  ;;  %v9413_v53 = vld [vmem:[#allocation7 + $0x274] ss:$12 sps:$4 sm:$0xff]   ;;  %v9417_v29 = vld [vmem:[#allocation7 + $0xdc] ss:$12 sps:$4 sm:$0xff]   ;;  %v9422_v17 = vld [vmem:[#allocation7 + $0x258] ss:$12 sps:$4 sm:$0xff]  }
0x11c2   :  { %6767 = vmatpush1.bf16.msra.mxu0 %v9362_v61  ;;  %6727 = vmatprep.subr.bf16.mxu1 %v9363_v63  ;;  %v9419_v31 = vld [vmem:[#allocation7 + $0x25c] ss:$12 sps:$4 sm:$0xff]   ;;  %v9423_v10 = vld [vmem:[#allocation7 + $0xc4] ss:$12 sps:$4 sm:$0xff]   ;;  %v9427_v35 = vld [vmem:[#allocation7 + $0xc0] ss:$12 sps:$4 sm:$0xff]  }
0x11c3   :  { %6768 = vmatprep.subr.bf16.mxu0 %v9365_v58  ;;  %v9425_v34 = vld [vmem:[#allocation7 + $0x244] ss:$12 sps:$4 sm:$0xff]   ;;  %v9428_v22 = vld [vmem:[#allocation7 + $0x240] ss:$12 sps:$4 sm:$0xff]   ;;  %v9441_v58 = vld [vmem:[#allocation7 + $0x128] ss:$12 sps:$4 sm:$0xff]  }
0x11c4   :  { %v9429_v39 = vld [vmem:[#allocation7 + $0x170] ss:$12 sps:$4 sm:$0xff]   ;;  %v9433_v51 = vld [vmem:[#allocation7 + $0x158] ss:$12 sps:$4 sm:$0xff]   ;;  %v9437_v9 = vld [vmem:[#allocation7 + $0x140] ss:$12 sps:$4 sm:$0xff]  }
0x11c5   :  { %6728 = vmatpush1.bf16.msra.mxu1 %v9367_v43  ;;  %v9430_v14 = vld [vmem:[#allocation7 + $0x2f0] ss:$12 sps:$4 sm:$0xff]   ;;  %v9434_v62 = vld [vmem:[#allocation7 + $0x2d8] ss:$12 sps:$4 sm:$0xff]   ;;  %v9438_v44 = vld [vmem:[#allocation7 + $0x2c0] ss:$12 sps:$4 sm:$0xff]  }
0x11c6   :  { %6769 = vmatpush1.bf16.msra.mxu0 %v9368_v59  ;;  %6729 = vmatprep.subr.bf16.mxu1 %v9369_v0  ;;  %v9431_v47 = vld [vmem:[#allocation7 + $0xb0] ss:$12 sps:$4 sm:$0xff]   ;;  %v9435_v18 = vld [vmem:[#allocation7 + $0x98] ss:$12 sps:$4 sm:$0xff]   ;;  %v9439_v61 = vld [vmem:[#allocation7 + $0x80] ss:$12 sps:$4 sm:$0xff]  }
0x11c7   :  { %6770 = vmatprep.subr.bf16.mxu0 %v9371_v36  ;;  %v9432_v50 = vld [vmem:[#allocation7 + $0x230] ss:$12 sps:$4 sm:$0xff]   ;;  %v9436_v55 = vld [vmem:[#allocation7 + $0x218] ss:$12 sps:$4 sm:$0xff]   ;;  %v9440_v63 = vld [vmem:[#allocation7 + $0x200] ss:$12 sps:$4 sm:$0xff]  }
0x11c8   :  { %v9442_v43 = vld [vmem:[#allocation7 + $0x2a8] ss:$12 sps:$4 sm:$0xff]   ;;  %v9445_v36 = vld [vmem:[#allocation7 + $0x110] ss:$12 sps:$4 sm:$0xff]  }
0x11c9   :  { %6730 = vmatpush1.bf16.msra.mxu1 %v9373_v1  ;;  %v9443_v59 = vld [vmem:[#allocation7 + $0x68] ss:$12 sps:$4 sm:$0xff]   ;;  %v9446_v1 = vld [vmem:[#allocation7 + $0x290] ss:$12 sps:$4 sm:$0xff]  }
0x11ca   :  { %6771 = vmatpush1.bf16.msra.mxu0 %v9374_v24  ;;  %6731 = vmatprep.subr.bf16.mxu1 %v9375_v2  ;;  %v9444_v0 = vld [vmem:[#allocation7 + $0x1e8] ss:$12 sps:$4 sm:$0xff]   ;;  %v9448_v24 = vld [vmem:[#allocation7 + $0x1d0] ss:$12 sps:$4 sm:$0xff]   ;;  %v9450_v2 = vld [vmem:[#allocation7 + $0x278] ss:$12 sps:$4 sm:$0xff]  }
0x11cb   :  { %6772 = vmatprep.subr.bf16.mxu0 %v9377_v3  ;;  %v9451_v3 = vld [vmem:[#allocation7 + $0x38] ss:$12 sps:$4 sm:$0xff]  }
0x11cd   :  { %6732 = vmatpush1.bf16.msra.mxu1 %v9379_v4  ;;  %v9452_v4 = vld [vmem:[#allocation7 + $0x1b8] ss:$12 sps:$4 sm:$0xff]  }
0x11ce   :  { %6773 = vmatpush1.bf16.msra.mxu0 %v9380_v30  ;;  %6733 = vmatprep.subr.bf16.mxu1 %v9381_v7  ;;  %v9453_v30 = vld [vmem:[#allocation7 + $0xe0] ss:$12 sps:$4 sm:$0xff]  }
0x11cf   :  { %6774 = vmatprep.subr.bf16.mxu0 %v9383_v8  ;;  %v9454_v7 = vld [vmem:[#allocation7 + $0x260] ss:$12 sps:$4 sm:$0xff]  }
0x11d0   :  { %v9455_v8 = vld [vmem:[#allocation7 + $0x20] ss:$12 sps:$4 sm:$0xff]  }
0x11d1   :  { %6734 = vmatpush2.bf16.msra.mxu1 %v9385_v57  ;;  %v9456_v57 = vld [vmem:[#allocation7 + $0x1a0] ss:$12 sps:$4 sm:$0xff]  }
0x11d2   :  { %6775 = vmatpush2.bf16.msra.mxu0 %v9386_v41  ;;  %6735 = vmatprep.subr.bf16.mxu1 %v9387_v42  ;;  %v9457_v41 = vld [vmem:[#allocation7 + $0xc8] ss:$12 sps:$4 sm:$0xff]  }
0x11d3   :  { %6776 = vmatprep.subr.bf16.mxu0 %v9389_v56  ;;  %v9458_v42 = vld [vmem:[#allocation7 + $0x248] ss:$12 sps:$4 sm:$0xff]  }
0x11d4   :  { %v9459_v56 = vld [vmem:[#allocation7 + $0x8] ss:$12 sps:$4 sm:$0xff]  }
0x11d5   :  { %6736 = vmatpush2.bf16.msra.mxu1 %v9391_v33  ;;  %v9460_v33 = vld [vmem:[#allocation7 + $0x188] ss:$12 sps:$4 sm:$0xff]  }
0x11d6   :  { %6777 = vmatpush2.bf16.msra.mxu0 %v9392_v52  ;;  %6737 = vmatprep.subr.bf16.mxu1 %v9393_v37  ;;  %v6188_v52 = vld [vmem:[#allocation10 + $0x21] ss:$8 sm:$0x7] }
0x11d7   :  { %6778 = vmatprep.subr.bf16.mxu0 %v9395_v40  ;;  %v6193_v37 = vrot.slane %v6188_v52, %v9832_v5  ;;  %v6197_v40 = vrot.slane %v6188_v52, %v9835_v6 }
0x11d9   :  { %6738 = vmatpush2.bf16.msra.mxu1 %v9397_v11 }
0x11da   :  { %6779 = vmatpush2.bf16.msra.mxu0 %v9398_v60  ;;  %6739 = vmatprep.subr.bf16.mxu1 %v9399_v12 }
0x11db   :  { %6780 = vmatprep.subr.bf16.mxu0 %v9401_v13 }
0x11dd   :  { %6740 = vmatpush2.bf16.msra.mxu1 %v9403_v15 }
0x11de   :  { %6781 = vmatpush2.bf16.msra.mxu0 %v9404_v16  ;;  %6741 = vmatprep.subr.bf16.mxu1 %v9405_v19 }
0x11df   :  { %6782 = vmatprep.subr.bf16.mxu0 %v9407_v20 }
0x11e1   :  { %6742 = vmatpush2.bf16.msra.mxu1 %v9409_v21 }
0x11e2   :  { %6783 = vmatpush2.bf16.msra.mxu0 %v9410_v25  ;;  %6743 = vmatprep.subr.bf16.mxu1 %v9411_v23 }
0x11e3   :  { %6784 = vmatprep.subr.bf16.mxu0 %v9413_v53 }
0x11e5   :  { %6744 = vmatpush2.bf16.msra.mxu1 %v9415_v46 }
0x11e6   :  { %6785 = vmatpush2.bf16.msra.mxu0 %v9416_v28  ;;  %6745 = vmatprep.subr.bf16.mxu1 %v9417_v29 }
0x11e7   :  { %6786 = vmatprep.subr.bf16.mxu0 %v9419_v31 }
0x11e9   :  { %6746 = vmatpush2.bf16.msra.mxu1 %v9421_v32 }
0x11ea   :  { %6787 = vmatpush2.bf16.msra.mxu0 %v9422_v17  ;;  %6747 = vmatprep.subr.bf16.mxu1 %v9423_v10 }
0x11eb   :  { %6788 = vmatprep.subr.bf16.mxu0 %v9425_v34 }
0x11ed   :  { %6748 = vmatpush2.bf16.msra.mxu1 %v9427_v35 }
0x11ee   :  { %6789 = vmatpush2.bf16.msra.mxu0 %v9428_v22  ;;  %8319 = vmatprep.subr.bf16.mxu1 %v9429_v39 }
0x11ef   :  { %8341 = vmatprep.subr.bf16.mxu0 %v9430_v14 }
0x11f0   :  { %6750 = vmatmul.mubr.bf16.vlgmr.msra.gmra.mxu1 %v10153_v49 }
0x11f1   :  { %6791 = vmatmul.mubr.bf16.vlgmr.msra.gmra.mxu0 %v10157_v48  ;;  %8320 = vmatpush3.bf16.msra.mxu1 %v9431_v47 }
0x11f2   :  { %8342 = vmatpush3.bf16.msra.mxu0 %v9432_v50  ;;  %8321 = vmatprep.subr.bf16.mxu1 %v9433_v51 }
0x11f3   :  { %8343 = vmatprep.subr.bf16.mxu0 %v9434_v62  ;;  %6831 = vmatprep.mubr.bf16.mxu1 %v10145_v26  ;;  %v9447_v26 = vld [vmem:[#allocation7 + $0x50] ss:$12 sps:$4 sm:$0xff]  }
0x11f4   :  { %6871 = vmatprep.mubr.bf16.mxu0 %v10147_v27  ;;  %v9449_v27 = vld [vmem:[#allocation7 + $0xf8] ss:$12 sps:$4 sm:$0xff]  }
0x11f5   :  { %8322 = vmatpush3.bf16.msra.mxu1 %v9435_v18 }
0x11f6   :  { %8344 = vmatpush3.bf16.msra.mxu0 %v9436_v55  ;;  %8323 = vmatprep.subr.bf16.mxu1 %v9437_v9 }
0x11f7   :  { %8345 = vmatprep.subr.bf16.mxu0 %v9438_v44 }
0x11f9   :  { %8324 = vmatpush3.bf16.msra.mxu1 %v9439_v61 }
0x11fa   :  { %8346 = vmatpush3.bf16.msra.mxu0 %v9440_v63  ;;  %8325 = vmatprep.subr.bf16.mxu1 %v9441_v58  ;;  %v6201_v58 = vrot.slane %v6188_v52, %v9828_v54 }
0x11fb   :  { %8347 = vmatprep.subr.bf16.mxu0 %v9442_v43 }
0x11fd   :  { %8326 = vmatpush3.bf16.msra.mxu1 %v9443_v59 }
0x11fe   :  { %8348 = vmatpush3.bf16.msra.mxu0 %v9444_v0  ;;  %8327 = vmatprep.subr.bf16.mxu1 %v9445_v36 }
0x11ff   :  { %8349 = vmatprep.subr.bf16.mxu0 %v9446_v1 }
0x1201   :  { %8328 = vmatpush3.bf16.msra.mxu1 %v9447_v26 }
0x1202   :  { %8350 = vmatpush3.bf16.msra.mxu0 %v9448_v24  ;;  %8329 = vmatprep.subr.bf16.mxu1 %v9449_v27 }
0x1203   :  { %8351 = vmatprep.subr.bf16.mxu0 %v9450_v2 }
0x1205   :  { %8330 = vmatpush3.bf16.msra.mxu1 %v9451_v3 }
0x1206   :  { %8352 = vmatpush3.bf16.msra.mxu0 %v9452_v4  ;;  %8331 = vmatprep.subr.bf16.mxu1 %v9453_v30 }
0x1207   :  { %8353 = vmatprep.subr.bf16.mxu0 %v9454_v7 }
0x1209   :  { %8332 = vmatpush3.bf16.msra.mxu1 %v9455_v8 }
0x120a   :  { %8354 = vmatpush3.bf16.msra.mxu0 %v9456_v57  ;;  %8333 = vmatprep.subr.bf16.mxu1 %v9457_v41 }
0x120b   :  { %8355 = vmatprep.subr.bf16.mxu0 %v9458_v42 }
0x120d   :  { %8334 = vmatpush3.bf16.msra.mxu1 %v9459_v56 }
0x120e   :  { %8356 = vmatpush3.bf16.msra.mxu0 %v9460_v33 }
0x1210   :  { %6832 = vmatmul.mubr.bf16.vlgmr.msra.gmra.mxu1 %v10153_v49 }
0x1211   :  { %6872 = vmatmul.mubr.bf16.vlgmr.msra.gmra.mxu0 %v10157_v48 }
0x12b0   :  { %v6751_v11 = vpop.f32.mrf.mxu1 }
0x12b1   :  { %v6792_v60 = vpop.f32.mrf.mxu0  ;;  %v6752_v12 = vadd.f32 %v6751_v11, %v6193_v37 }
0x12b2   :  { %v6753_v13 = vpop.f32.mrf.mxu1 }
0x12b3   :  { %v6794_v15 = vpop.f32.mrf.mxu0  ;;  %v10167_v16 = vadd.f32 %v6792_v60, %v6752_v12  ;;  %v6754_v19 = vadd.f32 %v6753_v13, %v6197_v40 }
0x12b4   :  { %v6755_v20 = vpop.f32.mrf.mxu1 }
0x12b5   :  { %v6796_v21 = vpop.f32.mrf.mxu0  ;;  %v10170_v25 = vmul.f32 0.70710677, %v10167_v16  ;;  %v10172_v23 = vadd.f32 %v6794_v15, %v6754_v19 }
0x12b6   :  { %v6756_v53 = vpop.f32.mrf.mxu1 }
0x12b7   :  { %v6797_v46 = vpop.f32.mrf.mxu0  ;;  %v6891_v28 = vand.u32 2147483647, %v10170_v25  ;;  %v10176_v29 = vmul.f32 0.70710677, %v10172_v23  ;;  %vm6885_vm11 = vcmp.ge.f32.partialorder %v10170_v25, 0.0 }
0x12b8   :  { %v6888_v53 = vsel %vm6885_vm11, 1.0, %v9731_v38  ;;  %v6961_v46 = vld [vmem:[#allocation10 + $0x22] ss:$8 sm:$0x7] }
0x12b9   :  { %v6894_v31 = vmul.f32 0.3275911, %v6891_v28  ;;  %v6892_v32 = vand.u32 2147483647, %v10176_v29  ;;  %v6933_v35 = vsub.f32 0.0, %v6891_v28  ;;  %vm6886_vm12 = vcmp.ge.f32.partialorder %v10176_v29, 0.0 }
0x12ba   :  { %v6966_v25 = vrot.slane %v6961_v46, %v9832_v5  ;;  %v6970_v29 = vrot.slane %v6961_v46, %v9835_v6 }
0x12bb   :  { %v6897_v17 = vadd.f32 1.0, %v6894_v31  ;;  %v6895_v10 = vmul.f32 0.3275911, %v6892_v32  ;;  %v6934_v22 = vsub.f32 0.0, %v6892_v32  ;;  %v6936_v39 = vmul.f32 %v6933_v35, %v6891_v28 }
0x12bc   :  { %v6889_v35 = vsel %vm6886_vm12, 1.0, %v9731_v38 }
0x12bd   :  { %9461 = vrcp.f32 %v6897_v17  ;;  %v6898_v34 = vadd.f32 1.0, %v6895_v10  ;;  %v6937_v47 = vmul.f32 %v6934_v22, %v6892_v32  ;;  %v6939_v48 = vmul.f32 1.442695, %v6936_v39  ;;  %v6982_v32 = vld [vmem:[#allocation10 + $0x23] ss:$8 sm:$0x7] }
0x12be   :  { %v6879_v10 = vmul.f32 0.5, %v10167_v16 }
0x12bf   :  { %9463 = vrcp.f32 %v6898_v34  ;;  %v6941_v18 = vmul.f32 1.442695, %v6937_v47  ;;  %v6880_v47 = vmul.f32 0.5, %v10172_v23 }
0x12c0   :  { %9465 = vpow2.f32 %v6939_v48 }
0x12c1   :  { %9467 = vpow2.f32 %v6941_v18 }
0x12ca   :  { %v9462_v14 = vpop.eup %9461 }
0x12cb   :  { %v6906_v49 = vmul.f32 1.0614054, %v9462_v14 }
0x12cc   :  { %v9464_v50 = vpop.eup %9463 }
0x12cd   :  { %v6909_v51 = vadd.f32 -1.4531521, %v6906_v49  ;;  %v6907_v62 = vmul.f32 1.0614054, %v9464_v50  ;;  %v9466_v11 = vpop.eup %9465 }
0x12ce   :  { %v9468_v19 = vpop.eup %9467 }
0x12cf   :  { %v6912_v55 = vmul.f32 %v9462_v14, %v6909_v51  ;;  %v6910_v9 = vadd.f32 -1.4531521, %v6907_v62  ;;  %v6991_v62 = vrot.slane %v6982_v32, %v9835_v6 }
0x12d0   :  { %v8335_v44 = vpop.f32.mrf.mxu1 }
0x12d1   :  { %v8357_v61 = vpop.f32.mrf.mxu0  ;;  %v6915_v63 = vadd.f32 1.4214138, %v6912_v55  ;;  %v6913_v43 = vmul.f32 %v9464_v50, %v6910_v9 }
0x12d2   :  { %v8336_v59 = vpop.f32.mrf.mxu1 }
0x12d3   :  { %v8358_v0 = vpop.f32.mrf.mxu0  ;;  %v6918_v36 = vmul.f32 %v9462_v14, %v6915_v63  ;;  %v8337_v1 = vadd.f32 %v8336_v59, %v8335_v44  ;;  %v6916_v26 = vadd.f32 1.4214138, %v6913_v43 }
0x12d4   :  { %v8338_v24 = vpop.f32.mrf.mxu1  ;;  %v8359_v4 = vadd.f32 %v8358_v0, %v8357_v61 }
0x12d5   :  { %v8360_v27 = vpop.f32.mrf.mxu0  ;;  %v6921_v2 = vadd.f32 -0.28449672, %v6918_v36  ;;  %v6834_v3 = vadd.f32 %v8337_v1, %v6201_v58  ;;  %v6919_v30 = vmul.f32 %v9464_v50, %v6916_v26 }
0x12d6   :  { %v8339_v7 = vpop.f32.mrf.mxu1 }
0x12d7   :  { %v8361_v8 = vpop.f32.mrf.mxu0  ;;  %v6924_v57 = vmul.f32 %v9462_v14, %v6921_v2  ;;  %v6874_v41 = vadd.f32 %v8359_v4, %v6834_v3  ;;  %v6922_v42 = vadd.f32 -0.28449672, %v6919_v30 }
0x12d8   :  { %v6974_v8 = vrot.slane %v6961_v46, %v9828_v54 }
0x12d9   :  { %v6927_v56 = vadd.f32 0.2548296, %v6924_v57  ;;  %v6884_v33 = vmul.f32 0.70710677, %v6874_v41  ;;  %v6925_v52 = vmul.f32 %v9464_v50, %v6922_v42  ;;  %v6881_v30 = vmul.f32 0.5, %v6874_v41 }
0x12da   :  { %v6995_v42 = vrot.slane %v6982_v32, %v9828_v54 }
0x12db   :  { %v6930_v37 = vmul.f32 %v9462_v14, %v6927_v56  ;;  %v6893_v40 = vand.u32 2147483647, %v6884_v33  ;;  %v6928_v60 = vadd.f32 0.2548296, %v6925_v52  ;;  %v6987_v14 = vrot.slane %v6982_v32, %v9832_v5 }
0x12dc   :  { %vm6887_vm13 = vcmp.ge.f32.partialorder %v6884_v33, 0.0 }
0x12dd   :  { %v6945_v12 = vmul.f32 %v9466_v11, %v6930_v37  ;;  %v6896_v13 = vmul.f32 0.3275911, %v6893_v40  ;;  %v6931_v15 = vmul.f32 %v9464_v50, %v6928_v60  ;;  %v6935_v50 = vsub.f32 0.0, %v6893_v40 }
0x12de   :  { %v6890_v3 = vsel %vm6887_vm13, 1.0, %v9731_v38 }
0x12df   :  { %v6948_v20 = vsub.f32 1.0, %v6945_v12  ;;  %v6899_v21 = vadd.f32 1.0, %v6896_v13  ;;  %v6946_v28 = vmul.f32 %v9468_v19, %v6931_v15  ;;  %v6938_v55 = vmul.f32 %v6935_v50, %v6893_v40 }
0x12e1   :  { %v6951_v31 = vmul.f32 %v6948_v20, %v6888_v53  ;;  %9469 = vrcp.f32 %v6899_v21  ;;  %v6949_v17 = vsub.f32 1.0, %v6946_v28  ;;  %v6943_v63 = vmul.f32 1.442695, %v6938_v55 }
0x12e3   :  { %v6954_v34 = vadd.f32 1.0, %v6951_v31  ;;  %v6952_v22 = vmul.f32 %v6949_v17, %v6889_v35  ;;  %9471 = vpow2.f32 %v6943_v63 }
0x12e5   :  { %v6957_v39 = vmul.f32 %v6954_v34, %v6879_v10  ;;  %v6955_v49 = vadd.f32 1.0, %v6952_v22 }
0x12e7   :  { %v6978_v48 = vmul.f32 %v6966_v25, %v6957_v39  ;;  %v6958_v51 = vmul.f32 %v6955_v49, %v6880_v47 }
0x12e9   :  { %v10190_v16 = vadd.f32 %v6987_v14, %v6978_v48  ;;  %v6979_v18 = vmul.f32 %v6970_v29, %v6958_v51 }
0x12eb   :  { %v7000_v9 = vadd.f32 %v6991_v62, %v6979_v18 }
0x12ee   :  { %v9470_v44 = vpop.eup %9469 }
0x12ef   :  { %v6908_v61 = vmul.f32 1.0614054, %v9470_v44 }
0x12f0   :  { %v9472_v24 = vpop.eup %9471 }
0x12f1   :  { %v6911_v58 = vadd.f32 -1.4531521, %v6908_v61 }
0x12f3   :  { %v6914_v43 = vmul.f32 %v9470_v44, %v6911_v58 }
0x12f5   :  { %v6917_v23 = vadd.f32 1.4214138, %v6914_v43 }
0x12f7   :  { %v6920_v59 = vmul.f32 %v9470_v44, %v6917_v23 }
0x12f9   :  { %v6923_v0 = vadd.f32 -0.28449672, %v6920_v59 }
0x12fb   :  { %v6926_v36 = vmul.f32 %v9470_v44, %v6923_v0 }
0x12fd   :  { %v6929_v1 = vadd.f32 0.2548296, %v6926_v36 }
0x12ff   :  { %v6932_v26 = vmul.f32 %v9470_v44, %v6929_v1 }
0x1301   :  { %v6947_v27 = vmul.f32 %v9472_v24, %v6932_v26 }
0x1303   :  { %v6950_v2 = vsub.f32 1.0, %v6947_v27 }
0x1305   :  { %v6953_v4 = vmul.f32 %v6950_v2, %v6890_v3 }
0x1307   :  { %v6956_v7 = vadd.f32 1.0, %v6953_v4 }
0x1309   :  { %v6959_v57 = vmul.f32 %v6956_v7, %v6881_v30 }
0x130b   :  { %v6980_v56 = vmul.f32 %v6974_v8, %v6959_v57 }
0x130d   :  { %v10195_v52 = vadd.f32 %v6995_v42, %v6980_v56 }
0x130e   :  { %9719 = dma.done.wait [#allocation9 + $0x6], 6144 }
0x130f   :  { %9720 = vsyncadd [#allocation9 + $0x6], 4294961152  ;;  %7382 = vmatprep.mubr.bf16.mxu0 %v9732_v45  ;;  %v7006_v33 = vpack.c.bf16 %v7000_v9, %v7000_v9  ;;  %v9473_v37 = vld [vmem:[#allocation8 + $0x74] ss:$8 sps:$4 sm:$0xff]   ;;  %v9475_v40 = vld [vmem:[#allocation8 + $0x70] ss:$8 sps:$4 sm:$0xff]   ;;  %v7007_v63 = vpack.c.bf16 %v10195_v52, %v10195_v52  ;;  %v7005_v27 = vpack.c.bf16 %v10190_v16, %v10190_v16 }
0x1310   :  { %7309 = vmatprep.subr.bf16.mxu1 %v9473_v37  ;;  %v9476_v38 = vld [vmem:[#allocation8 + $0x64] ss:$8 sps:$4 sm:$0xff]   ;;  %v9478_v41 = vld [vmem:[#allocation8 + $0x60] ss:$8 sps:$4 sm:$0xff]   ;;  %v9479_v11 = vld [vmem:[#allocation8 + $0x54] ss:$8 sps:$4 sm:$0xff]  }
0x1311   :  { %7341 = vmatprep.mubr.bf16.mxu1 %v7006_v33  ;;  %7310 = vmatpush1.bf16.msra.mxu1 %v9475_v40  ;;  %v9481_v60 = vld [vmem:[#allocation8 + $0x50] ss:$8 sps:$4 sm:$0xff]   ;;  %v9482_v54 = vld [vmem:[#allocation8 + $0x44] ss:$8 sps:$4 sm:$0xff]   ;;  %v9494_v12 = vld [vmem:[#allocation8 + $0x174] ss:$8 sps:$4 sm:$0xff]  }
0x1312   :  { %7311 = vmatprep.subr.bf16.mxu1 %v9476_v38  ;;  %v9484_v13 = vld [vmem:[#allocation8 + $0x40] ss:$8 sps:$4 sm:$0xff]   ;;  %v9485_v15 = vld [vmem:[#allocation8 + $0x34] ss:$8 sps:$4 sm:$0xff]   ;;  %v9498_v19 = vld [vmem:[#allocation8 + $0x170] ss:$8 sps:$4 sm:$0xff]   ;;  %7350 = vmatprep.subr.bf16.mxu0 %v9494_v12 }
0x1313   :  { %v9500_v45 = vld [vmem:[#allocation8 + $0x164] ss:$8 sps:$4 sm:$0xff]   ;;  %7351 = vmatpush1.bf16.msra.mxu0 %v9498_v19  ;;  %v9487_v20 = vld [vmem:[#allocation8 + $0x30] ss:$8 sps:$4 sm:$0xff]   ;;  %v9504_v21 = vld [vmem:[#allocation8 + $0x160] ss:$8 sps:$4 sm:$0xff]  }
0x1314   :  { %7352 = vmatprep.subr.bf16.mxu0 %v9500_v45  ;;  %v9506_v53 = vld [vmem:[#allocation8 + $0x154] ss:$8 sps:$4 sm:$0xff]   ;;  %v9488_v46 = vld [vmem:[#allocation8 + $0x24] ss:$8 sps:$4 sm:$0xff]   ;;  %v9510_v28 = vld [vmem:[#allocation8 + $0x150] ss:$8 sps:$4 sm:$0xff]  }
0x1315   :  { %7312 = vmatpush1.bf16.msra.mxu1 %v9478_v41  ;;  %v9512_v31 = vld [vmem:[#allocation8 + $0x144] ss:$8 sps:$4 sm:$0xff]   ;;  %v9490_v32 = vld [vmem:[#allocation8 + $0x20] ss:$8 sps:$4 sm:$0xff]   ;;  %v9491_v17 = vld [vmem:[#allocation8 + $0x14] ss:$8 sps:$4 sm:$0xff]  }
0x1316   :  { %7313 = vmatprep.subr.bf16.mxu1 %v9479_v11  ;;  %v9516_v10 = vld [vmem:[#allocation8 + $0x140] ss:$8 sps:$4 sm:$0xff]   ;;  %v9518_v34 = vld [vmem:[#allocation8 + $0x134] ss:$8 sps:$4 sm:$0xff]   ;;  %v9493_v25 = vld [vmem:[#allocation8 + $0x10] ss:$8 sps:$4 sm:$0xff]  }
0x1317   :  { %7353 = vmatpush1.bf16.msra.mxu0 %v9504_v21  ;;  %v9496_v35 = vld [vmem:[#allocation8 + $0x4] ss:$8 sps:$4 sm:$0xff]   ;;  %v9522_v22 = vld [vmem:[#allocation8 + $0x130] ss:$8 sps:$4 sm:$0xff]   ;;  %v9499_v14 = vld [vmem:[#allocation8] ss:$8 sps:$4 sm:$0xff]  }
0x1318   :  { %7354 = vmatprep.subr.bf16.mxu0 %v9506_v53  ;;  %v9524_v39 = vld [vmem:[#allocation8 + $0x124] ss:$8 sps:$4 sm:$0xff]   ;;  %v9502_v47 = vld [vmem:[#allocation8 + $0xf4] ss:$8 sps:$4 sm:$0xff]   ;;  %v9528_v49 = vld [vmem:[#allocation8 + $0x120] ss:$8 sps:$4 sm:$0xff]  }
0x1319   :  { %7314 = vmatpush1.bf16.msra.mxu1 %v9481_v60  ;;  %v9530_v29 = vld [vmem:[#allocation8 + $0x114] ss:$8 sps:$4 sm:$0xff]   ;;  %v9505_v48 = vld [vmem:[#allocation8 + $0xf0] ss:$8 sps:$4 sm:$0xff]   ;;  %v9508_v50 = vld [vmem:[#allocation8 + $0xe4] ss:$8 sps:$4 sm:$0xff]  }
0x131a   :  { %7315 = vmatprep.subr.bf16.mxu1 %v9482_v54  ;;  %v9534_v51 = vld [vmem:[#allocation8 + $0x110] ss:$8 sps:$4 sm:$0xff]   ;;  %v9536_v62 = vld [vmem:[#allocation8 + $0x104] ss:$8 sps:$4 sm:$0xff]   ;;  %v9511_v18 = vld [vmem:[#allocation8 + $0xe0] ss:$8 sps:$4 sm:$0xff]  }
0x131b   :  { %7355 = vmatpush1.bf16.msra.mxu0 %v9510_v28  ;;  %v9514_v55 = vld [vmem:[#allocation8 + $0xd4] ss:$8 sps:$4 sm:$0xff]   ;;  %v9540_v9 = vld [vmem:[#allocation8 + $0x100] ss:$8 sps:$4 sm:$0xff]   ;;  %v9517_v44 = vld [vmem:[#allocation8 + $0xd0] ss:$8 sps:$4 sm:$0xff]  }
0x131c   :  { %7356 = vmatprep.subr.bf16.mxu0 %v9512_v31  ;;  %v9520_v61 = vld [vmem:[#allocation8 + $0xc4] ss:$8 sps:$4 sm:$0xff]   ;;  %v9523_v58 = vld [vmem:[#allocation8 + $0xc0] ss:$8 sps:$4 sm:$0xff]   ;;  %v9526_v43 = vld [vmem:[#allocation8 + $0xb4] ss:$8 sps:$4 sm:$0xff]  }
0x131d   :  { %7316 = vmatpush1.bf16.msra.mxu1 %v9484_v13  ;;  %v9529_v23 = vld [vmem:[#allocation8 + $0xb0] ss:$8 sps:$4 sm:$0xff]   ;;  %v9532_v59 = vld [vmem:[#allocation8 + $0xa4] ss:$8 sps:$4 sm:$0xff]   ;;  %v9535_v0 = vld [vmem:[#allocation8 + $0xa0] ss:$8 sps:$4 sm:$0xff]  }
0x131e   :  { %7317 = vmatprep.subr.bf16.mxu1 %v9485_v15  ;;  %v9538_v36 = vld [vmem:[#allocation8 + $0x94] ss:$8 sps:$4 sm:$0xff]   ;;  %v9541_v1 = vld [vmem:[#allocation8 + $0x90] ss:$8 sps:$4 sm:$0xff]   ;;  %v9542_v26 = vld [vmem:[#allocation8 + $0x84] ss:$8 sps:$4 sm:$0xff]  }
0x131f   :  { %7357 = vmatpush1.bf16.msra.mxu0 %v9516_v10  ;;  %v9544_v24 = vld [vmem:[#allocation8 + $0x80] ss:$8 sps:$4 sm:$0xff]   ;;  %v7057_v7 = vld [vmem:[#allocation10 + $0x24] ss:$8 sm:$0x3] }
0x1320   :  { %7358 = vmatprep.subr.bf16.mxu0 %v9518_v34  ;;  %v7062_v8 = vrot.slane %v7057_v7, %v9832_v5  ;;  %v7066_v57 = vrot.slane %v7057_v7, %v9835_v6 }
0x1321   :  { %7318 = vmatpush1.bf16.msra.mxu1 %v9487_v20 }
0x1322   :  { %7319 = vmatprep.subr.bf16.mxu1 %v9488_v46 }
0x1323   :  { %7359 = vmatpush1.bf16.msra.mxu0 %v9522_v22 }
0x1324   :  { %7360 = vmatprep.subr.bf16.mxu0 %v9524_v39 }
0x1325   :  { %7320 = vmatpush1.bf16.msra.mxu1 %v9490_v32 }
0x1326   :  { %7321 = vmatprep.subr.bf16.mxu1 %v9491_v17 }
0x1327   :  { %7361 = vmatpush1.bf16.msra.mxu0 %v9528_v49 }
0x1328   :  { %7362 = vmatprep.subr.bf16.mxu0 %v9530_v29 }
0x1329   :  { %7322 = vmatpush1.bf16.msra.mxu1 %v9493_v25 }
0x132a   :  { %7323 = vmatprep.subr.bf16.mxu1 %v9496_v35 }
0x132b   :  { %7363 = vmatpush1.bf16.msra.mxu0 %v9534_v51 }
0x132c   :  { %7364 = vmatprep.subr.bf16.mxu0 %v9536_v62 }
0x132d   :  { %7324 = vmatpush1.bf16.msra.mxu1 %v9499_v14 }
0x132e   :  { %7325 = vmatprep.subr.bf16.mxu1 %v9502_v47 }
0x132f   :  { %7365 = vmatpush1.bf16.msra.mxu0 %v9540_v9 }
0x1331   :  { %7326 = vmatpush2.bf16.msra.mxu1 %v9505_v48 }
0x1332   :  { %7327 = vmatprep.subr.bf16.mxu1 %v9508_v50  ;;  %7383 = vmatmul.mubr.bf16.vlgmr.msra.gmra.mxu0 %v7007_v63 }
0x1335   :  { %7328 = vmatpush2.bf16.msra.mxu1 %v9511_v18 }
0x1336   :  { %7329 = vmatprep.subr.bf16.mxu1 %v9514_v55 }
0x1339   :  { %7330 = vmatpush2.bf16.msra.mxu1 %v9517_v44 }
0x133a   :  { %7331 = vmatprep.subr.bf16.mxu1 %v9520_v61 }
0x133d   :  { %7332 = vmatpush2.bf16.msra.mxu1 %v9523_v58 }
0x133e   :  { %7333 = vmatprep.subr.bf16.mxu1 %v9526_v43 }
0x1341   :  { %7334 = vmatpush2.bf16.msra.mxu1 %v9529_v23 }
0x1342   :  { %7335 = vmatprep.subr.bf16.mxu1 %v9532_v59 }
0x1345   :  { %7336 = vmatpush2.bf16.msra.mxu1 %v9535_v0 }
0x1346   :  { %7337 = vmatprep.subr.bf16.mxu1 %v9538_v36 }
0x1349   :  { %7338 = vmatpush2.bf16.msra.mxu1 %v9541_v1 }
0x134a   :  { %7339 = vmatprep.subr.bf16.mxu1 %v9542_v26 }
0x134d   :  { %7340 = vmatpush2.bf16.msra.mxu1 %v9544_v24 }
0x1350   :  { %7342 = vmatmul.mubr.bf16.vlgmr.msra.gmra.mxu1 %v7005_v27 }
0x13f2   :  { %v7384_v2 = vpop.f32.mrf.mxu0 }
0x13f4   :  { %v7386_v3 = vpop.f32.mrf.mxu0 }
0x13f6   :  { %v7388_v4 = vpop.f32.mrf.mxu0 }
0x13f8   :  { %v7389_v30 = vpop.f32.mrf.mxu0 }
0x1410   :  { %v7343_v42 = vpop.f32.mrf.mxu1 }
0x1411   :  { %v7344_v56 = vadd.f32 %v7343_v42, %v7062_v8 }
0x1412   :  { %v7345_v52 = vpop.f32.mrf.mxu1 }
0x1413   :  { %v7385_v33 = vadd.f32 %v7384_v2, %v7344_v56  ;;  %v7346_v37 = vadd.f32 %v7345_v52, %v7066_v57 }
0x1414   :  { %v7347_v40 = vpop.f32.mrf.mxu1 }
0x1415   :  { %7391 = vst [vmem:[%s10220_s10] sm:$0xff] %v7385_v33  ;;  %v7387_v16 = vadd.f32 %v7386_v3, %v7346_v37 }
0x1416   :  { %v7348_v38 = vpop.f32.mrf.mxu1 }
0x1417   :  { %7392 = vst [vmem:[%s10220_s10 + $0x8] sm:$0xff] %v7387_v16 }
0x1418   :  { %7401 = vsyncpa [#allocation11], 1 }
0x1419   :  { %7402 = vsyncmov [#allocation9] }
0x141c   :  { %s7403_s18 = vpop.sfrf %7402 }
0x141d   :  { %p8199_p12 = scmp.ne.s32.totalorder %s7403_s18, 0 }
0x141f   :  { %7407 = shalt.err (%p8199_p12)  }
0x1420   :  { %7409 = vsyncmov [#allocation9 + $0x1] }
0x1423   :  { %s7410_s0 = vpop.sfrf %7409 }
0x1424   :  { %p8200_p13 = scmp.ne.s32.totalorder %s7410_s0, 0 }
0x1426   :  { %7414 = shalt.err (%p8200_p13)  }
0x1427   :  { %7416 = vsyncmov [#allocation9 + $0x2] }
0x142a   :  { %s7417_s19 = vpop.sfrf %7416 }
0x142b   :  { %p8201_p0 = scmp.ne.s32.totalorder %s7417_s19, 0 }
0x142d   :  { %7421 = shalt.err (%p8201_p0)  }
0x142e   :  { %7423 = vsyncmov [#allocation9 + $0x3] }
0x1431   :  { %s7424_s20 = vpop.sfrf %7423 }
0x1432   :  { %p8202_p1 = scmp.ne.s32.totalorder %s7424_s20, 0 }
0x1434   :  { %7428 = shalt.err (%p8202_p1)  }
0x1435   :  { %7430 = vsyncmov [#allocation9 + $0x4] }
0x1438   :  { %s7431_s21 = vpop.sfrf %7430 }
0x1439   :  { %p8203_p2 = scmp.ne.s32.totalorder %s7431_s21, 0 }
0x143b   :  { %7435 = shalt.err (%p8203_p2)  }
0x143c   :  { %7437 = vsyncmov [#allocation9 + $0x5] }
0x143f   :  { %s7438_s10 = vpop.sfrf %7437 }
0x1440   :  { %p8204_p3 = scmp.ne.s32.totalorder %s7438_s10, 0 }
0x1442   :  { %7442 = shalt.err (%p8204_p3)  }
0x1443   :  { %7444 = vsyncmov [#allocation9 + $0x6] }
0x1446   :  { %s7445_s22 = vpop.sfrf %7444 }
0x1447   :  { %p8205_p4 = scmp.ne.s32.totalorder %s7445_s22, 0 }
0x1449   :  { %7449 = shalt.err (%p8205_p4)  }

</bundles_post_ra>
